<compile_context>
chip_gen: v7x
topology: tpu7x:2x2x1
jax: 0.10.0
libtpu: 0.0.40
codegen_flags: <defaults>
</compile_context>

<pallas_src>
import functools

import jax
import jax.numpy as jnp
from jax.experimental import pallas as pl
from jax.experimental.pallas import tpu as pltpu

_EPS = 1e-8  # torch cosine_similarity eps
_HIGHEST = jax.lax.Precision.HIGHEST


def _cpss_kernel(fz_ref, g_ref, trow_ref, tcol_ref, rseg_ref, out_ref, *,
                 num_classes, n_total, masked):
    # fz_ref  : (tn, P*P)  block-affinity logits (lane-dense view of (tn, P, P))
    # g_ref   : (tn, P)    float labels of the P pixels of each block
    # trow_ref: (P, P*P)   const 0/1: g @ trow -> label of pixel q at lane p*P+q
    # tcol_ref: (P, P*P)   const 0/1: g @ tcol -> label of pixel p at lane p*P+q
    # rseg_ref: (P*P, P)   const 0/1: A @ rseg -> per-pixel (length-P segment) sums
    # out_ref : (1, 8, 128) partial sums: sublane 0 = BCE sum, sublane 1 = CE sum
    tn, pp = fz_ref.shape
    px = g_ref.shape[1]

    x = fz_ref[...].astype(jnp.float32)                                # (tn, PP)
    g = g_ref[...]                                                     # (tn, P)

    if masked:  # only compiled when the last grid step is a partial block
        base = pl.program_id(0) * tn
        lim = n_total - base
        valid2 = jax.lax.broadcasted_iota(jnp.int32, (tn, pp), 0) < lim
        validp = jax.lax.broadcasted_iota(jnp.int32, (tn, px), 0) < lim
        x = jnp.where(valid2, x, 0.0)
        g = jnp.where(validp, g, 0.0)

    # Expand labels to the lane-dense domain on the (otherwise idle) MXU.  The
    # matrices are 0/1, so the results are exact copies of the integer-valued labels.
    g_row = jnp.dot(g, trow_ref[...], preferred_element_type=jnp.float32,
                    precision=_HIGHEST)                                # (tn, PP)
    g_col = jnp.dot(g, tcol_ref[...], preferred_element_type=jnp.float32,
                    precision=_HIGHEST)                                # (tn, PP)

    # ---- compute_block_affinity_gt + BCEWithLogitsLoss (stable, shared exp) ----
    e = jnp.exp(-jnp.abs(x))                                           # shared with sigmoid
    bce = jnp.maximum(x, 0.0) + jnp.log1p(e) - jnp.where(g_row == g_col, x, 0.0)
    if masked:
        bce = jnp.where(valid2, bce, 0.0)
    bce_total = jnp.sum(bce)                                           # scalar

    # ---- predict_from_block_affinity (cosine sim) + per-pixel CrossEntropy ----
    s = jnp.where(x >= 0.0, 1.0, e) * pl.reciprocal(1.0 + e, approx=True)  # stable sigmoid
    rseg = rseg_ref[...]
    ssum2 = jnp.dot(s * s, rseg, preferred_element_type=jnp.float32,
                    precision=_HIGHEST)                                # (tn, P)
    inv_sn = jax.lax.rsqrt(jnp.maximum(ssum2, _EPS * _EPS))            # 1/max(||s_p||, eps)

    exp_sum = jnp.zeros((tn, px), jnp.float32)
    tgt = jnp.zeros((tn, px), jnp.float32)
    for k in range(num_classes):
        kf = float(k)
        # masked segment-sum of s on the MXU: num_k[n, p] = sum_q s[n,p,q]*[g[n,q]==k]
        num_k = jnp.dot(jnp.where(g_row == kf, s, 0.0), rseg,
                        preferred_element_type=jnp.float32, precision=_HIGHEST)
        maskp_k = g == kf                                              # (tn, P)
        cnt_k = jnp.sum(maskp_k.astype(jnp.float32), axis=-1, keepdims=True)  # (tn, 1)
        inv_on = jax.lax.rsqrt(jnp.maximum(cnt_k, _EPS * _EPS))        # 1/max(||onehot_k||, eps)
        sim_k = num_k * inv_sn * inv_on                                # (tn, P), in [0, 1]
        exp_sum = exp_sum + jnp.exp(sim_k)                             # sims in [0,1]: no max-sub
        tgt = tgt + jnp.where(maskp_k, sim_k, 0.0)
    ce = jnp.log(exp_sum) - tgt                                        # (tn, P)
    if masked:
        ce = jnp.where(validp, ce, 0.0)
    ce_total = jnp.sum(ce)                                             # scalar

    # ---- single lane-dense (8, 128) output tile per grid step ----
    sub = jax.lax.broadcasted_iota(jnp.int32, (8, 128), 0)
    out_ref[0] = ((sub == 0).astype(jnp.float32) * bce_total
                  + (sub == 1).astype(jnp.float32) * ce_total)


def _round_up(x, m):
    return -(-x // m) * m


def _vmem_capacity():
    try:
        return int(pltpu.get_tpu_info().vmem_capacity_bytes)
    except Exception:
        return 64 * 1024 * 1024            # assume smallest current-gen (v7x per-core) VMEM


def _pick_rows(n, pp, itemsize, vmem_cap):
    """Rows per grid step: padded-bytes/dtype aware, >=4 steps, prefers divisors of n."""
    lane_pad = _round_up(pp, 128)
    budget = max(2 * 1024 * 1024, min(10 * 1024 * 1024, vmem_cap // 6))
    # Per row: double-buffered input block (padded lanes, real dtype) plus ~8 live
    # lane-dense f32 intermediates (x, e, s, g_row, g_col, per-class temporaries).
    per_row = 2 * lane_pad * itemsize + 8 * lane_pad * 4
    tn_max = max(8, (budget // per_row) // 8 * 8)
    if n <= 8:
        return n
    tn = max(8, min(tn_max, _round_up(pl.cdiv(n, 4), 8)))   # aim for >= 4 grid steps
    # Prefer a multiple-of-8 divisor of n (within 2x) so the partial-last-block
    # masking path compiles away entirely.
    for t in range(tn, max(7, tn // 2 - 1), -8):
        if n % t == 0:
            return t
    return tn


def cpss_loss(fuzzy_map, label, mat_size, bs=5):
    """Returns (loss_bce, loss_ce_gt) like cpssloss.forward."""
    b, c, h, w = mat_size

    # F.interpolate(label.unsqueeze(1).float(), size=(h, w)) (nearest): tiny label glue.
    lb = label.astype(jnp.float32)
    h_in, w_in = lb.shape[1], lb.shape[2]
    ri = jnp.floor(jnp.arange(h) * (h_in / h)).astype(jnp.int32)
    ci = jnp.floor(jnp.arange(w) * (w_in / w)).astype(jnp.int32)
    gt = lb[:, ri][:, :, ci]                                           # (b, h, w)

    bh, bw = h // bs, w // bs
    px = bh * bw                                                       # pixels per block
    pp = px * px
    n = b * bs * bs                                                    # number of blocks

    # Lane-dense view of fuzzy_map: contiguous reshape only, no HBM copy.
    fz = fuzzy_map.reshape(n, pp)
    # Label-only block extraction (tiny).
    g_blk = (gt.reshape(b, bs, bh, bs, bw)
               .transpose(0, 1, 3, 2, 4)
               .reshape(n, px)).astype(jnp.float32)                    # (n, px)

    # Constant 0/1 helper matrices (a few KiB each, built once on the host):
    #   g @ t_row -> g_row[n, p*P+q] = g[n, q];  g @ t_col -> g_col[n, p*P+q] = g[n, p]
    #   A @ r_seg -> per-pixel (length-P segment) sums of a lane-dense A
    l_idx = jnp.arange(pp)
    q_idx = jnp.arange(px)
    t_row = (l_idx[None, :] % px == q_idx[:, None]).astype(jnp.float32)    # (px, pp)
    t_col = (l_idx[None, :] // px == q_idx[:, None]).astype(jnp.float32)   # (px, pp)
    r_seg = t_col.T                                                        # (pp, px)

    vmem_cap = _vmem_capacity()
    tn = _pick_rows(n, pp, fuzzy_map.dtype.itemsize, vmem_cap)
    grid_n = pl.cdiv(n, tn)
    masked = (n % tn) != 0
    # Explicit scoped-VMEM limit: raises v5e's 16 MiB default, stays safe on v7x (64 MiB).
    vmem_limit = 32 * 1024 * 1024 if vmem_cap <= 64 * 1024 * 1024 else 64 * 1024 * 1024

    kernel = functools.partial(_cpss_kernel, num_classes=c, n_total=n, masked=masked)

    out = pl.pallas_call(
        kernel,
        out_shape=jax.ShapeDtypeStruct((grid_n, 8, 128), jnp.float32),
        grid_spec=pltpu.PrefetchScalarGridSpec(
            num_scalar_prefetch=0,
            grid=(grid_n,),
            in_specs=[
                pl.BlockSpec((tn, pp), lambda i: (i, 0)),
                pl.BlockSpec((tn, px), lambda i: (i, 0)),
                pl.BlockSpec((px, pp), lambda i: (0, 0)),
                pl.BlockSpec((px, pp), lambda i: (0, 0)),
                pl.BlockSpec((pp, px), lambda i: (0, 0)),
            ],
            out_specs=pl.BlockSpec((1, 8, 128), lambda i: (i, 0, 0)),
        ),
        compiler_params=pltpu.CompilerParams(
            dimension_semantics=("parallel",),
            vmem_limit_bytes=int(vmem_limit)),
    )(fz, g_blk, t_row, t_col, r_seg)

    bce_sum = jnp.sum(out[:, 0, 0])
    ce_sum = jnp.sum(out[:, 1, 0])
    loss_bce = bce_sum / (n * pp)      # mean over all fuzzy_map elements
    loss_ce = ce_sum / (n * px)        # mean over all b*h*w pixels
    return loss_bce, loss_ce


def cpss_loss_ref(fuzzy_map, label, mat_size, bs=5):
    """Pure-JAX reference (same math as the PyTorch module) for validation.
    Assumes label spatial dims already equal (h, w), as CrossEntropyLoss requires."""
    b, c, h, w = mat_size
    gt = label.astype(jnp.float32)                                     # label already (b,h,w)
    bh, bw = h // bs, w // bs
    px = bh * bw
    gtb = gt.reshape(b, bs, bh, bs, bw).transpose(0, 1, 3, 2, 4).reshape(b, bs, bs, px)

    x = fuzzy_map.astype(jnp.float32)
    aff = (gtb[..., :, None] == gtb[..., None, :]).astype(jnp.float32)
    bce = jnp.mean(jnp.maximum(x, 0.0) - x * aff + jnp.log1p(jnp.exp(-jnp.abs(x))))

    s = jax.nn.sigmoid(x)                                              # (b,bs,bs,P,P)
    gi = gtb.astype(jnp.int32)
    oh = jax.nn.one_hot(gi, c, dtype=jnp.float32)                      # (b,bs,bs,P,c)
    num = jnp.einsum('bijpq,bijqk->bijpk', s, oh, precision=jax.lax.Precision.HIGHEST)
    sn = jnp.sqrt(jnp.sum(s * s, axis=-1, keepdims=True))
    on = jnp.sqrt(jnp.sum(oh, axis=-2, keepdims=True))
    sim = num / (jnp.maximum(sn, _EPS) * jnp.maximum(on, _EPS))        # (b,bs,bs,P,c)
    lse = jax.scipy.special.logsumexp(sim, axis=-1)
    tgt = jnp.take_along_axis(sim, gi[..., None], axis=-1)[..., 0]
    ce = jnp.mean(lse - tgt)
    return bce, ce


if __name__ == "__main__":
    key = jax.random.PRNGKey(0)
    k1, k2, k3, k4 = jax.random.split(key, 4)

    # Case 1: N=50 -> tn=16, 4 grid steps, partial last block (masking path exercised).
    B, C, H, W = 2, 4, 20, 20          # mat_size
    BS = 5                             # block ratio
    P = (H // BS) * (W // BS)          # 16 pixels per block
    fuzzy_map = jax.random.normal(k1, (B, BS, BS, P, P), dtype=jnp.float32)
    label = jax.random.randint(k2, (B, H, W), 0, C, dtype=jnp.int32)
    mat_size = (B, C, H, W)

    loss_bce, loss_ce = jax.block_until_ready(cpss_loss(fuzzy_map, label, mat_size, bs=BS))
    ref_bce, ref_ce = cpss_loss_ref(fuzzy_map, label, mat_size, bs=BS)
    assert jnp.allclose(loss_bce, ref_bce, rtol=1e-4, atol=1e-5), (loss_bce, ref_bce)
    # approx reciprocal in the in-kernel sigmoid bounds the kernel-vs-ref CE delta (~1e-3)
    assert jnp.allclose(loss_ce, ref_ce, rtol=5e-3, atol=5e-3), (loss_ce, ref_ce)

    # Case 2: N=32 -> tn=8 divides N, 4 grid steps, no partial-block masking path.
    B2, C2, H2, W2, BS2 = 8, 3, 8, 8, 2
    P2 = (H2 // BS2) * (W2 // BS2)     # 16
    fuzzy_map2 = jax.random.normal(k3, (B2, BS2, BS2, P2, P2), dtype=jnp.float32)
    label2 = jax.random.randint(k4, (B2, H2, W2), 0, C2, dtype=jnp.int32)
    mat_size2 = (B2, C2, H2, W2)

    loss_bce2, loss_ce2 = jax.block_until_ready(
        cpss_loss(fuzzy_map2, label2, mat_size2, bs=BS2))
    ref_bce2, ref_ce2 = cpss_loss_ref(fuzzy_map2, label2, mat_size2, bs=BS2)
    assert jnp.allclose(loss_bce2, ref_bce2, rtol=1e-4, atol=1e-5), (loss_bce2, ref_bce2)
    assert jnp.allclose(loss_ce2, ref_ce2, rtol=5e-3, atol=5e-3), (loss_ce2, ref_ce2)

    print("KERNEL_OK")
</pallas_src>

<mosaic_0001>
module attributes {stable_mosaic.version = 11 : i64} {
  func.func @_cpss_kernel(%arg0: i32, %arg1: memref<16x256xf32, #tpu.memory_space<vmem>>, %arg2: memref<16x16xf32, #tpu.memory_space<vmem>>, %arg3: memref<16x256xf32, #tpu.memory_space<vmem>>, %arg4: memref<16x256xf32, #tpu.memory_space<vmem>>, %arg5: memref<256x16xf32, #tpu.memory_space<vmem>>, %arg6: memref<1x8x128xf32, #tpu.memory_space<vmem>>) attributes {dimension_semantics = [#tpu.dimension_semantics<parallel>], iteration_bounds = array<i64: 4>, scalar_prefetch = 0 : i64, scratch_operands = 0 : i64, tpu.core_type = #tpu.core_type<tc>, window_params = [{transform_indices = @transform_0, window_bounds = array<i64: 16, 256>}, {transform_indices = @transform_1, window_bounds = array<i64: 16, 16>}, {pipeline_mode = #tpu.pipeline_mode<synchronous>, transform_indices = @transform_2, window_bounds = array<i64: 16, 256>}, {pipeline_mode = #tpu.pipeline_mode<synchronous>, transform_indices = @transform_3, window_bounds = array<i64: 16, 256>}, {pipeline_mode = #tpu.pipeline_mode<synchronous>, transform_indices = @transform_4, window_bounds = array<i64: 256, 16>}, {transform_indices = @transform_5, window_bounds = array<i64: 1, 8, 128>}]} {
    %c0 = arith.constant 0 : index
    %c0_0 = arith.constant 0 : index
    %0 = vector.load %arg1[%c0, %c0_0] : memref<16x256xf32, #tpu.memory_space<vmem>>, vector<16x256xf32>
    %c0_1 = arith.constant 0 : index
    %c0_2 = arith.constant 0 : index
    %1 = vector.load %arg2[%c0_1, %c0_2] : memref<16x16xf32, #tpu.memory_space<vmem>>, vector<16x16xf32>
    %c16_i32 = arith.constant 16 : i32
    %2 = arith.muli %arg0, %c16_i32 : i32
    %c50_i32 = arith.constant 50 : i32
    %3 = arith.subi %c50_i32, %2 : i32
    %4 = tpu.iota {dimensions = array<i32: 0>} : vector<16x256xi32>
    %5 = vector.broadcast %3 : i32 to vector<16x256xi32>
    %6 = arith.cmpi slt, %4, %5 : vector<16x256xi32>
    %7 = tpu.iota {dimensions = array<i32: 0>} : vector<16x16xi32>
    %8 = vector.broadcast %3 : i32 to vector<16x16xi32>
    %9 = arith.cmpi slt, %7, %8 : vector<16x16xi32>
    %cst = arith.constant 0.000000e+00 : f32
    %10 = vector.broadcast %cst : f32 to vector<16x256xf32>
    %11 = arith.select %6, %0, %10 : vector<16x256xi1>, vector<16x256xf32>
    %cst_3 = arith.constant 0.000000e+00 : f32
    %12 = vector.broadcast %cst_3 : f32 to vector<16x16xf32>
    %13 = arith.select %9, %1, %12 : vector<16x16xi1>, vector<16x16xf32>
    %c0_4 = arith.constant 0 : index
    %c0_5 = arith.constant 0 : index
    %14 = vector.load %arg3[%c0_4, %c0_5] : memref<16x256xf32, #tpu.memory_space<vmem>>, vector<16x256xf32>
    %cst_6 = arith.constant dense<0.000000e+00> : vector<16x256xf32>
    %15 = tpu.matmul %13, %14, %cst_6 {dimension_numbers = #tpu.dot_dimension_numbers<[1], [0], [0], [1], [0, 0, 1, 1], [], []>, precision = #tpu.contract_precision<fp32>} : vector<16x16xf32>, vector<16x256xf32>, vector<16x256xf32> -> vector<16x256xf32>
    %c0_7 = arith.constant 0 : index
    %c0_8 = arith.constant 0 : index
    %16 = vector.load %arg4[%c0_7, %c0_8] : memref<16x256xf32, #tpu.memory_space<vmem>>, vector<16x256xf32>
    %cst_9 = arith.constant dense<0.000000e+00> : vector<16x256xf32>
    %17 = tpu.matmul %13, %16, %cst_9 {dimension_numbers = #tpu.dot_dimension_numbers<[1], [0], [0], [1], [0, 0, 1, 1], [], []>, precision = #tpu.contract_precision<fp32>} : vector<16x16xf32>, vector<16x256xf32>, vector<16x256xf32> -> vector<16x256xf32>
    %18 = math.absf %11 : vector<16x256xf32>
    %cst_10 = arith.constant 0.000000e+00 : f32
    %19 = vector.broadcast %cst_10 : f32 to vector<16x256xf32>
    %20 = arith.subf %19, %18 : vector<16x256xf32>
    %21 = math.exp %20 : vector<16x256xf32>
    %cst_11 = arith.constant 0.000000e+00 : f32
    %22 = vector.broadcast %cst_11 : f32 to vector<16x256xf32>
    %23 = arith.maximumf %11, %22 : vector<16x256xf32>
    %24 = math.log1p %21 : vector<16x256xf32>
    %25 = arith.addf %23, %24 : vector<16x256xf32>
    %26 = arith.cmpf oeq, %15, %17 : vector<16x256xf32>
    %cst_12 = arith.constant 0.000000e+00 : f32
    %27 = vector.broadcast %cst_12 : f32 to vector<16x256xf32>
    %28 = arith.select %26, %11, %27 : vector<16x256xi1>, vector<16x256xf32>
    %29 = arith.subf %25, %28 : vector<16x256xf32>
    %cst_13 = arith.constant 0.000000e+00 : f32
    %30 = vector.broadcast %cst_13 : f32 to vector<16x256xf32>
    %31 = arith.select %6, %29, %30 : vector<16x256xi1>, vector<16x256xf32>
    %32 = vector.shape_cast %31 : vector<16x256xf32> to vector<1x16x256xf32>
    %cst_14 = arith.constant dense<0.000000e+00> : vector<1xf32>
    %33 = vector.multi_reduction <add>, %32, %cst_14 [1, 2] : vector<1x16x256xf32> to vector<1xf32>
    %34 = vector.shape_cast %33 : vector<1xf32> to vector<1x1x1xf32>
    %35 = vector.extract %34[0, 0, 0] : f32 from vector<1x1x1xf32>
    %cst_15 = arith.constant 0.000000e+00 : f32
    %36 = vector.broadcast %cst_15 : f32 to vector<16x256xf32>
    %37 = arith.cmpf oge, %11, %36 : vector<16x256xf32>
    %cst_16 = arith.constant 1.000000e+00 : f32
    %38 = vector.broadcast %cst_16 : f32 to vector<16x256xf32>
    %39 = arith.select %37, %38, %21 : vector<16x256xi1>, vector<16x256xf32>
    %cst_17 = arith.constant 1.000000e+00 : f32
    %40 = vector.broadcast %cst_17 : f32 to vector<16x256xf32>
    %41 = arith.addf %40, %21 : vector<16x256xf32>
    %42 = tpu.reciprocal %41 {approx = true} : vector<16x256xf32> -> vector<16x256xf32>
    %43 = arith.mulf %39, %42 : vector<16x256xf32>
    %c0_18 = arith.constant 0 : index
    %c0_19 = arith.constant 0 : index
    %44 = vector.load %arg5[%c0_18, %c0_19] : memref<256x16xf32, #tpu.memory_space<vmem>>, vector<256x16xf32>
    %45 = arith.mulf %43, %43 : vector<16x256xf32>
    %cst_20 = arith.constant dense<0.000000e+00> : vector<16x16xf32>
    %46 = tpu.matmul %45, %44, %cst_20 {dimension_numbers = #tpu.dot_dimension_numbers<[1], [0], [0], [1], [0, 0, 1, 1], [], []>, precision = #tpu.contract_precision<fp32>} : vector<16x256xf32>, vector<256x16xf32>, vector<16x16xf32> -> vector<16x16xf32>
    %cst_21 = arith.constant 1.000000e-16 : f32
    %47 = vector.broadcast %cst_21 : f32 to vector<16x16xf32>
    %48 = arith.maximumf %46, %47 : vector<16x16xf32>
    %49 = math.rsqrt %48 : vector<16x16xf32>
    %cst_22 = arith.constant 0.000000e+00 : f32
    %50 = vector.broadcast %cst_22 : f32 to vector<16x16xf32>
    %cst_23 = arith.constant 0.000000e+00 : f32
    %51 = vector.broadcast %cst_23 : f32 to vector<16x16xf32>
    %cst_24 = arith.constant 0.000000e+00 : f32
    %52 = vector.broadcast %cst_24 : f32 to vector<16x256xf32>
    %53 = arith.cmpf oeq, %15, %52 : vector<16x256xf32>
    %cst_25 = arith.constant 0.000000e+00 : f32
    %54 = vector.broadcast %cst_25 : f32 to vector<16x256xf32>
    %55 = arith.select %53, %43, %54 : vector<16x256xi1>, vector<16x256xf32>
    %cst_26 = arith.constant dense<0.000000e+00> : vector<16x16xf32>
    %56 = tpu.matmul %55, %44, %cst_26 {dimension_numbers = #tpu.dot_dimension_numbers<[1], [0], [0], [1], [0, 0, 1, 1], [], []>, precision = #tpu.contract_precision<fp32>} : vector<16x256xf32>, vector<256x16xf32>, vector<16x16xf32> -> vector<16x16xf32>
    %cst_27 = arith.constant 0.000000e+00 : f32
    %57 = vector.broadcast %cst_27 : f32 to vector<16x16xf32>
    %58 = arith.cmpf oeq, %13, %57 : vector<16x16xf32>
    %59 = arith.extui %58 : vector<16x16xi1> to vector<16x16xi32>
    %60 = arith.sitofp %59 : vector<16x16xi32> to vector<16x16xf32>
    %cst_28 = arith.constant dense<0.000000e+00> : vector<16xf32>
    %61 = vector.multi_reduction <add>, %60, %cst_28 [1] : vector<16x16xf32> to vector<16xf32>
    %62 = vector.shape_cast %61 : vector<16xf32> to vector<16x1xf32>
    %cst_29 = arith.constant 1.000000e-16 : f32
    %63 = vector.broadcast %cst_29 : f32 to vector<16x1xf32>
    %64 = arith.maximumf %62, %63 : vector<16x1xf32>
    %65 = math.rsqrt %64 : vector<16x1xf32>
    %66 = arith.mulf %56, %49 : vector<16x16xf32>
    %67 = vector.broadcast %65 : vector<16x1xf32> to vector<16x16xf32>
    %68 = arith.mulf %66, %67 : vector<16x16xf32>
    %69 = math.exp %68 : vector<16x16xf32>
    %70 = arith.addf %50, %69 : vector<16x16xf32>
    %cst_30 = arith.constant 0.000000e+00 : f32
    %71 = vector.broadcast %cst_30 : f32 to vector<16x16xf32>
    %72 = arith.select %58, %68, %71 : vector<16x16xi1>, vector<16x16xf32>
    %73 = arith.addf %51, %72 : vector<16x16xf32>
    %cst_31 = arith.constant 1.000000e+00 : f32
    %74 = vector.broadcast %cst_31 : f32 to vector<16x256xf32>
    %75 = arith.cmpf oeq, %15, %74 : vector<16x256xf32>
    %cst_32 = arith.constant 0.000000e+00 : f32
    %76 = vector.broadcast %cst_32 : f32 to vector<16x256xf32>
    %77 = arith.select %75, %43, %76 : vector<16x256xi1>, vector<16x256xf32>
    %cst_33 = arith.constant dense<0.000000e+00> : vector<16x16xf32>
    %78 = tpu.matmul %77, %44, %cst_33 {dimension_numbers = #tpu.dot_dimension_numbers<[1], [0], [0], [1], [0, 0, 1, 1], [], []>, precision = #tpu.contract_precision<fp32>} : vector<16x256xf32>, vector<256x16xf32>, vector<16x16xf32> -> vector<16x16xf32>
    %cst_34 = arith.constant 1.000000e+00 : f32
    %79 = vector.broadcast %cst_34 : f32 to vector<16x16xf32>
    %80 = arith.cmpf oeq, %13, %79 : vector<16x16xf32>
    %81 = arith.extui %80 : vector<16x16xi1> to vector<16x16xi32>
    %82 = arith.sitofp %81 : vector<16x16xi32> to vector<16x16xf32>
    %cst_35 = arith.constant dense<0.000000e+00> : vector<16xf32>
    %83 = vector.multi_reduction <add>, %82, %cst_35 [1] : vector<16x16xf32> to vector<16xf32>
    %84 = vector.shape_cast %83 : vector<16xf32> to vector<16x1xf32>
    %cst_36 = arith.constant 1.000000e-16 : f32
    %85 = vector.broadcast %cst_36 : f32 to vector<16x1xf32>
    %86 = arith.maximumf %84, %85 : vector<16x1xf32>
    %87 = math.rsqrt %86 : vector<16x1xf32>
    %88 = arith.mulf %78, %49 : vector<16x16xf32>
    %89 = vector.broadcast %87 : vector<16x1xf32> to vector<16x16xf32>
    %90 = arith.mulf %88, %89 : vector<16x16xf32>
    %91 = math.exp %90 : vector<16x16xf32>
    %92 = arith.addf %70, %91 : vector<16x16xf32>
    %cst_37 = arith.constant 0.000000e+00 : f32
    %93 = vector.broadcast %cst_37 : f32 to vector<16x16xf32>
    %94 = arith.select %80, %90, %93 : vector<16x16xi1>, vector<16x16xf32>
    %95 = arith.addf %73, %94 : vector<16x16xf32>
    %cst_38 = arith.constant 2.000000e+00 : f32
    %96 = vector.broadcast %cst_38 : f32 to vector<16x256xf32>
    %97 = arith.cmpf oeq, %15, %96 : vector<16x256xf32>
    %cst_39 = arith.constant 0.000000e+00 : f32
    %98 = vector.broadcast %cst_39 : f32 to vector<16x256xf32>
    %99 = arith.select %97, %43, %98 : vector<16x256xi1>, vector<16x256xf32>
    %cst_40 = arith.constant dense<0.000000e+00> : vector<16x16xf32>
    %100 = tpu.matmul %99, %44, %cst_40 {dimension_numbers = #tpu.dot_dimension_numbers<[1], [0], [0], [1], [0, 0, 1, 1], [], []>, precision = #tpu.contract_precision<fp32>} : vector<16x256xf32>, vector<256x16xf32>, vector<16x16xf32> -> vector<16x16xf32>
    %cst_41 = arith.constant 2.000000e+00 : f32
    %101 = vector.broadcast %cst_41 : f32 to vector<16x16xf32>
    %102 = arith.cmpf oeq, %13, %101 : vector<16x16xf32>
    %103 = arith.extui %102 : vector<16x16xi1> to vector<16x16xi32>
    %104 = arith.sitofp %103 : vector<16x16xi32> to vector<16x16xf32>
    %cst_42 = arith.constant dense<0.000000e+00> : vector<16xf32>
    %105 = vector.multi_reduction <add>, %104, %cst_42 [1] : vector<16x16xf32> to vector<16xf32>
    %106 = vector.shape_cast %105 : vector<16xf32> to vector<16x1xf32>
    %cst_43 = arith.constant 1.000000e-16 : f32
    %107 = vector.broadcast %cst_43 : f32 to vector<16x1xf32>
    %108 = arith.maximumf %106, %107 : vector<16x1xf32>
    %109 = math.rsqrt %108 : vector<16x1xf32>
    %110 = arith.mulf %100, %49 : vector<16x16xf32>
    %111 = vector.broadcast %109 : vector<16x1xf32> to vector<16x16xf32>
    %112 = arith.mulf %110, %111 : vector<16x16xf32>
    %113 = math.exp %112 : vector<16x16xf32>
    %114 = arith.addf %92, %113 : vector<16x16xf32>
    %cst_44 = arith.constant 0.000000e+00 : f32
    %115 = vector.broadcast %cst_44 : f32 to vector<16x16xf32>
    %116 = arith.select %102, %112, %115 : vector<16x16xi1>, vector<16x16xf32>
    %117 = arith.addf %95, %116 : vector<16x16xf32>
    %cst_45 = arith.constant 3.000000e+00 : f32
    %118 = vector.broadcast %cst_45 : f32 to vector<16x256xf32>
    %119 = arith.cmpf oeq, %15, %118 : vector<16x256xf32>
    %cst_46 = arith.constant 0.000000e+00 : f32
    %120 = vector.broadcast %cst_46 : f32 to vector<16x256xf32>
    %121 = arith.select %119, %43, %120 : vector<16x256xi1>, vector<16x256xf32>
    %cst_47 = arith.constant dense<0.000000e+00> : vector<16x16xf32>
    %122 = tpu.matmul %121, %44, %cst_47 {dimension_numbers = #tpu.dot_dimension_numbers<[1], [0], [0], [1], [0, 0, 1, 1], [], []>, precision = #tpu.contract_precision<fp32>} : vector<16x256xf32>, vector<256x16xf32>, vector<16x16xf32> -> vector<16x16xf32>
    %cst_48 = arith.constant 3.000000e+00 : f32
    %123 = vector.broadcast %cst_48 : f32 to vector<16x16xf32>
    %124 = arith.cmpf oeq, %13, %123 : vector<16x16xf32>
    %125 = arith.extui %124 : vector<16x16xi1> to vector<16x16xi32>
    %126 = arith.sitofp %125 : vector<16x16xi32> to vector<16x16xf32>
    %cst_49 = arith.constant dense<0.000000e+00> : vector<16xf32>
    %127 = vector.multi_reduction <add>, %126, %cst_49 [1] : vector<16x16xf32> to vector<16xf32>
    %128 = vector.shape_cast %127 : vector<16xf32> to vector<16x1xf32>
    %cst_50 = arith.constant 1.000000e-16 : f32
    %129 = vector.broadcast %cst_50 : f32 to vector<16x1xf32>
    %130 = arith.maximumf %128, %129 : vector<16x1xf32>
    %131 = math.rsqrt %130 : vector<16x1xf32>
    %132 = arith.mulf %122, %49 : vector<16x16xf32>
    %133 = vector.broadcast %131 : vector<16x1xf32> to vector<16x16xf32>
    %134 = arith.mulf %132, %133 : vector<16x16xf32>
    %135 = math.exp %134 : vector<16x16xf32>
    %136 = arith.addf %114, %135 : vector<16x16xf32>
    %cst_51 = arith.constant 0.000000e+00 : f32
    %137 = vector.broadcast %cst_51 : f32 to vector<16x16xf32>
    %138 = arith.select %124, %134, %137 : vector<16x16xi1>, vector<16x16xf32>
    %139 = arith.addf %117, %138 : vector<16x16xf32>
    %140 = math.log %136 : vector<16x16xf32>
    %141 = arith.subf %140, %139 : vector<16x16xf32>
    %cst_52 = arith.constant 0.000000e+00 : f32
    %142 = vector.broadcast %cst_52 : f32 to vector<16x16xf32>
    %143 = arith.select %9, %141, %142 : vector<16x16xi1>, vector<16x16xf32>
    %144 = vector.shape_cast %143 : vector<16x16xf32> to vector<1x16x16xf32>
    %cst_53 = arith.constant dense<0.000000e+00> : vector<1xf32>
    %145 = vector.multi_reduction <add>, %144, %cst_53 [1, 2] : vector<1x16x16xf32> to vector<1xf32>
    %146 = vector.shape_cast %145 : vector<1xf32> to vector<1x1x1xf32>
    %147 = vector.extract %146[0, 0, 0] : f32 from vector<1x1x1xf32>
    %148 = tpu.iota {dimensions = array<i32: 0>} : vector<8x128xi32>
    %c0_i32 = arith.constant 0 : i32
    %149 = vector.broadcast %c0_i32 : i32 to vector<8x128xi32>
    %150 = arith.cmpi eq, %148, %149 : vector<8x128xi32>
    %151 = arith.extui %150 : vector<8x128xi1> to vector<8x128xi32>
    %152 = arith.sitofp %151 : vector<8x128xi32> to vector<8x128xf32>
    %153 = vector.broadcast %35 : f32 to vector<8x128xf32>
    %154 = arith.mulf %152, %153 : vector<8x128xf32>
    %c1_i32 = arith.constant 1 : i32
    %155 = vector.broadcast %c1_i32 : i32 to vector<8x128xi32>
    %156 = arith.cmpi eq, %148, %155 : vector<8x128xi32>
    %157 = arith.extui %156 : vector<8x128xi1> to vector<8x128xi32>
    %158 = arith.sitofp %157 : vector<8x128xi32> to vector<8x128xf32>
    %159 = vector.broadcast %147 : f32 to vector<8x128xf32>
    %160 = arith.mulf %158, %159 : vector<8x128xf32>
    %161 = arith.addf %154, %160 : vector<8x128xf32>
    %c0_54 = arith.constant 0 : index
    %c0_55 = arith.constant 0 : index
    %c0_56 = arith.constant 0 : index
    %162 = vector.load %arg6[%c0_54, %c0_55, %c0_56] : memref<1x8x128xf32, #tpu.memory_space<vmem>>, vector<1x8x128xf32>
    %163 = vector.shape_cast %162 : vector<1x8x128xf32> to vector<8x128xf32>
    %164 = vector.shape_cast %161 : vector<8x128xf32> to vector<1x8x128xf32>
    tpu.vector_store %arg6[%c0_54, %c0_55, %c0_56], %164 {strides = array<i32>} : memref<1x8x128xf32, #tpu.memory_space<vmem>>, vector<1x8x128xf32>,
    return
  }
  func.func @transform_0(%arg0: i32) -> (i32, i32) {
    %c0_i32 = arith.constant 0 : i32
    %c0_i32_0 = arith.constant 0 : i32
    return %arg0, %c0_i32 : i32, i32
  }
  func.func @transform_1(%arg0: i32) -> (i32, i32) {
    %c0_i32 = arith.constant 0 : i32
    %c0_i32_0 = arith.constant 0 : i32
    return %arg0, %c0_i32 : i32, i32
  }
  func.func @transform_2(%arg0: i32) -> (i32, i32) {
    %c0_i32 = arith.constant 0 : i32
    %c0_i32_0 = arith.constant 0 : i32
    %c0_i32_1 = arith.constant 0 : i32
    return %c0_i32, %c0_i32_0 : i32, i32
  }
  func.func @transform_3(%arg0: i32) -> (i32, i32) {
    %c0_i32 = arith.constant 0 : i32
    %c0_i32_0 = arith.constant 0 : i32
    %c0_i32_1 = arith.constant 0 : i32
    return %c0_i32, %c0_i32_0 : i32, i32
  }
  func.func @transform_4(%arg0: i32) -> (i32, i32) {
    %c0_i32 = arith.constant 0 : i32
    %c0_i32_0 = arith.constant 0 : i32
    %c0_i32_1 = arith.constant 0 : i32
    return %c0_i32, %c0_i32_0 : i32, i32
  }
  func.func @transform_5(%arg0: i32) -> (i32, i32, i32) {
    %c0_i32 = arith.constant 0 : i32
    %c0_i32_0 = arith.constant 0 : i32
    %c0_i32_1 = arith.constant 0 : i32
    return %arg0, %c0_i32, %c0_i32_0 : i32, i32, i32
  }
}

</mosaic_0001>

<bundles_post_ra>
// kernel: tpu_custom_call.1
= control target key start
LH: loop header
LB: loop body
LE: loop exit
PB: predicated region body
PF: predicated region fallthrough
CT: control target
= control target key end

     0   :  { %10 = vsyncpa [#allocation3], 0  ;;  %s10943_s0 = inlined_call_operand.vmem [shape: f32[50,256], index: 0, kind: input, shape index: {}]   ;;  %s10944_s1 = inlined_call_operand.vmem [shape: f32[50,16], index: 1, kind: input, shape index: {}]   ;;  %s10945_s2 = inlined_call_operand.vmem [shape: f32[16,256], index: 2, kind: input, shape index: {}]   ;;  %s10946_s3 = inlined_call_operand.vmem [shape: f32[16,256], index: 3, kind: input, shape index: {}]   ;;  %s10947_s4 = inlined_call_operand.vmem [shape: f32[256,16], index: 4, kind: input, shape index: {}]   ;;  %s10948_s5 = inlined_call_operand.hbm [shape: f32[4,8,128], index: 5, kind: output, shape index: {}]  }
   0x1   :  { %12 = vsyncpa [#allocation3 + $0x1], 0  ;;  %s8835_s18 = smov 0   ;;  %s8837_s19 = smov 0  }
   0x2   :  { %s8839_s20 = smov 0   ;;  %s8841_s21 = smov 0  }
   0x3 LB: > { %s8856_s22 = sadd.s32 4294967295, %s8801_s21   ;;  %s6417_s23 = sadd.s32 4294967294, %s8801_s21   ;;  %s8801_s21 = sphi %s8841_s21, %s11501_s21   ;;  %s8797_s20 = sphi %s8839_s20, %s11500_s20   ;;  %s8793_s19 = sphi %s8837_s19, %s11499_s19   ;;  %s8789_s18 = sphi %s8835_s18, %s11498_s18  }
   0x4   : > { %s8860_s24 = sadd.s32 1, %s8801_s21   ;;  %s140_s25 = sadd.s32 1, %s8797_s20 }
   0x5   : > { %s137_s26 = ssub.s32 %s8801_s21, %s8860_s24  ;;  %p150_p0 = scmp.ne.s32.totalorder %s8797_s20, %s8793_s19 }
   0x6   : > { %p138_p1 = scmp.eq.s32.totalorder %s137_s26, 0  ;;  %p151_p2 = scmp.eq.s32.totalorder %s8856_s22, 3 }
   0x7   : > { %p156_p3 = scmp.ne.s32.totalorder %s8793_s19, %s8789_s18  ;;  %p157_p4 = scmp.eq.s32.totalorder %s6417_s23, 3 }
   0x8   : > { %s8871_s27 = scalar_select %p138_p1, %s8797_s20, %s140_s25  }
   0x9   : > { %p8873_p5 = por %p151_p2, %p150_p0  ;;  %p8877_p6 = por %p157_p4, %p156_p3 }
   0xa   : > { %p6420_p7 = scmp.ge.s32.totalorder %s8801_s21, 1  ;;  %p221_p8 = scmp.lt.s32.totalorder %s8801_s21, 5 }
   0xc   : > { %p222_p9 = pnand %p6420_p7, %p221_p8 }
   0xe   : > { %225 = sbr.rel (%p222_p9) target bundleno = 1159 (0x487), region = 40 }
  0x15   : > { %v316_v0 = vld [vmem:[%s10945_s2 + $0x8] sm:$0xff]  ;;  %v318_v1 = vld [vmem:[%s10945_s2 + $0x18] sm:$0xff]  ;;  %v315_v2 = vld [vmem:[%s10945_s2] sm:$0xff]  ;;  %s6422_s11 = sshll.u32 %s8856_s22, 1  ;;  %s6427_s12 = sshll.u32 %s8856_s22, 4  ;;  %v10964_v9 = vmov 0.0   ;;  %v303_v15 = vlaneseq }
  0x16   : > { %v326_v3 = vand.u32 4294901760, %v316_v0  ;;  %v330_v4 = vand.u32 4294901760, %v318_v1  ;;  %v317_v5 = vld [vmem:[%s10945_s2 + $0x10] sm:$0xff]  ;;  %v328_v6 = vand.u32 4294901760, %v315_v2  ;;  %v867_v7 = vld [vmem:[%s10946_s3 + $0x8] sm:$0xff]  ;;  %v869_v8 = vld [vmem:[%s10946_s3 + $0x18] sm:$0xff]  ;;  %394 = vmatprep.mubr.f32.mxu0 %v10964_v9  ;;  %938 = vmatprep.mubr.f32.mxu1 %v10964_v9 }
  0x17   : > { %v332_v10 = vand.u32 4294901760, %v317_v5  ;;  %v870_v11 = vand.u32 4294901760, %v867_v7  ;;  %v874_v12 = vand.u32 4294901760, %v869_v8  ;;  %v866_v13 = vld [vmem:[%s10946_s3] sm:$0xff]  ;;  %v868_v14 = vld [vmem:[%s10946_s3 + $0x10] sm:$0xff]  ;;  %p270_p10 = scmp.lt.s32.totalorder %s6422_s11, 6 }
  0x18   : > { %v8911_v16 = vpack.c.bf16 %v330_v4, %v326_v3  ;;  %v8913_v17 = vsub.f32 %v316_v0, %v326_v3  ;;  %v8915_v18 = vsub.f32 %v318_v1, %v330_v4  ;;  %s8917_s7 = ssub.s32 50, %s6427_s12  ;;  %v8921_v20 = vsub.f32 %v315_v2, %v328_v6 }
  0x19   : > { %v8919_v19 = vpack.c.bf16 %v332_v10, %v328_v6  ;;  %v8923_v21 = vsub.f32 %v317_v5, %v332_v10  ;;  %v8925_v22 = vpack.c.bf16 %v874_v12, %v870_v11  ;;  %s11503_s11 = smov (!%p270_p10, %s6422_s11), 6  ;;  %v872_v23 = vand.u32 4294901760, %v866_v13 }
  0x1a   : > { %7584 = vmatprep.subr.bf16.mxu0 %v8911_v16  ;;  %v876_v24 = vand.u32 4294901760, %v868_v14  ;;  %v419_v25 = vand.u32 4294901760, %v8913_v17  ;;  %v431_v26 = vand.u32 4294901760, %v8915_v18  ;;  %s6426_s8 = sshll.u32 %s11503_s11, 3  ;;  %v8935_v27 = vshrl.u32 %v303_v15, 7  ;;  %s6442_s13 = sshll.u32 %s11503_s11, 4 }
  0x1b   : > { %7586 = vmatpush1.bf16.msra.mxu0 %v8919_v19  ;;  %7608 = vmatprep.subr.bf16.mxu1 %v8925_v22  ;;  %v306_v28 = vstv %s8917_s7  ;;  %v8938_v29 = vsub.f32 %v867_v7, %v870_v11  ;;  %s289_s12 = scalar_lea.vmem %s10944_s1, %s6426_s8  ;;  %vm319_vm0 = vcmask 130048   ;;  %v11129_v33 = vmov 0  ;;  %s9018_s15 = scalar_lea.vmem %s10943_s0, %s6442_s13  ;;  %v9028_v7 = vld [vmem:[%s10947_s4 + $0x80] sm:$0xff] }
  0x1c   : > { %11128 = vst [vmem:[#allocation5_spill] sm:$0xff] %v8935_v27  ;;  %v8940_v30 = vpack.c.bf16 %v876_v24, %v872_v23  ;;  %v420_v31 = vsub.f32 %v8913_v17, %v419_v25  ;;  %v432_v32 = vsub.f32 %v8915_v18, %v431_v26  ;;  %vm8952_vm1 = vcmp.lt.s32.totalorder %v8935_v27, %v306_v28  ;;  %v299_v38 = vld [vmem:[%s289_s12] sm:$0xff]  ;;  %v300_v44 = vld [vmem:[%s289_s12 + $0x8] sm:$0xff]  ;;  %s6439_s7 = sshll.u32 %s8856_s22, 7  ;;  %s8804_s22 = smov [#allocation2]  }
  0x1d   : > { %v11130_v33 = vsel %vm8952_vm1, 4294967295, %v11129_v33  ;;  %v425_v34 = vand.u32 4294901760, %v8921_v20  ;;  %v437_v35 = vand.u32 4294901760, %v8923_v21  ;;  %v8958_v36 = vsub.f32 %v869_v8, %v874_v12  ;;  %v9033_v8 = vld [vmem:[%s10947_s4 + $0x88] sm:$0xff]  ;;  %s10901_s13 = scalar_lea.hbm %s10948_s5, %s6439_s7  ;;  %s8743_s16 = sshll.u32 %s8804_s22, 4  ;;  %s8744_s16 = int_to_ptr.vmem [resolvable:$false] %s8743_s16 }
  0x1e   : > { %11131 = vst [vmem:[#allocation6_spill] sm:$0xff] %v11130_v33  ;;  %7610 = vmatpush1.bf16.msra.mxu1 %v8940_v30  ;;  %v421_v37 = vand.u32 4294901760, %v420_v31  ;;  %v305_v39 = vadd.s32 8, %v8935_v27  ;;  %v8962_v40 = vsub.f32 %v866_v13, %v872_v23  ;;  %v433_v41 = vand.u32 4294901760, %v432_v32  ;;  %v9043_v23 = vld [vmem:[%s10947_s4] sm:$0xff]  ;;  %s8745_s17 = scalar_lea.vmem %s8744_s16, 256 }
  0x1f   : > { %v8966_v42 = vsel %vm8952_vm1, %v299_v38, 0.0  ;;  %v426_v43 = vsub.f32 %v8921_v20, %v425_v34  ;;  %v438_v46 = vsub.f32 %v8923_v21, %v437_v35  ;;  %v11133_v47 = vmov 0 }
  0x20   : > { %11132 = vst [vmem:[#allocation7_spill] sm:$0xff] %v8966_v42  ;;  %v321_v45 = vsel %vm319_vm0, %v8966_v42, 0  ;;  %vm8976_vm2 = vcmp.lt.s32.totalorder %v305_v39, %v306_v28  ;;  %v963_v48 = vand.u32 4294901760, %v8938_v29  ;;  %v8981_v49 = vsub.f32 %v868_v14, %v876_v24  ;;  %v9048_v24 = vld [vmem:[%s10947_s4 + $0x8] sm:$0xff]  ;;  %v295_v28 = vld [vmem:[%s9018_s15] sm:$0xff] }
  0x21   : > { %v11134_v47 = vsel %vm8976_vm2, 4294967295, %v11133_v47  ;;  %v7587_v50 = vpack.c.bf16 %v433_v41, %v421_v37  ;;  %v8983_v51 = vand.u32 4294901760, %v321_v45  ;;  %v8987_v52 = vsel %vm8976_vm2, %v300_v44, 0.0 }
  0x22   : > { %11135 = vst [vmem:[#allocation8_spill] sm:$0xff] %v11134_v47  ;;  %11136 = vst [vmem:[#allocation9_spill] sm:$0xff] %v8987_v52  ;;  %v964_v53 = vsub.f32 %v8938_v29, %v963_v48  ;;  %v975_v54 = vand.u32 4294901760, %v8958_v36  ;;  %v427_v56 = vand.u32 4294901760, %v426_v43  ;;  %v324_v57 = vsel %vm319_vm0, %v8987_v52, 0 }
  0x23   : > { %7588 = vmatprep.subr.bf16.mxu0 %v7587_v50  ;;  %v8994_v55 = vsub.f32 %v321_v45, %v8983_v51  ;;  %v969_v58 = vand.u32 4294901760, %v8962_v40  ;;  %v439_v59 = vand.u32 4294901760, %v438_v46  ;;  %v9000_v60 = vand.u32 4294901760, %v324_v57  ;;  %v1536_v45 = vld [vmem:[%s10947_s4 + $0x90] sm:$0xff]  ;;  %v1537_v46 = vld [vmem:[%s10947_s4 + $0x98] sm:$0xff] }
  0x24   : > { %v965_v61 = vand.u32 4294901760, %v964_v53  ;;  %v976_v62 = vsub.f32 %v8958_v36, %v975_v54  ;;  %v981_v1 = vand.u32 4294901760, %v8981_v49  ;;  %v7591_v15 = vpack.c.bf16 %v8915_v18, %v8913_v17  ;;  %v9135_v17 = vld [vmem:[%s10947_s4 + $0x20] sm:$0xff] }
  0x25   : > { %v9006_v63 = vand.u32 4294901760, %v8994_v55  ;;  %v970_v0 = vsub.f32 %v8962_v40, %v969_v58  ;;  %v9013_v2 = vsub.f32 %v324_v57, %v9000_v60  ;;  %v7589_v10 = vpack.c.bf16 %v439_v59, %v427_v56  ;;  %v9080_v57 = vld [vmem:[%s10947_s4 + $0x10] sm:$0xff] }
  0x26   : > { %v977_v3 = vand.u32 4294901760, %v976_v62  ;;  %v982_v6 = vsub.f32 %v8981_v49, %v981_v1  ;;  %v7615_v32 = vpack.c.bf16 %v8958_v36, %v8938_v29  ;;  %v1603_v37 = vand.u32 4294901760, %v9028_v7  ;;  %v9085_v62 = vld [vmem:[%s10947_s4 + $0x18] sm:$0xff] }
  0x27   : > { %v398_v4 = vsub.f32 %v8994_v55, %v9006_v63  ;;  %v971_v5 = vand.u32 4294901760, %v970_v0  ;;  %v9036_v11 = vand.u32 4294901760, %v9013_v2  ;;  %v1606_v38 = vand.u32 4294901760, %v9033_v8 }
  0x28   : > { %v7611_v12 = vpack.c.bf16 %v977_v3, %v965_v61  ;;  %v983_v14 = vand.u32 4294901760, %v982_v6  ;;  %v1555_v43 = vand.u32 4294901760, %v9043_v23  ;;  %v1558_v44 = vand.u32 4294901760, %v9048_v24  ;;  %v9101_v6 = vld [vmem:[%s10947_s4 + $0xa0] sm:$0xff] }
  0x29   : > { %v399_v13 = vand.u32 4294901760, %v398_v4  ;;  %v409_v31 = vsub.f32 %v9013_v2, %v9036_v11  ;;  %v9068_v50 = vsel %vm8952_vm1, %v295_v28, 0.0  ;;  %v9072_v53 = vsub.f32 %v9028_v7, %v1603_v37 }
  0x2a   : > { %7612 = vmatprep.subr.bf16.mxu1 %v7611_v12  ;;  %v7613_v39 = vpack.c.bf16 %v983_v14, %v971_v5  ;;  %11137 = vst [vmem:[#allocation10_spill] sm:$0xff] %v9068_v50  ;;  %v9075_v56 = vsub.f32 %v9033_v8, %v1606_v38  ;;  %v1609_v59 = vand.u32 4294901760, %v1536_v45  ;;  %v1612_v61 = vand.u32 4294901760, %v1537_v46 }
  0x2b   : > { %400 = vmatmul.mubr.f32.vlgmr.msra.gmra.mrb[0].mxu0 %v399_v13  ;;  %944 = vmatmul.mubr.f32.vlgmr.msra.gmra.mrb[0].mxu1 %v399_v13  ;;  %v410_v41 = vand.u32 4294901760, %v409_v31  ;;  %v1410_v0 = vand.u32 2147483647, %v9068_v50  ;;  %v7593_v3 = vpack.c.bf16 %v8923_v21, %v8921_v20  ;;  %v9093_v4 = vsub.f32 %v9043_v23, %v1555_v43  ;;  %v9111_v13 = vld [vmem:[%s10947_s4 + $0xa8] sm:$0xff] }
  0x2c   : > { %7590 = vmatpush1.bf16.msra.mxu0 %v7589_v10  ;;  %405 = vmatprep.mubr.f32.mxu0 %v10964_v9  ;;  %v9096_v5 = vsub.f32 %v9048_v24, %v1558_v44  ;;  %v7617_v7 = vpack.c.bf16 %v8981_v49, %v8962_v40  ;;  %v10952_v8 = vand.u32 4294901760, %v9072_v53  ;;  %v10951_v10 = vand.u32 4294901760, %v9075_v56 }
  0x2d   : > { %949 = vmatprep.mubr.f32.mxu1 %v10964_v9  ;;  %7614 = vmatpush1.bf16.msra.mxu1 %v7613_v39  ;;  %v1561_v12 = vand.u32 4294901760, %v9080_v57  ;;  %v9117_v14 = vpack.c.bf16 %v431_v26, %v419_v25  ;;  %v9129_v23 = vpack.c.bf16 %v975_v54, %v963_v48  ;;  %v1564_v24 = vand.u32 4294901760, %v9085_v62  ;;  %v9153_v26 = vld [vmem:[%s10947_s4 + $0x28] sm:$0xff] }
  0x2e   : > { %7592 = vmatprep.subr.bf16.mxu0 %v7591_v15  ;;  %7616 = vmatprep.subr.bf16.mxu1 %v7615_v32  ;;  %v9123_v15 = vpack.c.bf16 %v437_v35, %v425_v34  ;;  %v9143_v18 = vpack.c.bf16 %v981_v1, %v969_v58  ;;  %v9145_v20 = vsub.f32 %v1536_v45, %v1609_v59  ;;  %v10958_v25 = vand.u32 4294901760, %v9101_v6 }
  0x2f   : > { %411 = vmatmul.mubr.f32.gmra.mrb[2].mxu0 %v410_v41  ;;  %955 = vmatmul.mubr.f32.gmra.mrb[2].mxu1 %v410_v41  ;;  %v9147_v21 = vsub.f32 %v1537_v46, %v1612_v61  ;;  %v9156_v29 = vpack.c.bf16 %v1606_v38, %v1603_v37  ;;  %v10950_v34 = vand.u32 4294901760, %v9093_v4  ;;  %v10949_v35 = vand.u32 4294901760, %v9096_v5  ;;  %v9199_v41 = vld [vmem:[%s10947_s4 + $0xb0] sm:$0xff] }
  0x30   : > { %501 = vmatprep.mubr.f32.mxu0 %v10964_v9  ;;  %1045 = vmatprep.mubr.f32.mxu1 %v10964_v9  ;;  %v10955_v36 = vand.u32 4294901760, %v9111_v13  ;;  %v1797_v40 = vsub.f32 %v9072_v53, %v10952_v8  ;;  %v1804_v48 = vsub.f32 %v9075_v56, %v10951_v10  ;;  %v9169_v49 = vsub.f32 %v9080_v57, %v1561_v12 }
  0x31   : > { %11138 = vst [vmem:[#allocation11_spill] sm:$0xff] %v9156_v29  ;;  %v10954_v54 = vand.u32 4294901760, %v9135_v17  ;;  %v9174_v58 = vpack.c.bf16 %v1558_v44, %v1555_v43  ;;  %v9176_v1 = vpack.c.bf16 %v1612_v61, %v1609_v59  ;;  %v9179_v28 = vsub.f32 %v9085_v62, %v1564_v24  ;;  %v9204_v43 = vld [vmem:[%s10947_s4 + $0xb8] sm:$0xff] }
  0x32   : > { %v10953_v31 = vand.u32 4294901760, %v9153_v26  ;;  %v10957_v32 = vand.u32 4294901760, %v9145_v20  ;;  %v10956_v37 = vand.u32 4294901760, %v9147_v21  ;;  %v9189_v38 = vsub.f32 %v9101_v6, %v10958_v25 }
  0x33   : > { %503 = vmatmul.mubr.f32.vlgmr.msra.gmra.mrb[0].mxu0 %v8983_v51  ;;  %1047 = vmatmul.mubr.f32.vlgmr.msra.gmra.mrb[0].mxu1 %v8983_v51  ;;  %11139 = vst [vmem:[#allocation12_spill] sm:$0xff] %v9174_v58  ;;  %11140 = vst [vmem:[#allocation13_spill] sm:$0xff] %v9176_v1  ;;  %v9194_v39 = vsub.f32 %v9111_v13, %v10955_v36  ;;  %v1414_v44 = vsub.f32 0.0, %v1410_v0  ;;  %v1685_v45 = vsub.f32 %v9093_v4, %v10950_v34 }
  0x34   : > { %7594 = vmatpush1.bf16.msra.mxu0 %v7593_v3  ;;  %508 = vmatprep.mubr.f32.mxu0 %v10964_v9  ;;  %v1692_v46 = vsub.f32 %v9096_v5, %v10949_v35  ;;  %v9217_v57 = vsub.f32 %v9135_v17, %v10954_v54  ;;  %v1798_v59 = vand.u32 4294901760, %v1797_v40  ;;  %v1805_v61 = vand.u32 4294901760, %v1804_v48  ;;  %v9228_v3 = vld [vmem:[%s10947_s4 + $0x30] sm:$0xff] }
  0x35   : > { %1052 = vmatprep.mubr.f32.mxu1 %v10964_v9  ;;  %7618 = vmatpush1.bf16.msra.mxu1 %v7617_v7  ;;  %v10960_v62 = vand.u32 4294901760, %v9169_v49  ;;  %v9223_v0 = vsub.f32 %v9153_v26, %v10953_v31  ;;  %v9233_v7 = vld [vmem:[%s10947_s4 + $0x38] sm:$0xff]  ;;  %v9235_v35 = vpack.c.bf16 %v1564_v24, %v1561_v12  ;;  %v10959_v40 = vand.u32 4294901760, %v9179_v28 }
  0x36   : > { %7596 = vmatprep.subr.bf16.mxu0 %v8911_v16  ;;  %7620 = vmatprep.subr.bf16.mxu1 %v8925_v22  ;;  %11141 = vst [vmem:[#allocation14_spill] sm:$0xff] %v9217_v57  ;;  %v10962_v48 = vand.u32 4294901760, %v9199_v41  ;;  %v10961_v34 = vand.u32 4294901760, %v9204_v43  ;;  %v1811_v10 = vsub.f32 %v9145_v20, %v10957_v32  ;;  %v1818_v8 = vsub.f32 %v9147_v21, %v10956_v37 }
  0x37   : > { %510 = vmatmul.mubr.f32.gmra.mrb[2].mxu0 %v9000_v60  ;;  %1054 = vmatmul.mubr.f32.gmra.mrb[2].mxu1 %v9000_v60  ;;  %11142 = vst [vmem:[#allocation15_spill] sm:$0xff] %v9223_v0  ;;  %11143 = vst [vmem:[#allocation16_spill] sm:$0xff] %v9235_v35  ;;  %v10963_v12 = vand.u32 4294901760, %v9189_v38  ;;  %v1686_v31 = vand.u32 4294901760, %v1685_v45  ;;  %v10966_v54 = vand.u32 4294901760, %v9217_v57  ;;  %v1576_v36 = vand.u32 4294901760, %v9233_v7 }
  0x38   : > { %588 = vmatprep.mubr.f32.mxu0 %v10964_v9  ;;  %1132 = vmatprep.mubr.f32.mxu1 %v10964_v9  ;;  %v9257_v37 = vpack.c.bf16 %v1805_v61, %v1798_v59  ;;  %v1693_v32 = vand.u32 4294901760, %v1692_v46  ;;  %v1699_v25 = vsub.f32 %v9169_v49, %v10960_v62  ;;  %v1706_v45 = vsub.f32 %v9179_v28, %v10959_v40 }
  0x39   : > { %v9271_v59 = vsub.f32 %v9199_v41, %v10962_v48  ;;  %v9276_v46 = vsub.f32 %v9204_v43, %v10961_v34  ;;  %v1819_v61 = vand.u32 4294901760, %v1818_v8  ;;  %v1825_v40 = vsub.f32 %v9189_v38, %v10963_v12 }
  0x3a   : > { %11144 = vst [vmem:[#allocation17_spill] sm:$0xff] %v9257_v37  ;;  %v11145_v62 = vand.u32 4294901760, %v9194_v39  ;;  %v1418_v48 = vmul.f32 1.442695, %v1414_v44  ;;  %v1713_v24 = vsub.f32 %v9217_v57, %v10966_v54  ;;  %v9302_v8 = vsub.f32 %v9233_v7, %v1576_v36 }
  0x3b   : > { %591 = vmatmul.mubr.f32.vlgmr.msra.gmra.mrb[0].mxu0 %v8994_v55  ;;  %1135 = vmatmul.mubr.f32.vlgmr.msra.gmra.mrb[0].mxu1 %v8994_v55  ;;  %v10967_v55 = vand.u32 4294901760, %v9228_v3  ;;  %v9307_v44 = vpack.c.bf16 %v1693_v32, %v1686_v31  ;;  %v11150_v12 = vand.u32 4294901760, %v9111_v13  ;;  %v11152_v54 = vand.u32 4294901760, %v9223_v0  ;;  %v9329_v13 = vld [vmem:[%s10947_s4 + $0x48] sm:$0xff] }
  0x3c   : > { %7598 = vmatpush1.bf16.msra.mxu0 %v8919_v19  ;;  %596 = vmatprep.mubr.f32.mxu0 %v10964_v9  ;;  %v1832_v34 = vsub.f32 %v9194_v39, %v11145_v62  ;;  %11147 = vst [vmem:[#allocation19_spill] sm:$0xff] %v9302_v8  ;;  %v11149_v62 = vand.u32 4294901760, %v9101_v6  ;;  %v1700_v7 = vand.u32 4294901760, %v1699_v25  ;;  %v1707_v52 = vand.u32 4294901760, %v1706_v45  ;;  %v9324_v6 = vld [vmem:[%s10947_s4 + $0x40] sm:$0xff] }
  0x3d   : > { %1140 = vmatprep.mubr.f32.mxu1 %v10964_v9  ;;  %7622 = vmatpush1.bf16.msra.mxu1 %v8940_v30  ;;  %11148 = vst [vmem:[#allocation20_spill] sm:$0xff] %v9307_v44  ;;  %v11155_v31 = vand.u32 4294901760, %v9153_v26  ;;  %v1714_v42 = vand.u32 4294901760, %v1713_v24  ;;  %v1579_v26 = vand.u32 4294901760, %v9324_v6  ;;  %8675 = vpow2.f32 %v1418_v48  ;;  %v9404_v48 = vld [vmem:[%s10947_s4 + $0x58] sm:$0xff] }
  0x3e   : > { %7600 = vmatprep.subr.bf16.mxu0 %v9117_v14  ;;  %7624 = vmatprep.subr.bf16.mxu1 %v9129_v23  ;;  %v9281_v14 = vld [vmem:[%s10947_s4 + $0xc0] sm:$0xff]  ;;  %v1812_v23 = vand.u32 4294901760, %v1811_v10  ;;  %v1543_v10 = vld [vmem:[%s10947_s4 + $0xc8] sm:$0xff]  ;;  %v1833_v57 = vand.u32 4294901760, %v1832_v34  ;;  %v11159_v34 = vand.u32 4294901760, %v9271_v59  ;;  %vm1498_vm3 = vcmp.ge.f32.partialorder %v9068_v50, 0.0 }
  0x3f   : > { %599 = vmatmul.mubr.f32.gmra.mrb[2].mxu0 %v9013_v2  ;;  %1143 = vmatmul.mubr.f32.gmra.mrb[2].mxu1 %v9013_v2  ;;  %v9299_v2 = vsub.f32 %v9228_v3, %v10967_v55  ;;  %v1720_v55 = vsub.f32 %v9223_v0, %v11152_v54  ;;  %v1627_v27 = vand.u32 4294901760, %v9281_v14  ;;  %v11154_v54 = vand.u32 4294901760, %v9135_v17 }
  0x40   : > { %673 = vmatprep.mubr.f32.mxu0 %v10964_v9  ;;  %1217 = vmatprep.mubr.f32.mxu1 %v10964_v9  ;;  %v9313_v9 = vpack.c.bf16 %v11150_v12, %v11149_v62  ;;  %v9333_v25 = vpack.c.bf16 %v1819_v61, %v1812_v23  ;;  %v1826_v12 = vand.u32 4294901760, %v1825_v40  ;;  %v1630_v45 = vand.u32 4294901760, %v1543_v10 }
  0x41   : > { %11146 = vst [vmem:[#allocation18_spill] sm:$0xff] %v9299_v2  ;;  %v9339_v32 = vpack.c.bf16 %v11155_v31, %v11154_v54  ;;  %v11156_v62 = vmov 0.0   ;;  %v10979_v0 = vand.u32 4294901760, %v9299_v2  ;;  %v1721_v17 = vand.u32 4294901760, %v1720_v55  ;;  %v9379_v54 = vld [vmem:[%s10947_s4 + $0xd0] sm:$0xff] }
  0x42   : > { %11151 = vst [vmem:[#allocation21_spill] sm:$0xff] %v9313_v9  ;;  %11153 = vst [vmem:[#allocation22_spill] sm:$0xff] %v9333_v25  ;;  %v1582_v40 = vand.u32 4294901760, %v9329_v13  ;;  %v9350_v23 = vsub.f32 %v9281_v14, %v1627_v27  ;;  %v1839_v24 = vsub.f32 %v9271_v59, %v11159_v34  ;;  %v11161_v14 = vand.u32 4294901760, %v9199_v41  ;;  %v9418_v34 = vld [vmem:[%s10947_s4 + $0xe0] sm:$0xff] }
  0x43   : > { %677 = vmatmul.mubr.f32.vlgmr.msra.gmra.mrb[0].mxu0 %v9006_v63  ;;  %1221 = vmatmul.mubr.f32.vlgmr.msra.gmra.mrb[0].mxu1 %v9006_v63  ;;  %v10978_v63 = vand.u32 4294901760, %v9302_v8  ;;  %v9388_v41 = vpack.c.bf16 %v1833_v57, %v1826_v12  ;;  %v9406_v57 = vpack.c.bf16 %v1721_v17, %v1714_v42  ;;  %v9410_v31 = vsub.f32 %v9324_v6, %v1579_v26 }
  0x44   : > { %7602 = vmatpush1.bf16.msra.mxu0 %v9123_v15  ;;  %682 = vmatprep.mubr.f32.mxu0 %v11156_v62  ;;  %11157 = vst [vmem:[#allocation23_spill] sm:$0xff] %v9350_v23  ;;  %v9354_v15 = vpack.c.bf16 %v1707_v52, %v1700_v7  ;;  %v9374_v7 = vsub.f32 %v1543_v10, %v1630_v45  ;;  %v1840_v42 = vand.u32 4294901760, %v1839_v24  ;;  %v9491_v10 = vld [vmem:[%s10947_s4 + $0xf8] sm:$0xff]  ;;  %v11226_v47 = vand.u32 4294901760, %v9179_v28 }
  0x45   : > { %1226 = vmatprep.mubr.f32.mxu1 %v11156_v62  ;;  %7626 = vmatpush1.bf16.msra.mxu1 %v9143_v18  ;;  %v11160_v18 = vand.u32 4294901760, %v9276_v46  ;;  %11165 = vst [vmem:[#allocation26_spill] sm:$0xff] %v9388_v41  ;;  %11166 = vst [vmem:[#allocation27_spill] sm:$0xff] %v9406_v57  ;;  %v9413_v12 = vsub.f32 %v9329_v13, %v1582_v40  ;;  %v9429_v13 = vpack.c.bf16 %v1630_v45, %v1627_v27  ;;  %v9441_v27 = vld [vmem:[%s10947_s4 + $0x60] sm:$0xff] }
  0x46   : > { %7604 = vmatprep.subr.bf16.mxu0 %v8911_v16  ;;  %7628 = vmatprep.subr.bf16.mxu1 %v8925_v22  ;;  %11158 = vst [vmem:[#allocation24_spill] sm:$0xff] %v9354_v15  ;;  %v11162_v16 = vand.u32 4294901760, %v9204_v43  ;;  %v11163_v22 = vand.u32 4294901760, %v9228_v3  ;;  %11164 = vst [vmem:[#allocation25_spill] sm:$0xff] %v9374_v7  ;;  %v1734_v43 = vsub.f32 %v9302_v8, %v10978_v63  ;;  %v9399_v3 = vld [vmem:[%s10947_s4 + $0x50] sm:$0xff]  ;;  %v1588_v63 = vand.u32 4294901760, %v9404_v48 }
  0x47   : > { %v1846_v55 = vsub.f32 %v9276_v46, %v11160_v18  ;;  %686 = vmatmul.mubr.f32.gmra.mrb[2].mxu0 %v9036_v11  ;;  %1230 = vmatmul.mubr.f32.gmra.mrb[2].mxu1 %v9036_v11  ;;  %v9384_v11 = vld [vmem:[%s10947_s4 + $0xd8] sm:$0xff]  ;;  %11167 = vst [vmem:[#allocation28_spill] sm:$0xff] %v9413_v12  ;;  %v9423_v18 = vld [vmem:[%s10947_s4 + $0xe8] sm:$0xff]  ;;  %v9445_v45 = vpack.c.bf16 %v1582_v40, %v1579_v26  ;;  %11173 = vst [vmem:[#allocation33_spill] sm:$0xff] %v9491_v10 }
  0x48   : > { %v9368_v61 = vpack.c.bf16 %v11162_v16, %v11161_v14  ;;  %v9372_v52 = vpack.c.bf16 %v1576_v36, %v11163_v22  ;;  %768 = vmatprep.mubr.f32.mxu0 %v11156_v62  ;;  %1312 = vmatprep.mubr.f32.mxu1 %v11156_v62  ;;  %v1727_v36 = vsub.f32 %v9299_v2, %v10979_v0  ;;  %v1633_v14 = vand.u32 4294901760, %v9379_v54  ;;  %v9457_v0 = vld [vmem:[%s10947_s4 + $0x68] sm:$0xff] }
  0x49   : > { %v1847_v17 = vand.u32 4294901760, %v1846_v55  ;;  %v1636_v6 = vand.u32 4294901760, %v9384_v11  ;;  %v10980_v16 = vand.u32 4294901760, %v9374_v7  ;;  %v1585_v22 = vand.u32 4294901760, %v9399_v3 }
  0x4a   : > { %v1728_v24 = vand.u32 4294901760, %v1727_v36  ;;  %v1735_v55 = vand.u32 4294901760, %v1734_v43  ;;  %v9464_v26 = vsub.f32 %v9379_v54, %v1633_v14 }
  0x4b   : > { %770 = vmatmul.mubr.f32.vlgmr.msra.gmra.mrb[0].mxu0 %v8983_v51  ;;  %1314 = vmatmul.mubr.f32.vlgmr.msra.gmra.mrb[0].mxu1 %v8983_v51  ;;  %v9467_v40 = vsub.f32 %v9384_v11, %v1636_v6  ;;  %v9482_v54 = vsub.f32 %v9399_v3, %v1585_v22  ;;  %v9485_v11 = vsub.f32 %v9404_v48, %v1588_v63  ;;  %v11175_v3 = vand.u32 4294901760, %v9418_v34 }
  0x4c   : > { %7606 = vmatpush1.bf16.msra.mxu0 %v8919_v19  ;;  %775 = vmatprep.mubr.f32.mxu0 %v11156_v62  ;;  %v11168_v19 = vand.u32 4294901760, %v9350_v23  ;;  %v9495_v43 = vpack.c.bf16 %v1735_v55, %v1728_v24  ;;  %v11180_v24 = vand.u32 4294901760, %v9413_v12  ;;  %v9522_v8 = vpack.c.bf16 %v1636_v6, %v1633_v14 }
  0x4d   : > { %1319 = vmatprep.mubr.f32.mxu1 %v11156_v62  ;;  %7630 = vmatpush1.bf16.msra.mxu1 %v8940_v30  ;;  %v9461_v30 = vpack.c.bf16 %v1847_v17, %v1840_v42  ;;  %11170 = vst [vmem:[#allocation30_spill] sm:$0xff] %v9467_v40  ;;  %v9479_v42 = vsub.f32 %v9374_v7, %v10980_v16  ;;  %11172 = vst [vmem:[#allocation32_spill] sm:$0xff] %v9485_v11  ;;  %v11177_v17 = vand.u32 4294901760, %v9423_v18  ;;  %v9520_v16 = vpop.eup %8675 }
  0x4e   : > { %v9450_v36 = vsub.f32 %v9350_v23, %v11168_v19  ;;  %7632 = vmatprep.subr.bf16.mxu0 %v9156_v29  ;;  %7664 = vmatprep.subr.bf16.mxu1 %v9257_v37  ;;  %v9472_v19 = vld [vmem:[%s10947_s4 + $0xf0] sm:$0xff]  ;;  %11174 = vst [vmem:[#allocation34_spill] sm:$0xff] %v9495_v43  ;;  %v9501_v48 = vsub.f32 %v9418_v34, %v11175_v3  ;;  %v11179_v7 = vand.u32 4294901760, %v9410_v31  ;;  %11181 = vst [vmem:[#allocation37_spill] sm:$0xff] %v9520_v16  ;;  %v296_v3 = vld [vmem:[%s9018_s15 + $0x8] sm:$0xff] }
  0x4f   : > { %11169 = vst [vmem:[#allocation29_spill] sm:$0xff] %v9461_v30  ;;  %11171 = vst [vmem:[#allocation31_spill] sm:$0xff] %v9472_v19  ;;  %777 = vmatmul.mubr.f32.gmra.mrb[2].mxu0 %v9000_v60  ;;  %1321 = vmatmul.mubr.f32.gmra.mrb[2].mxu1 %v9000_v60  ;;  %v9506_v37 = vsub.f32 %v9423_v18, %v11177_v17  ;;  %v9517_v55 = vsub.f32 %v9413_v12, %v11180_v24  ;;  %v9535_v24 = vld [vmem:[%s10947_s4 + $0x78] sm:$0xff]  ;;  %v1861_v14 = vand.u32 4294901760, %v9479_v42 }
  0x50   : > { %851 = vmatprep.mubr.f32.mxu0 %v11156_v62  ;;  %1395 = vmatprep.mubr.f32.mxu1 %v11156_v62  ;;  %11176 = vst [vmem:[#allocation35_spill] sm:$0xff] %v9501_v48  ;;  %v1854_v29 = vand.u32 4294901760, %v9450_v36  ;;  %v9512_v23 = vsub.f32 %v9410_v31, %v11179_v7  ;;  %11182 = vst [vmem:[#allocation38_spill] sm:$0xff] %v9522_v8  ;;  %v9530_v7 = vld [vmem:[%s10947_s4 + $0x70] sm:$0xff]  ;;  %v11185_v36 = vand.u32 4294901760, %v9441_v27  ;;  %v11186_v42 = vand.u32 4294901760, %v9457_v0 }
  0x51   : > { %11178 = vst [vmem:[#allocation36_spill] sm:$0xff] %v9506_v37  ;;  %11183 = vst [vmem:[#allocation39_spill] sm:$0xff] %v9530_v7  ;;  %v11187_v2 = vand.u32 4294901760, %v9472_v19  ;;  %v11192_v8 = vand.u32 4294901760, %v9482_v54 }
  0x52   : > { %11184 = vst [vmem:[#allocation40_spill] sm:$0xff] %v9535_v24  ;;  %v9545_v17 = vsub.f32 %v9441_v27, %v11185_v36  ;;  %v9555_v6 = vsub.f32 %v9457_v0, %v11186_v42  ;;  %v1742_v36 = vand.u32 4294901760, %v9512_v23  ;;  %v1749_v42 = vand.u32 4294901760, %v9517_v55 }
  0x53   : > { %853 = vmatmul.mubr.f32.vlgmr.msra.gmra.mrb[0].mxu0 %v8983_v51  ;;  %1397 = vmatmul.mubr.f32.vlgmr.msra.gmra.mrb[0].mxu1 %v8983_v51  ;;  %v9560_v12 = vsub.f32 %v9472_v19, %v11187_v2  ;;  %v11189_v2 = vand.u32 4294901760, %v9464_v26  ;;  %v1755_v55 = vsub.f32 %v9482_v54, %v11192_v8  ;;  %v11193_v51 = vand.u32 4294901760, %v9485_v11 }
  0x54   : > { %858 = vmatprep.mubr.f32.mxu0 %v11156_v62  ;;  %1402 = vmatprep.mubr.f32.mxu1 %v11156_v62  ;;  %v9565_v62 = vpack.c.bf16 %v1588_v63, %v1585_v22  ;;  %v11191_v63 = vand.u32 4294901760, %v9491_v10  ;;  %v9618_v8 = vadd.f32 1.0, %v9520_v16 }
  0x55   : > { %7634 = vmatpush3.bf16.msra.mxu0 %v9174_v58  ;;  %7666 = vmatpush3.bf16.msra.mxu1 %v9307_v44  ;;  %v1867_v58 = vsub.f32 %v9464_v26, %v11189_v2  ;;  %v11190_v44 = vand.u32 4294901760, %v9467_v40  ;;  %v1762_v2 = vsub.f32 %v9485_v11, %v11193_v51 }
  0x56   : > { %11188 = vst [vmem:[#allocation41_spill] sm:$0xff] %v9565_v62  ;;  %7636 = vmatprep.subr.bf16.mxu0 %v9176_v1  ;;  %7668 = vmatprep.subr.bf16.mxu1 %v9333_v25  ;;  %v9581_v22 = vsub.f32 %v9491_v10, %v11191_v63  ;;  %v11195_v63 = vand.u32 4294901760, %v9501_v48  ;;  %11201 = vst [vmem:[#allocation45_spill] sm:$0xff] %v9618_v8  ;;  %v9622_v10 = vpack.c.bf16 %v1861_v14, %v1854_v29 }
  0x57   : > { %v1874_v23 = vsub.f32 %v9467_v40, %v11190_v44  ;;  %860 = vmatmul.mubr.f32.gmra.mrb[2].mxu0 %v9000_v60  ;;  %1404 = vmatmul.mubr.f32.gmra.mrb[2].mxu1 %v9000_v60  ;;  %v9594_v44 = vsel %vm8952_vm1, %v296_v3, 0.0  ;;  %v11196_v60 = vand.u32 4294901760, %v9506_v37  ;;  %v11197_v3 = vand.u32 4294901760, %v9530_v7 }
  0x58   : > { %11194 = vst [vmem:[#allocation42_spill] sm:$0xff] %v9594_v44  ;;  %v1881_v1 = vsub.f32 %v9501_v48, %v11195_v63  ;;  %v11199_v63 = vand.u32 4294901760, %v9535_v24  ;;  %11202 = vst [vmem:[#allocation46_spill] sm:$0xff] %v9622_v10  ;;  %v1868_v33 = vand.u32 4294901760, %v1867_v58  ;;  %v11205_v58 = vand.u32 4294901760, %v9560_v12 }
  0x59   : > { %v1888_v62 = vsub.f32 %v9506_v37, %v11196_v60  ;;  %7638 = vmatpush3.bf16.msra.mxu0 %v9235_v35  ;;  %7670 = vmatpush3.bf16.msra.mxu1 %v9354_v15  ;;  %v9609_v51 = vsub.f32 %v9530_v7, %v11197_v3  ;;  %v1411_v60 = vand.u32 2147483647, %v9594_v44  ;;  %v1875_v15 = vand.u32 4294901760, %v1874_v23  ;;  %v298_v35 = vld [vmem:[%s9018_s15 + $0x18] sm:$0xff] }
  0x5a   : > { %v9614_v25 = vsub.f32 %v9535_v24, %v11199_v63  ;;  %7640 = vmatprep.subr.bf16.mxu0 %v9313_v9  ;;  %7672 = vmatprep.subr.bf16.mxu1 %v9388_v41  ;;  %v11027_v3 = vand.u32 4294901760, %v9581_v22  ;;  %v1756_v7 = vand.u32 4294901760, %v1755_v55  ;;  %v1763_v63 = vand.u32 4294901760, %v1762_v2 }
  0x5b   : > { %11198 = vst [vmem:[#allocation43_spill] sm:$0xff] %v9609_v51  ;;  %v11203_v24 = vand.u32 4294901760, %v9545_v17  ;;  %v1415_v19 = vsub.f32 0.0, %v1411_v60  ;;  %v1882_v37 = vand.u32 4294901760, %v1881_v1  ;;  %v1889_v9 = vand.u32 4294901760, %v1888_v62  ;;  %v297_v62 = vld [vmem:[%s9018_s15 + $0x10] sm:$0xff] }
  0x5c   : > { %11200 = vst [vmem:[#allocation44_spill] sm:$0xff] %v9614_v25  ;;  %v11204_v41 = vand.u32 4294901760, %v9555_v6  ;;  %v9639_v14 = vsub.f32 %v9560_v12, %v11205_v58  ;;  %v1789_v23 = vand.u32 4294901760, %v9614_v25  ;;  %8677 = vrcp.f32 %v9618_v8  ;;  %s261_s15 = sand.u32 1, %s8793_s19  }
  0x5d   : > { %v9629_v44 = vsub.f32 %v9545_v17, %v11203_v24  ;;  %7642 = vmatpush3.bf16.msra.mxu0 %v9339_v32  ;;  %7674 = vmatpush3.bf16.msra.mxu1 %v9406_v57  ;;  %v1782_v24 = vand.u32 4294901760, %v9609_v51  ;;  %v1420_v1 = vmul.f32 1.442695, %v1415_v19  ;;  %v11207_v55 = vand.u32 4294901760, %v9418_v34  ;;  %s6421_s26 = sshll.u32 %s261_s15, 3  ;;  %s6333_s11 = scalar_lea.sflag [#allocation3], %s261_s15 }
  0x5e   : > { %v9634_v29 = vsub.f32 %v9555_v6, %v11204_v41  ;;  %7644 = vmatprep.subr.bf16.mxu0 %v9368_v61  ;;  %7676 = vmatprep.subr.bf16.mxu1 %v9461_v30  ;;  %v9649_v41 = vpack.c.bf16 %v1749_v42, %v1742_v36  ;;  %v11208_v2 = vand.u32 4294901760, %v9423_v18  ;;  %v1902_v58 = vsub.f32 %v9581_v22, %v11027_v3  ;;  %v11233_v30 = vld [vmem:[#allocation15_spill] sm:$0xff]  ;;  %s263_s8 = scalar_lea.vmem [#allocation2], %s6421_s26 }
  0x5f   : > { %v9662_v19 = vsel %vm8976_vm2, %v298_v35, 0.0  ;;  %v9664_v8 = vpack.c.bf16 %v1875_v15, %v1868_v33  ;;  %v9666_v57 = vpack.c.bf16 %v1763_v63, %v1756_v7  ;;  %v11212_v36 = vand.u32 4294901760, %v9441_v27  ;;  %s6346_s9 = sshll.u32 %s263_s8, 4  ;;  %s10903_s9 = int_to_ptr.vmem [resolvable:$true] %s6346_s9 }
  0x60   : > { %11206 = vst [vmem:[#allocation47_spill] sm:$0xff] %v9649_v41  ;;  %v9655_v60 = vpack.c.bf16 %v11208_v2, %v11207_v55  ;;  %11209 = vst [vmem:[#allocation48_spill] sm:$0xff] %v9662_v19  ;;  %v11213_v34 = vand.u32 4294901760, %v9457_v0  ;;  %8679 = vpow2.f32 %v1420_v1  ;;  %v9674_v18 = vpack.c.bf16 %v1889_v9, %v1882_v37  ;;  %s8739_s14 = scalar_lea.vmem %s10903_s9, 128  ;;  %p8746_p0 = scmp.lt.s32.totalorder %s10903_s9, %s8744_s16 }
  0x61   : > { %11210 = vst [vmem:[#allocation49_spill] sm:$0xff] %v9664_v8  ;;  %11211 = vst [vmem:[#allocation50_spill] sm:$0xff] %v9666_v57  ;;  %v1770_v55 = vand.u32 4294901760, %v9629_v44  ;;  %v1777_v2 = vand.u32 4294901760, %v9634_v29  ;;  %v1896_v35 = vand.u32 4294901760, %v9639_v14  ;;  %7646 = vmatpush3.bf16.msra.mxu0 %v9372_v52  ;;  %7678 = vmatpush3.bf16.msra.mxu1 %v9495_v43  ;;  %v1783_v33 = vsub.f32 %v9609_v51, %v1782_v24  ;;  %p8740_p11 = scmp.ne.s32.totalorder %s10903_s9, %s8739_s14  ;;  %p8747_p1 = scmp.lt.s32.totalorder %s8745_s17, %s8739_s14 }
  0x62   : > { %v9672_v42 = vpack.c.bf16 %v11213_v34, %v11212_v36  ;;  %11214 = vst [vmem:[#allocation51_spill] sm:$0xff] %v9674_v18  ;;  %v1790_v15 = vsub.f32 %v9614_v25, %v1789_v23  ;;  %v1413_v0 = vand.u32 2147483647, %v9662_v19  ;;  %v9686_v9 = vsel %vm8976_vm2, %v297_v62, 0.0  ;;  %7648 = vmatprep.subr.bf16.mxu0 %v9429_v13  ;;  %7680 = vmatprep.subr.bf16.mxu1 %v9622_v10 }
  0x63   : > { %11215 = vst [vmem:[#allocation52_spill] sm:$0xff] %v9686_v9  ;;  %v1903_v37 = vand.u32 4294901760, %v1902_v58  ;;  %v1412_v27 = vand.u32 2147483647, %v9686_v9  ;;  %v11216_v7 = vand.u32 4294901760, %v9072_v53  ;;  %v11217_v44 = vand.u32 4294901760, %v9075_v56  ;;  %p8741_p12 = pnand %p8740_p11, %p8873_p5  ;;  %p8748_p2 = por %p8747_p1, %p8746_p0 }
  0x64   : > { %v1417_v29 = vsub.f32 0.0, %v1413_v0  ;;  %v11219_v14 = vand.u32 4294901760, %v9093_v4  ;;  %v11220_v1 = vand.u32 4294901760, %v9096_v5  ;;  %v11222_v36 = vand.u32 4294901760, %v9145_v20 }
  0x65   : > { %v9696_v63 = vpack.c.bf16 %v11217_v44, %v11216_v7  ;;  %v11223_v58 = vand.u32 4294901760, %v9147_v21  ;;  %v11225_v3 = vand.u32 4294901760, %v9169_v49  ;;  %v1416_v7 = vsub.f32 0.0, %v1412_v27  ;;  %7650 = vmatpush3.bf16.msra.mxu0 %v9445_v45  ;;  %7682 = vmatpush3.bf16.msra.mxu1 %v9649_v41  ;;  %v11253_v41 = vld [vmem:[#allocation38_spill] sm:$0xff]  ;;  %p8742_p13 = pneg %p8741_p12 }
  0x66   : > { %v9702_v62 = vpack.c.bf16 %v11220_v1, %v11219_v14  ;;  %v11228_v0 = vand.u32 4294901760, %v9189_v38  ;;  %v11229_v44 = vand.u32 4294901760, %v9194_v39  ;;  %v11231_v14 = vld [vmem:[#allocation14_spill] sm:$0xff]  ;;  %7652 = vmatprep.subr.bf16.mxu0 %v11253_v41  ;;  %7684 = vmatprep.subr.bf16.mxu1 %v9664_v8  ;;  %v11260_v8 = vand.u32 4294901760, %v9501_v48 }
  0x67   : > { %11218 = vst [vmem:[#allocation53_spill] sm:$0xff] %v9696_v63  ;;  %v9708_v34 = vpack.c.bf16 %v11223_v58, %v11222_v36  ;;  %v9714_v10 = vpack.c.bf16 %v11226_v47, %v11225_v3  ;;  %v11232_v1 = vand.u32 4294901760, %v11231_v14  ;;  %v11236_v36 = vand.u32 4294901760, %v9271_v59  ;;  %v11239_v3 = vld [vmem:[#allocation18_spill] sm:$0xff]  ;;  %p8749_p3 = pnand %p8748_p2, %p8742_p13 }
  0x68   : > { %11221 = vst [vmem:[#allocation54_spill] sm:$0xff] %v9702_v62  ;;  %v9720_v43 = vpack.c.bf16 %v11229_v44, %v11228_v0  ;;  %v11234_v62 = vand.u32 4294901760, %v11233_v30  ;;  %v11237_v58 = vand.u32 4294901760, %v9276_v46  ;;  %v1424_v47 = vmul.f32 1.442695, %v1417_v29  ;;  %v11241_v0 = vld [vmem:[#allocation19_spill] sm:$0xff] }
  0x69   : > { %11224 = vst [vmem:[#allocation55_spill] sm:$0xff] %v9708_v34  ;;  %11227 = vst [vmem:[#allocation56_spill] sm:$0xff] %v9714_v10  ;;  %v11240_v27 = vand.u32 4294901760, %v11239_v3  ;;  %v11242_v44 = vand.u32 4294901760, %v11241_v0  ;;  %v11244_v10 = vld [vmem:[#allocation23_spill] sm:$0xff]  ;;  %v1502_v29 = vsel %vm1498_vm3, 1.0, %v9520_v16  ;;  %7686 = vmatpush3.bf16.msra.mxu1 %v9666_v57 }
  0x6a   : > { %11230 = vst [vmem:[#allocation57_spill] sm:$0xff] %v9720_v43  ;;  %v9726_v63 = vpack.c.bf16 %v11234_v62, %v11232_v1  ;;  %v9732_v34 = vpack.c.bf16 %v11237_v58, %v11236_v36  ;;  %v11245_v62 = vand.u32 4294901760, %v11244_v10  ;;  %v11246_v1 = vld [vmem:[#allocation25_spill] sm:$0xff]  ;;  %v11249_v36 = vand.u32 4294901760, %v9410_v31  ;;  %v11250_v58 = vld [vmem:[#allocation28_spill] sm:$0xff]  ;;  %7688 = vmatprep.subr.bf16.mxu1 %v9674_v18 }
  0x6b   : > { %v9740_v43 = vpack.c.bf16 %v11242_v44, %v11240_v27  ;;  %v1422_v27 = vmul.f32 1.442695, %v1416_v7  ;;  %v11254_v44 = vand.u32 4294901760, %v9464_v26  ;;  %8681 = vpow2.f32 %v1424_v47  ;;  %v11293_v18 = vld [vmem:[#allocation13_spill] sm:$0xff] }
  0x6c   : > { %11235 = vst [vmem:[#allocation14_spill] sm:$0xff] %v9726_v63  ;;  %11238 = vst [vmem:[#allocation15_spill] sm:$0xff] %v9732_v34  ;;  %v11247_v63 = vand.u32 4294901760, %v11246_v1  ;;  %v11251_v34 = vand.u32 4294901760, %v11250_v58  ;;  %v11264_v7 = vand.u32 4294901760, %v9545_v17  ;;  %vm1501_vm6 = vcmp.ge.f32.partialorder %v9662_v19, 0.0 }
  0x6d   : > { %11243 = vst [vmem:[#allocation18_spill] sm:$0xff] %v9740_v43  ;;  %v11261_v43 = vld [vmem:[#allocation36_spill] sm:$0xff]  ;;  %8683 = vpow2.f32 %v1422_v27  ;;  %vm1500_vm7 = vcmp.ge.f32.partialorder %v9686_v9, 0.0 }
  0x6e   : > { %v9746_v25 = vpack.c.bf16 %v11247_v63, %v11245_v62  ;;  %v9752_v51 = vpack.c.bf16 %v11251_v34, %v11249_v36  ;;  %v11255_v63 = vand.u32 4294901760, %v9467_v40  ;;  %v11258_v34 = vand.u32 4294901760, %v9485_v11  ;;  %v11291_v9 = vld [vmem:[#allocation12_spill] sm:$0xff] }
  0x6f   : > { %v11262_v50 = vand.u32 4294901760, %v11261_v43  ;;  %v11265_v40 = vand.u32 4294901760, %v9555_v6 }
  0x70   : > { %11248 = vst [vmem:[#allocation19_spill] sm:$0xff] %v9746_v25  ;;  %11252 = vst [vmem:[#allocation23_spill] sm:$0xff] %v9752_v51  ;;  %v9763_v62 = vpack.c.bf16 %v11255_v63, %v11254_v44  ;;  %v11257_v25 = vand.u32 4294901760, %v9482_v54  ;;  %v8678_v51 = vpop.eup %8677  ;;  %v11267_v63 = vand.u32 4294901760, %v9560_v12 }
  0x71   : > { %v9775_v16 = vpack.c.bf16 %v11262_v50, %v11260_v8  ;;  %v9781_v44 = vpack.c.bf16 %v11265_v40, %v11264_v7  ;;  %v9795_v50 = vpack.c.bf16 %v1789_v23, %v1782_v24  ;;  %v11275_v8 = vld [vmem:[#allocation7_spill] sm:$0xff]  ;;  %v11276_v40 = vld [vmem:[#allocation41_spill] sm:$0xff]  ;;  %v9802_v7 = vpack.c.bf16 %v1777_v2, %v1770_v55 }
  0x72   : > { %11256 = vst [vmem:[#allocation25_spill] sm:$0xff] %v9763_v62  ;;  %v9769_v36 = vpack.c.bf16 %v11258_v34, %v11257_v25  ;;  %v11268_v62 = vand.u32 4294901760, %v9581_v22  ;;  %v11270_v34 = vld [vmem:[#allocation31_spill] sm:$0xff]  ;;  %vm3402_vm4 = vcmp.eq.f32.partialorder %v11275_v8, 0.0  ;;  %7654 = vmatpush3.bf16.msra.mxu0 %v11276_v40  ;;  %v9809_v24 = vpack.c.bf16 %v1903_v37, %v1896_v35  ;;  %v11295_v8 = vld [vmem:[#allocation16_spill] sm:$0xff] }
  0x73   : > { %11263 = vst [vmem:[#allocation38_spill] sm:$0xff] %v9775_v16  ;;  %11266 = vst [vmem:[#allocation36_spill] sm:$0xff] %v9781_v44  ;;  %v11271_v47 = vand.u32 4294901760, %v11270_v34  ;;  %v9798_v16 = vpop.eup %8679  ;;  %v11278_v34 = vmov 0.0   ;;  %7656 = vmatprep.subr.bf16.mxu0 %v9655_v60  ;;  %v9814_v27 = vmul.f32 %v8678_v51, %v1502_v29  ;;  %7690 = vmatpush3.bf16.msra.mxu1 %v9802_v7  ;;  %v11281_v2 = vld [vmem:[#allocation39_spill] sm:$0xff]  ;;  %v9832_v51 = vpack.c.bf16 %v9075_v56, %v9072_v53 }
  0x74   : > { %11259 = vst [vmem:[#allocation28_spill] sm:$0xff] %v9769_v36  ;;  %v9787_v25 = vpack.c.bf16 %v11268_v62, %v11267_v63  ;;  %v11272_v36 = vld [vmem:[#allocation33_spill] sm:$0xff]  ;;  %11274 = vst [vmem:[#allocation31_spill] sm:$0xff] %v9795_v50  ;;  %v1784_v62 = vand.u32 4294901760, %v1783_v33  ;;  %v1791_v63 = vand.u32 4294901760, %v1790_v15  ;;  %v9812_v23 = vadd.f32 1.0, %v9798_v16  ;;  %7692 = vmatprep.subr.bf16.mxu1 %v9809_v24 }
  0x75   : > { %v11273_v48 = vand.u32 4294901760, %v11272_v36  ;;  %11277 = vst [vmem:[#allocation33_spill] sm:$0xff] %v9802_v7  ;;  %11279 = vst [vmem:[#allocation41_spill] sm:$0xff] %v9809_v24  ;;  %v11282_v33 = vand.u32 4294901760, %v11281_v2  ;;  %v11283_v15 = vld [vmem:[#allocation40_spill] sm:$0xff]  ;;  %v1550_v29 = vmul.f32 %v9814_v27, %v9814_v27 }
  0x76   : > { %11269 = vst [vmem:[#allocation58_spill] sm:$0xff] %v9787_v25  ;;  %11280 = vst [vmem:[#allocation59_spill] sm:$0xff] %v9814_v27  ;;  %8685 = vrcp.f32 %v9812_v23  ;;  %7658 = vmatpush3.bf16.msra.mxu0 %v9672_v42  ;;  %v11284_v36 = vand.u32 4294901760, %v11283_v15  ;;  %v9826_v37 = vpack.c.bf16 %v1791_v63, %v1784_v62 }
  0x77   : > { %v9793_v11 = vpack.c.bf16 %v11273_v48, %v11271_v47  ;;  %v6428_v48 = vsel %vm3402_vm4, 1.0, %v11278_v34  ;;  %11286 = vst [vmem:[#allocation40_spill] sm:$0xff] %v9832_v51  ;;  %v9836_v47 = vpop.eup %8681  ;;  %v9844_v63 = vand.u32 4294901760, %v1550_v29 }
  0x78   : > { %v3408_v55 = vsel %vm319_vm0, %v6428_v48, 0.0  ;;  %v9824_v35 = vpack.c.bf16 %v11284_v36, %v11282_v33  ;;  %11285 = vst [vmem:[#allocation39_spill] sm:$0xff] %v9826_v37  ;;  %7694 = vmatpush3.bf16.msra.mxu1 %v9826_v37  ;;  %v11287_v48 = vld [vmem:[#allocation42_spill] sm:$0xff]  ;;  %v9841_v62 = vpop.eup %8683  ;;  %v9848_v53 = vadd.f32 1.0, %v9836_v47  ;;  %v1505_v37 = vsel %vm1501_vm6, 1.0, %v9836_v47 }
  0x79   : > { %3409 = vadd.xlane.f32.xlu0 %v3408_v55  ;;  %7660 = vmatprep.subr.bf16.mxu0 %v9793_v11  ;;  %vm1499_vm5 = vcmp.ge.f32.partialorder %v11287_v48, 0.0  ;;  %11288 = vst [vmem:[#allocation60_spill] sm:$0xff] %v9844_v63  ;;  %v11289_v55 = vld [vmem:[#allocation11_spill] sm:$0xff]  ;;  %v9851_v56 = vadd.f32 1.0, %v9841_v62  ;;  %v9857_v15 = vsub.f32 %v1550_v29, %v9844_v63  ;;  %v1504_v29 = vsel %vm1500_vm7, 1.0, %v9841_v62 }
  0x7a   : > { %7662 = vmatpush3.bf16.msra.mxu0 %v9824_v35  ;;  %7728 = vmatprep.subr.bf16.mxu1 %v11289_v55  ;;  %v1503_v2 = vsel %vm1499_vm5, 1.0, %v9798_v16  ;;  %8687 = vrcp.f32 %v9848_v53 }
  0x7b   : > { %7696 = vmatprep.subr.bf16.mxu0 %v9832_v51  ;;  %8689 = vrcp.f32 %v9851_v56  ;;  %v11084_v48 = vand.u32 4294901760, %v9857_v15 }
  0x7c   : > { %8691 = vlog2.f32 %v9812_v23  ;;  %v11307_v23 = vld [vmem:[#allocation55_spill] sm:$0xff] }
  0x7d   : > { %8693 = vlog2.f32 %v9851_v56 }
  0x7e   : > { %8695 = vlog2.f32 %v9848_v53  ;;  %v1451_v53 = vmul.f32 -0.5, %v9841_v62 }
  0x80   : > { %v8686_v33 = vpop.eup %8685 }
  0x81   : > { %v9859_v36 = vmul.f32 %v8686_v33, %v1503_v2  ;;  %v1659_v33 = vsub.f32 %v9857_v15, %v11084_v48 }
  0x83   : > { %11290 = vst [vmem:[#allocation11_spill] sm:$0xff] %v9859_v36  ;;  %v1551_v27 = vmul.f32 %v9859_v36, %v9859_v36  ;;  %v1660_v25 = vand.u32 4294901760, %v1659_v33 }
  0x84   : > { %v8688_v2 = vpop.eup %8687 }
  0x85   : > { %v9866_v51 = vand.u32 4294901760, %v1551_v27  ;;  %v8690_v36 = vpop.eup %8689  ;;  %v9877_v7 = vmul.f32 %v8688_v2, %v1505_v37 }
  0x87   : > { %v1651_v24 = vsub.f32 %v1551_v27, %v9866_v51  ;;  %1906 = vmatprep.mubr.f32.mxu1 %v9866_v51  ;;  %11292 = vst [vmem:[#allocation12_spill] sm:$0xff] %v9877_v7  ;;  %v9880_v27 = vmul.f32 %v8690_v36, %v1504_v29  ;;  %v1553_v50 = vmul.f32 %v9877_v7, %v9877_v7  ;;  %v11296_v29 = vld [vmem:[#allocation21_spill] sm:$0xff] }
  0x88   : > { %1908 = vmatmul.mubr.f32.vlgmr.msra.gmra.mrb[4].mxu1 %v9844_v63  ;;  %v9888_v63 = vpack.c.bf16 %v9096_v5, %v9093_v4  ;;  %v9895_v36 = vpack.c.bf16 %v9147_v21, %v9145_v20  ;;  %v9911_v5 = vpack.c.bf16 %v9179_v28, %v9169_v49  ;;  %v9918_v21 = vpack.c.bf16 %v9194_v39, %v9189_v38 }
  0x89   : > { %v1652_v19 = vand.u32 4294901760, %v1651_v24  ;;  %7730 = vmatpush3.bf16.msra.mxu1 %v11291_v9  ;;  %11294 = vst [vmem:[#allocation13_spill] sm:$0xff] %v9880_v27  ;;  %v1552_v48 = vmul.f32 %v9880_v27, %v9880_v27  ;;  %v9891_v37 = vand.u32 4294901760, %v1553_v50  ;;  %v9927_v28 = vpack.c.bf16 %v11233_v30, %v11231_v14 }
  0x8a   : > { %7732 = vmatprep.subr.bf16.mxu1 %v11293_v18  ;;  %v9933_v38 = vpack.c.bf16 %v9276_v46, %v9271_v59  ;;  %v9939_v30 = vpack.c.bf16 %v11241_v0, %v11239_v3  ;;  %v9951_v59 = vpack.c.bf16 %v11250_v58, %v9410_v31  ;;  %v11298_v46 = vld [vmem:[#allocation30_spill] sm:$0xff]  ;;  %v11301_v31 = vld [vmem:[#allocation35_spill] sm:$0xff] }
  0x8b   : > { %v1653_v57 = vsub.f32 %v1651_v24, %v1652_v19  ;;  %v9898_v2 = vand.u32 4294901760, %v1552_v48  ;;  %v9901_v33 = vsub.f32 %v1553_v50, %v9891_v37  ;;  %1913 = vmatprep.mubr.f32.mxu1 %v9891_v37  ;;  %v9957_v14 = vpack.c.bf16 %v11298_v46, %v9464_v26  ;;  %v11306_v58 = vld [vmem:[#allocation54_spill] sm:$0xff] }
  0x8c   : > { %11297 = vst [vmem:[#allocation16_spill] sm:$0xff] %v9951_v59  ;;  %v9969_v0 = vpack.c.bf16 %v11261_v43, %v11301_v31  ;;  %v9975_v26 = vpack.c.bf16 %v9555_v6, %v9545_v17  ;;  %v11302_v43 = vand.u32 4294901760, %v9857_v15  ;;  %v11304_v17 = vld [vmem:[#allocation44_spill] sm:$0xff]  ;;  %v1454_v46 = vand.u32 2147483647, %v9841_v62 }
  0x8d   : > { %v1654_v44 = vand.u32 4294901760, %v1653_v57  ;;  %7734 = vmatpush3.bf16.msra.mxu1 %v11295_v8  ;;  %v9905_v4 = vsub.f32 %v1552_v48, %v9898_v2  ;;  %v1667_v20 = vand.u32 4294901760, %v9901_v33  ;;  %11299 = vst [vmem:[#allocation21_spill] sm:$0xff] %v9957_v14  ;;  %v1445_v48 = vand.u32 2147483647, %v9798_v16 }
  0x8e   : > { %7736 = vmatprep.subr.bf16.mxu1 %v11296_v29  ;;  %1915 = vmatmul.mubr.f32.gmra.mrb[6].mxu1 %v9898_v2  ;;  %vm10043_vm10 = vcmp.lt.f32.partialorder %v1454_v46, 0.0004427343  ;;  %v11321_v46 = vld [vmem:[#allocation19_spill] sm:$0xff] }
  0x8f   : > { %1655 = vmatprep.mubr.f32.mxu0 %v1654_v44  ;;  %v1673_v57 = vand.u32 4294901760, %v9905_v4  ;;  %v1668_v44 = vsub.f32 %v9901_v33, %v1667_v20  ;;  %2166 = vmatprep.mubr.f32.mxu1 %v1652_v19  ;;  %v9945_v19 = vpack.c.bf16 %v11246_v1, %v11244_v10  ;;  %v11300_v10 = vld [vmem:[#allocation32_spill] sm:$0xff]  ;;  %v11303_v1 = vld [vmem:[#allocation43_spill] sm:$0xff]  ;;  %vm10019_vm9 = vcmp.lt.f32.partialorder %v1445_v48, 0.0004427343 }
  0x90   : > { %1661 = vmatmul.mubr.f32.vlgmr.msra.gmra.mrb[4].mxu0 %v1660_v25  ;;  %v9963_v3 = vpack.c.bf16 %v11300_v10, %v9482_v54  ;;  %v9981_v54 = vpack.c.bf16 %v9581_v22, %v9560_v12  ;;  %v9990_v6 = vpack.c.bf16 %v11304_v17, %v11303_v1  ;;  %v11305_v12 = vld [vmem:[#allocation53_spill] sm:$0xff]  ;;  %v1442_v22 = vmul.f32 -0.5, %v9798_v16 }
  0x91   : > { %7698 = vmatpush3.bf16.msra.mxu0 %v9888_v63  ;;  %7738 = vmatpush3.bf16.msra.mxu1 %v9339_v32  ;;  %v1674_v49 = vsub.f32 %v9905_v4, %v1673_v57  ;;  %v1669_v25 = vand.u32 4294901760, %v1668_v44 }
  0x92   : > { %7700 = vmatprep.subr.bf16.mxu0 %v9895_v36  ;;  %7740 = vmatprep.subr.bf16.mxu1 %v9368_v61  ;;  %v1443_v50 = vadd.f32 1.0, %v1442_v22  ;;  %v1463_v22 = vand.u32 2147483647, %v9836_v47 }
  0x93   : > { %v1675_v39 = vand.u32 4294901760, %v1674_v49  ;;  %1670 = vmatprep.mubr.f32.mxu0 %v1669_v25 }
  0x94   : > { %vm10056_vm11 = vcmp.lt.f32.partialorder %v1463_v22, 0.0004427343  ;;  %v11323_v22 = vld [vmem:[#allocation25_spill] sm:$0xff] }
  0x95   : > { %7702 = vmatpush3.bf16.msra.mxu0 %v9911_v5  ;;  %7742 = vmatpush3.bf16.msra.mxu1 %v9372_v52 }
  0x96   : > { %7704 = vmatprep.subr.bf16.mxu0 %v9918_v21  ;;  %7744 = vmatprep.subr.bf16.mxu1 %v9429_v13 }
  0x97   : > { %1676 = vmatmul.mubr.f32.gmra.mrb[6].mxu0 %v1675_v39  ;;  %v11311_v39 = vld [vmem:[#allocation56_spill] sm:$0xff] }
  0x98   : > { %2050 = vmatprep.mubr.f32.mxu0 %v1651_v24  ;;  %v8692_v24 = vpop.eup %8691 }
  0x99   : > { %7706 = vmatpush3.bf16.msra.mxu0 %v9927_v28  ;;  %7746 = vmatpush3.bf16.msra.mxu1 %v9445_v45  ;;  %v10011_v56 = vmul.f32 0.6931472, %v8692_v24  ;;  %v8694_v25 = vpop.eup %8693 }
  0x9a   : > { %7708 = vmatprep.subr.bf16.mxu0 %v9933_v38  ;;  %7748 = vmatprep.subr.bf16.mxu1 %v11253_v41  ;;  %v8696_v31 = vpop.eup %8695  ;;  %v10036_v1 = vmul.f32 0.6931472, %v8694_v25 }
  0x9b   : > { %v10047_v24 = vmul.f32 0.6931472, %v8696_v31 }
  0x9d   : > { %7710 = vmatpush3.bf16.msra.mxu0 %v9939_v30  ;;  %7750 = vmatpush3.bf16.msra.mxu1 %v11276_v40 }
  0x9e   : > { %7712 = vmatprep.subr.bf16.mxu0 %v9945_v19  ;;  %7752 = vmatprep.subr.bf16.mxu1 %v9655_v60 }
  0xa1   : > { %7714 = vmatpush3.bf16.msra.mxu0 %v9951_v59  ;;  %7754 = vmatpush3.bf16.msra.mxu1 %v9672_v42 }
  0xa2   : > { %7716 = vmatprep.subr.bf16.mxu0 %v9957_v14  ;;  %7756 = vmatprep.subr.bf16.mxu1 %v9793_v11 }
  0xa5   : > { %7718 = vmatpush3.bf16.msra.mxu0 %v9963_v3  ;;  %7758 = vmatpush3.bf16.msra.mxu1 %v9824_v35 }
  0xa6   : > { %7720 = vmatprep.subr.bf16.mxu0 %v9969_v0  ;;  %7792 = vmatprep.subr.bf16.mxu1 %v11289_v55 }
  0xa8   : > { %2170 = vmatmul.mubr.f32.vlgmr.msra.gmra.mrb[8].mxu1 %v11302_v43  ;;  %v11312_v43 = vld [vmem:[#allocation57_spill] sm:$0xff] }
  0xa9   : > { %7722 = vmatpush3.bf16.msra.mxu0 %v9975_v26  ;;  %7794 = vmatpush3.bf16.msra.mxu1 %v11291_v9 }
  0xaa   : > { %7724 = vmatprep.subr.bf16.mxu0 %v9981_v54  ;;  %7796 = vmatprep.subr.bf16.mxu1 %v11293_v18 }
  0xab   : > { %2177 = vmatprep.mubr.f32.mxu1 %v1667_v20  ;;  %v11308_v20 = vld [vmem:[#allocation9_spill] sm:$0xff] }
  0xac   : > { %2181 = vmatmul.mubr.f32.gmra.mrb[10].mxu1 %v1673_v57  ;;  %vm3403_vm8 = vcmp.eq.f32.partialorder %v11308_v20, 0.0  ;;  %v1460_v57 = vmul.f32 -0.5, %v9836_v47  ;;  %v11328_v20 = vld [vmem:[#allocation36_spill] sm:$0xff] }
  0xad   : > { %7726 = vmatpush3.bf16.msra.mxu0 %v9990_v6  ;;  %7798 = vmatpush3.bf16.msra.mxu1 %v11295_v8  ;;  %v6429_v49 = vsel %vm3403_vm8, 1.0, %v11278_v34 }
  0xae   : > { %7760 = vmatprep.subr.bf16.mxu0 %v11305_v12  ;;  %7800 = vmatprep.subr.bf16.mxu1 %v11296_v29  ;;  %v1461_v10 = vadd.f32 1.0, %v1460_v57  ;;  %v11318_v57 = vld [vmem:[#allocation14_spill] sm:$0xff] }
  0xaf   : > { %2458 = vmatprep.mubr.f32.mxu1 %v9866_v51 }
  0xb0   : > { %2053 = vmatmul.mubr.f32.vlgmr.msra.gmra.mrb[8].mxu0 %v9857_v15  ;;  %v10014_v15 = vmul.f32 %v9798_v16, %v1443_v50  ;;  %v10050_v48 = vmul.f32 %v9836_v47, %v1461_v10  ;;  %v11322_v10 = vld [vmem:[#allocation23_spill] sm:$0xff]  ;;  %v11325_v47 = vld [vmem:[#allocation38_spill] sm:$0xff]  ;;  %v11327_v16 = vld [vmem:[#allocation60_spill] sm:$0xff] }
  0xb1   : > { %7762 = vmatpush3.bf16.msra.mxu0 %v11306_v58  ;;  %7802 = vmatpush3.bf16.msra.mxu1 %v9339_v32 }
  0xb2   : > { %7764 = vmatprep.subr.bf16.mxu0 %v11307_v23  ;;  %7804 = vmatprep.subr.bf16.mxu1 %v9368_v61 }
  0xb3   : > { %2059 = vmatprep.mubr.f32.mxu0 %v9901_v33  ;;  %v1452_v33 = vadd.f32 1.0, %v1451_v53 }
  0xb4   : > { %2062 = vmatmul.mubr.f32.gmra.mrb[10].mxu0 %v9905_v4  ;;  %v3411_v4 = vsel %vm319_vm0, %v6429_v49, 0.0 }
  0xb5   : > { %7766 = vmatpush3.bf16.msra.mxu0 %v11311_v39  ;;  %7806 = vmatpush3.bf16.msra.mxu1 %v9372_v52  ;;  %v10039_v17 = vmul.f32 %v9841_v62, %v1452_v33  ;;  %v11319_v33 = vld [vmem:[#allocation15_spill] sm:$0xff]  ;;  %v11326_v62 = vld [vmem:[#allocation17_spill] sm:$0xff] }
  0xb6   : > { %7768 = vmatprep.subr.bf16.mxu0 %v11312_v43  ;;  %7808 = vmatprep.subr.bf16.mxu1 %v9429_v13  ;;  %v11353_v43 = vld [vmem:[#allocation52_spill] sm:$0xff] }
  0xb7   : > { %2347 = vmatprep.mubr.f32.mxu0 %v9866_v51  ;;  %3412 = vadd.xlane.f32.xlu0 %v3411_v4  ;;  %v11317_v51 = vld [vmem:[#allocation7_spill] sm:$0xff]  ;;  %v11320_v4 = vld [vmem:[#allocation18_spill] sm:$0xff]  ;;  %v11358_v44 = vsel %vm10043_vm10, %v10039_v17, %v10036_v1 }
  0xb8   : > { %vm5314_vm12 = vcmp.eq.f32.partialorder %v11317_v51, 2.0  ;;  %vm6270_vm13 = vcmp.eq.f32.partialorder %v11317_v51, 3.0  ;;  %v11330_v51 = vld [vmem:[#allocation20_spill] sm:$0xff] }
  0xb9   : > { %7770 = vmatpush3.bf16.msra.mxu0 %v11318_v57  ;;  %7810 = vmatpush3.bf16.msra.mxu1 %v9445_v45  ;;  %v6432_v49 = vsel %vm5314_vm12, 1.0, %v11278_v34  ;;  %v6434_v31 = vsel %vm6270_vm13, 1.0, %v11278_v34  ;;  %v11329_v34 = vld [vmem:[#allocation58_spill] sm:$0xff] }
  0xba   : > { %7772 = vmatprep.subr.bf16.mxu0 %v11319_v33  ;;  %7812 = vmatprep.subr.bf16.mxu1 %v11253_v41  ;;  %v5320_v25 = vsel %vm319_vm0, %v6432_v49, 0.0  ;;  %v6276_v49 = vsel %vm319_vm0, %v6434_v31, 0.0  ;;  %v11331_v31 = vld [vmem:[#allocation22_spill] sm:$0xff]  ;;  %v11352_v33 = vld [vmem:[#allocation59_spill] sm:$0xff] }
  0xbb   : > { %5321 = vadd.xlane.f32.xlu0 %v5320_v25  ;;  %v11324_v25 = vld [vmem:[#allocation28_spill] sm:$0xff] }
  0xbd   : > { %7774 = vmatpush3.bf16.msra.mxu0 %v11320_v4  ;;  %7814 = vmatpush3.bf16.msra.mxu1 %v11276_v40  ;;  %v11351_v4 = vld [vmem:[#allocation42_spill] sm:$0xff] }
  0xbe   : > { %7776 = vmatprep.subr.bf16.mxu0 %v11321_v46  ;;  %7816 = vmatprep.subr.bf16.mxu1 %v9655_v60 }
  0xbf   : > { %6277 = vadd.xlane.f32.xlu0 %v6276_v49  ;;  %v11332_v49 = vld [vmem:[#allocation31_spill] sm:$0xff] }
  0xc1   : > { %7778 = vmatpush3.bf16.msra.mxu0 %v11322_v10  ;;  %7818 = vmatpush3.bf16.msra.mxu1 %v9672_v42 }
  0xc2   : > { %7780 = vmatprep.subr.bf16.mxu0 %v11323_v22  ;;  %7820 = vmatprep.subr.bf16.mxu1 %v9793_v11 }
  0xc5   : > { %7782 = vmatpush3.bf16.msra.mxu0 %v11324_v25  ;;  %7822 = vmatpush3.bf16.msra.mxu1 %v9824_v35  ;;  %v11333_v25 = vld [vmem:[#allocation24_spill] sm:$0xff] }
  0xc6   : > { %7784 = vmatprep.subr.bf16.mxu0 %v11325_v47  ;;  %7856 = vmatprep.subr.bf16.mxu1 %v11326_v62  ;;  %v11334_v62 = vld [vmem:[#allocation26_spill] sm:$0xff] }
  0xc8   : > { %2460 = vmatmul.mubr.f32.vlgmr.msra.gmra.mrb[12].mxu1 %v11327_v16 }
  0xc9   : > { %7786 = vmatpush3.bf16.msra.mxu0 %v11328_v20  ;;  %2465 = vmatprep.mubr.f32.mxu1 %v9891_v37  ;;  %v11349_v20 = vld [vmem:[#allocation10_spill] sm:$0xff] }
  0xca   : > { %7788 = vmatprep.subr.bf16.mxu0 %v11329_v34  ;;  %7858 = vmatpush3.bf16.msra.mxu1 %v11330_v51  ;;  %v11335_v34 = vld [vmem:[#allocation27_spill] sm:$0xff]  ;;  %v1426_v47 = vmax.f32 %v11349_v20, 0.0 }
  0xcb   : > { %7860 = vmatprep.subr.bf16.mxu1 %v11331_v31  ;;  %v11336_v31 = vld [vmem:[#allocation29_spill] sm:$0xff] }
  0xcc   : > { %2467 = vmatmul.mubr.f32.gmra.mrb[14].mxu1 %v9898_v2 }
  0xcd   : > { %7790 = vmatpush3.bf16.msra.mxu0 %v11332_v49 }
  0xce   : > { %7862 = vmatpush3.bf16.msra.mxu1 %v11333_v25  ;;  %7824 = vmatprep.subr.bf16.mxu0 %v11289_v55  ;;  %v11337_v25 = vld [vmem:[#allocation34_spill] sm:$0xff] }
  0xcf   : > { %7864 = vmatprep.subr.bf16.mxu1 %v11334_v62  ;;  %v11338_v62 = vld [vmem:[#allocation46_spill] sm:$0xff] }
  0xd0   : > { %2349 = vmatmul.mubr.f32.vlgmr.msra.gmra.mrb[12].mxu0 %v11327_v16  ;;  %v11340_v16 = vld [vmem:[#allocation49_spill] sm:$0xff] }
  0xd1   : > { %2354 = vmatprep.mubr.f32.mxu0 %v9891_v37  ;;  %7826 = vmatpush3.bf16.msra.mxu0 %v11291_v9  ;;  %v11339_v37 = vld [vmem:[#allocation47_spill] sm:$0xff] }
  0xd2   : > { %7866 = vmatpush3.bf16.msra.mxu1 %v11335_v34  ;;  %7828 = vmatprep.subr.bf16.mxu0 %v11293_v18 }
  0xd3   : > { %7868 = vmatprep.subr.bf16.mxu1 %v11336_v31  ;;  %v11341_v31 = vld [vmem:[#allocation50_spill] sm:$0xff] }
  0xd4   : > { %2356 = vmatmul.mubr.f32.gmra.mrb[14].mxu0 %v9898_v2  ;;  %v11342_v2 = vld [vmem:[#allocation51_spill] sm:$0xff] }
  0xd5   : > { %7830 = vmatpush3.bf16.msra.mxu0 %v11295_v8 }
  0xd6   : > { %7870 = vmatpush3.bf16.msra.mxu1 %v11337_v25  ;;  %7832 = vmatprep.subr.bf16.mxu0 %v11296_v29  ;;  %v11343_v25 = vld [vmem:[#allocation33_spill] sm:$0xff] }
  0xd7   : > { %7872 = vmatprep.subr.bf16.mxu1 %v11338_v62  ;;  %v11344_v62 = vld [vmem:[#allocation41_spill] sm:$0xff] }
  0xd9   : > { %7834 = vmatpush3.bf16.msra.mxu0 %v9339_v32 }
  0xda   : > { %7874 = vmatpush3.bf16.msra.mxu1 %v11339_v37  ;;  %7836 = vmatprep.subr.bf16.mxu0 %v9368_v61  ;;  %v11345_v37 = vld [vmem:[#allocation39_spill] sm:$0xff] }
  0xdb   : > { %7876 = vmatprep.subr.bf16.mxu1 %v11340_v16 }
  0xdd   : > { %7838 = vmatpush3.bf16.msra.mxu0 %v9372_v52 }
  0xde   : > { %7878 = vmatpush3.bf16.msra.mxu1 %v11341_v31  ;;  %7840 = vmatprep.subr.bf16.mxu0 %v9429_v13  ;;  %v11348_v31 = vld [vmem:[#allocation37_spill] sm:$0xff] }
  0xdf   : > { %7880 = vmatprep.subr.bf16.mxu1 %v11342_v2  ;;  %v11346_v2 = vld [vmem:[#allocation40_spill] sm:$0xff] }
  0xe1   : > { %7842 = vmatpush3.bf16.msra.mxu0 %v9445_v45 }
  0xe2   : > { %7882 = vmatpush3.bf16.msra.mxu1 %v11343_v25  ;;  %7844 = vmatprep.subr.bf16.mxu0 %v11253_v41  ;;  %v11347_v25 = vld [vmem:[#allocation45_spill] sm:$0xff] }
  0xe3   : > { %7884 = vmatprep.subr.bf16.mxu1 %v11344_v62  ;;  %8697 = vlog2.f32 %v11347_v25  ;;  %v1433_v62 = vmul.f32 -0.5, %v11348_v31 }
  0xe5   : > { %7846 = vmatpush3.bf16.msra.mxu0 %v11276_v40  ;;  %v1434_v16 = vadd.f32 1.0, %v1433_v62 }
  0xe6   : > { %7886 = vmatpush3.bf16.msra.mxu1 %v11345_v37  ;;  %7848 = vmatprep.subr.bf16.mxu0 %v9655_v60  ;;  %v1436_v37 = vand.u32 2147483647, %v11348_v31 }
  0xe7   : > { %7920 = vmatprep.subr.bf16.mxu1 %v11289_v55  ;;  %v1435_v51 = vmul.f32 %v11348_v31, %v1434_v16  ;;  %v11354_v31 = vld [vmem:[#allocation48_spill] sm:$0xff] }
  0xe8   : > { %vm1437_vm14 = vcmp.lt.f32.partialorder %v1436_v37, 0.0004427343  ;;  %v1429_v37 = vmax.f32 %v11354_v31, 0.0 }
  0xe9   : > { %7850 = vmatpush3.bf16.msra.mxu0 %v9672_v42 }
  0xea   : > { %7852 = vmatprep.subr.bf16.mxu0 %v9793_v11 }
  0xed   : > { %7854 = vmatpush3.bf16.msra.mxu0 %v9824_v35  ;;  %v8698_v34 = vpop.eup %8697 }
  0xee   : > { %7888 = vmatprep.subr.bf16.mxu0 %v11346_v2  ;;  %v1432_v49 = vmul.f32 0.6931472, %v8698_v34  ;;  %v1427_v2 = vmax.f32 %v11351_v4, 0.0  ;;  %v1428_v34 = vmax.f32 %v11353_v43, 0.0 }
  0xf0   : > { %v1438_v46 = vsel %vm1437_vm14, %v1435_v51, %v1432_v49  ;;  %v11355_v51 = vsel %vm10019_vm9, %v10014_v15, %v10011_v56 }
  0xf1   : > { %v1466_v39 = vadd.f32 %v1438_v46, %v1426_v47  ;;  %v1467_v49 = vadd.f32 %v11355_v51, %v1427_v2  ;;  %v1468_v46 = vadd.f32 %v11358_v44, %v1428_v34 }
 0x126   : > { %v10137_v22 = vpop.f32.mrb[0].mxu0  ;;  %v1398_v10 = vpop.f32.mrb[0].mxu1 }
 0x127   : > { %11350 = vst [vmem:[#allocation30_spill] sm:$0xff] %v10137_v22  ;;  %vm2476_vm15 = vcmp.eq.f32.partialorder %v10137_v22, 0.0  ;;  %v10141_v25 = vpop.f32.mrb[1].mxu0  ;;  %v1400_v62 = vpop.f32.mrb[1].mxu1  ;;  %vm1470_vm3 = vcmp.eq.f32.partialorder %v10137_v22, %v1398_v10  ;;  %v11359_v10 = vsel %vm10056_vm11, %v10050_v48, %v10047_v24 }
 0x128   : > { %v2480_v57 = vsel %vm2476_vm15, %v11352_v33, 0.0  ;;  %v1474_v47 = vsel %vm1470_vm3, %v11349_v20, 0.0  ;;  %vm1471_vm5 = vcmp.eq.f32.partialorder %v10141_v25, %v1400_v62  ;;  %vm2477_vm6 = vcmp.eq.f32.partialorder %v10141_v25, 0.0 }
 0x129   : > { %v10154_v58 = vand.u32 4294901760, %v2480_v57  ;;  %v1478_v56 = vsub.f32 %v1466_v39, %v1474_v47  ;;  %v1475_v15 = vsel %vm1471_vm5, %v11351_v4, 0.0  ;;  %v1469_v2 = vadd.f32 %v11359_v10, %v1429_v37  ;;  %v11361_v4 = vld [vmem:[#allocation11_spill] sm:$0xff] }
 0x12a   : > { %v10152_v16 = vpop.f32.mrb[2].mxu0  ;;  %v1405_v23 = vpop.f32.mrb[2].mxu1  ;;  %v1479_v20 = vsub.f32 %v1467_v49, %v1475_v15  ;;  %vm3433_vm11 = vcmp.eq.f32.partialorder %v10141_v25, 1.0  ;;  %vm3432_vm15 = vcmp.eq.f32.partialorder %v10137_v22, 1.0 }
 0x12b   : > { %11356 = vst [vmem:[#allocation32_spill] sm:$0xff] %v10152_v16  ;;  %v10156_v12 = vpop.f32.mrb[3].mxu0  ;;  %v1407_v33 = vpop.f32.mrb[3].mxu1  ;;  %vm2478_vm7 = vcmp.eq.f32.partialorder %v10152_v16, 0.0  ;;  %vm1472_vm9 = vcmp.eq.f32.partialorder %v10152_v16, %v1405_v23  ;;  %v10176_v1 = vsub.f32 %v2480_v57, %v10154_v58  ;;  %v1482_v50 = vsel %vm8952_vm1, %v1478_v56, 0.0 }
 0x12c   : > { %11357 = vst [vmem:[#allocation35_spill] sm:$0xff] %v10156_v12  ;;  %vm2479_vm14 = vcmp.eq.f32.partialorder %v10156_v12, 0.0  ;;  %v1476_v39 = vsel %vm1472_vm9, %v11353_v43, 0.0  ;;  %v1483_v53 = vsel %vm8952_vm1, %v1479_v20, 0.0  ;;  %vm1473_vm10 = vcmp.eq.f32.partialorder %v10156_v12, %v1407_v33 }
 0x12d   : > { %v1480_v24 = vsub.f32 %v1468_v46, %v1476_v39  ;;  %v1477_v48 = vsel %vm1473_vm10, %v11354_v31, 0.0  ;;  %v2481_v23 = vsel %vm2477_vm6, %v11361_v4, 0.0  ;;  %v2483_v62 = vsel %vm2479_vm14, %v9877_v7, 0.0 }
 0x12e   : > { %v2482_v57 = vsel %vm2478_vm7, %v9880_v27, 0.0  ;;  %v1481_v34 = vsub.f32 %v1469_v2, %v1477_v48  ;;  %v10188_v37 = vand.u32 4294901760, %v2481_v23  ;;  %v10190_v43 = vand.u32 4294901760, %v2483_v62 }
 0x12f   : > { %v10192_v51 = vand.u32 4294901760, %v2482_v57  ;;  %v1484_v47 = vsel %vm8976_vm2, %v1480_v24, 0.0  ;;  %v1486_v44 = vadd.f32 %v1483_v53, %v1482_v50  ;;  %v2588_v33 = vand.u32 4294901760, %v10176_v1 }
 0x130   : > { %2836 = vmatprep.mubr.f32.mxu1 %v10188_v37  ;;  %v2581_v31 = vsub.f32 %v2481_v23, %v10188_v37  ;;  %v1485_v46 = vsel %vm8976_vm2, %v1481_v34, 0.0  ;;  %v10202_v56 = vsub.f32 %v2483_v62, %v10190_v43  ;;  %vm3435_vm3 = vcmp.eq.f32.partialorder %v10156_v12, 1.0 }
 0x131   : > { %v10205_v15 = vsub.f32 %v2482_v57, %v10192_v51  ;;  %2838 = vmatmul.mubr.f32.vlgmr.msra.gmra.mrb[16].mxu1 %v10154_v58  ;;  %v1487_v10 = vadd.f32 %v1486_v44, %v1484_v47  ;;  %v2589_v50 = vsub.f32 %v10176_v1, %v2588_v33  ;;  %vm3434_vm5 = vcmp.eq.f32.partialorder %v10152_v16, 1.0 }
 0x132   : > { %7922 = vmatpush3.bf16.msra.mxu1 %v11291_v9  ;;  %2843 = vmatprep.mubr.f32.mxu1 %v10190_v43  ;;  %v2582_v2 = vand.u32 4294901760, %v2581_v31  ;;  %v2597_v20 = vand.u32 4294901760, %v10202_v56  ;;  %vm4389_vm9 = vcmp.eq.f32.partialorder %v10141_v25, 2.0 }
 0x133   : > { %7924 = vmatprep.subr.bf16.mxu1 %v11293_v18  ;;  %v1488_v39 = vadd.f32 %v1487_v10, %v1485_v46  ;;  %v2603_v53 = vand.u32 4294901760, %v10205_v15  ;;  %v2590_v62 = vand.u32 4294901760, %v2589_v50 }
 0x134   : > { %v2583_v24 = vsub.f32 %v2581_v31, %v2582_v2  ;;  %v2598_v48 = vsub.f32 %v10202_v56, %v2597_v20 }
 0x135   : > { %2845 = vmatmul.mubr.f32.gmra.mrb[18].mxu1 %v10192_v51  ;;  %1489 = vadd.xlane.f32.xlu0 %v1488_v39  ;;  %v2604_v34 = vsub.f32 %v10205_v15, %v2603_v53 }
 0x136   : > { %7926 = vmatpush3.bf16.msra.mxu1 %v11295_v8  ;;  %3096 = vmatprep.mubr.f32.mxu1 %v2582_v2  ;;  %v2584_v23 = vand.u32 4294901760, %v2583_v24  ;;  %v2599_v57 = vand.u32 4294901760, %v2598_v48 }
 0x137   : > { %7928 = vmatprep.subr.bf16.mxu1 %v11296_v29  ;;  %v2605_v47 = vand.u32 4294901760, %v2604_v34 }
 0x138   : > { %2585 = vmatprep.mubr.f32.mxu0 %v2584_v23  ;;  %v11365_v23 = vld [vmem:[#allocation55_spill] sm:$0xff] }
 0x139   : > { %2591 = vmatmul.mubr.f32.vlgmr.msra.gmra.mrb[16].mxu0 %v2590_v62 }
 0x13a   : > { %7890 = vmatpush3.bf16.msra.mxu0 %v9888_v63  ;;  %7930 = vmatpush3.bf16.msra.mxu1 %v9339_v32 }
 0x13b   : > { %2600 = vmatprep.mubr.f32.mxu0 %v2599_v57  ;;  %7892 = vmatprep.subr.bf16.mxu0 %v9895_v36  ;;  %v11366_v57 = vld [vmem:[#allocation56_spill] sm:$0xff] }
 0x13c   : > { %7932 = vmatprep.subr.bf16.mxu1 %v9368_v61 }
 0x13d   : > { %2606 = vmatmul.mubr.f32.gmra.mrb[18].mxu0 %v2605_v47 }
 0x13e   : > { %7894 = vmatpush3.bf16.msra.mxu0 %v9911_v5  ;;  %7934 = vmatpush3.bf16.msra.mxu1 %v9372_v52 }
 0x13f   : > { %2980 = vmatprep.mubr.f32.mxu0 %v2581_v31  ;;  %7896 = vmatprep.subr.bf16.mxu0 %v9918_v21 }
 0x140   : > { %7936 = vmatprep.subr.bf16.mxu1 %v9429_v13 }
 0x142   : > { %7898 = vmatpush3.bf16.msra.mxu0 %v9927_v28  ;;  %7938 = vmatpush3.bf16.msra.mxu1 %v9445_v45 }
 0x143   : > { %7900 = vmatprep.subr.bf16.mxu0 %v9933_v38  ;;  %7940 = vmatprep.subr.bf16.mxu1 %v11253_v41 }
 0x146   : > { %7902 = vmatpush3.bf16.msra.mxu0 %v9939_v30  ;;  %7942 = vmatpush3.bf16.msra.mxu1 %v11276_v40 }
 0x147   : > { %7904 = vmatprep.subr.bf16.mxu0 %v9945_v19  ;;  %7944 = vmatprep.subr.bf16.mxu1 %v9655_v60 }
 0x14a   : > { %7906 = vmatpush3.bf16.msra.mxu0 %v9951_v59  ;;  %7946 = vmatpush3.bf16.msra.mxu1 %v9672_v42 }
 0x14b   : > { %7908 = vmatprep.subr.bf16.mxu0 %v9957_v14  ;;  %7948 = vmatprep.subr.bf16.mxu1 %v9793_v11 }
 0x14e   : > { %7910 = vmatpush3.bf16.msra.mxu0 %v9963_v3  ;;  %7950 = vmatpush3.bf16.msra.mxu1 %v9824_v35 }
 0x14f   : > { %7912 = vmatprep.subr.bf16.mxu0 %v9969_v0  ;;  %7984 = vmatprep.subr.bf16.mxu1 %v11289_v55 }
 0x151   : > { %3100 = vmatmul.mubr.f32.vlgmr.msra.gmra.mrb[20].mxu1 %v2588_v33  ;;  %v11363_v33 = vld [vmem:[#allocation53_spill] sm:$0xff] }
 0x152   : > { %7914 = vmatpush3.bf16.msra.mxu0 %v9975_v26  ;;  %3107 = vmatprep.mubr.f32.mxu1 %v2597_v20 }
 0x153   : > { %7986 = vmatpush3.bf16.msra.mxu1 %v11291_v9  ;;  %7916 = vmatprep.subr.bf16.mxu0 %v9981_v54 }
 0x154   : > { %7988 = vmatprep.subr.bf16.mxu1 %v11293_v18 }
 0x155   : > { %3111 = vmatmul.mubr.f32.gmra.mrb[22].mxu1 %v2603_v53  ;;  %v11364_v53 = vld [vmem:[#allocation54_spill] sm:$0xff] }
 0x156   : > { %7918 = vmatpush3.bf16.msra.mxu0 %v9990_v6  ;;  %3388 = vmatprep.mubr.f32.mxu1 %v10188_v37 }
 0x157   : > { %7990 = vmatpush3.bf16.msra.mxu1 %v11295_v8  ;;  %7952 = vmatprep.subr.bf16.mxu0 %v11363_v33 }
 0x158   : > { %7992 = vmatprep.subr.bf16.mxu1 %v11296_v29 }
 0x159   : > { %2983 = vmatmul.mubr.f32.vlgmr.msra.gmra.mrb[20].mxu0 %v10176_v1  ;;  %v11367_v1 = vld [vmem:[#allocation57_spill] sm:$0xff] }
 0x15a   : > { %2989 = vmatprep.mubr.f32.mxu0 %v10202_v56  ;;  %7954 = vmatpush3.bf16.msra.mxu0 %v11364_v53 }
 0x15b   : > { %v6513_v44 = vpop.f32.mrb[4].mxu1  ;;  %7994 = vmatpush3.bf16.msra.mxu1 %v9339_v32  ;;  %7956 = vmatprep.subr.bf16.mxu0 %v11365_v23 }
 0x15c   : > { %v6514_v31 = vpop.f32.mrb[5].mxu1  ;;  %7996 = vmatprep.subr.bf16.mxu1 %v9368_v61 }
 0x15d   : > { %v6515_v46 = vadd.f32 %v6514_v31, %v6513_v44  ;;  %2992 = vmatmul.mubr.f32.gmra.mrb[22].mxu0 %v10205_v15  ;;  %v11368_v44 = vld [vmem:[#allocation14_spill] sm:$0xff]  ;;  %v11369_v31 = vld [vmem:[#allocation15_spill] sm:$0xff] }
 0x15e   : > { %7958 = vmatpush3.bf16.msra.mxu0 %v11366_v57  ;;  %3277 = vmatprep.mubr.f32.mxu0 %v10188_v37  ;;  %v11370_v37 = vld [vmem:[#allocation18_spill] sm:$0xff]  ;;  %v11371_v15 = vld [vmem:[#allocation19_spill] sm:$0xff] }
 0x15f   : > { %7998 = vmatpush3.bf16.msra.mxu1 %v9372_v52  ;;  %7960 = vmatprep.subr.bf16.mxu0 %v11367_v1 }
 0x160   : > { %8000 = vmatprep.subr.bf16.mxu1 %v9429_v13 }
 0x161   : > { %v6516_v2 = vpop.f32.mrb[6].mxu1 }
 0x162   : > { %v6517_v50 = vpop.f32.mrb[7].mxu1  ;;  %7962 = vmatpush3.bf16.msra.mxu0 %v11368_v44 }
 0x163   : > { %v6475_v10 = vpop.f32.mrb[4].mxu0  ;;  %v6518_v24 = vadd.f32 %v6517_v50, %v6516_v2  ;;  %8002 = vmatpush3.bf16.msra.mxu1 %v9445_v45  ;;  %7964 = vmatprep.subr.bf16.mxu0 %v11369_v31  ;;  %v11373_v2 = vld [vmem:[#allocation25_spill] sm:$0xff] }
 0x164   : > { %v6476_v39 = vpop.f32.mrb[5].mxu0  ;;  %8004 = vmatprep.subr.bf16.mxu1 %v11253_v41 }
 0x165   : > { %v6477_v20 = vadd.f32 %v6476_v39, %v6475_v10  ;;  %v11372_v10 = vld [vmem:[#allocation23_spill] sm:$0xff] }
 0x166   : > { %7966 = vmatpush3.bf16.msra.mxu0 %v11370_v37  ;;  %v11382_v37 = vld [vmem:[#allocation24_spill] sm:$0xff] }
 0x167   : > { %v1910_v48 = vadd.f32 %v6515_v46, %v6477_v20  ;;  %8006 = vmatpush3.bf16.msra.mxu1 %v11276_v40  ;;  %7968 = vmatprep.subr.bf16.mxu0 %v11371_v15  ;;  %v3437_v46 = vsel %vm3433_vm11, %v11361_v4, 0.0  ;;  %v11374_v20 = vld [vmem:[#allocation28_spill] sm:$0xff]  ;;  %v11379_v15 = vld [vmem:[#allocation58_spill] sm:$0xff] }
 0x168   : > { %8008 = vmatprep.subr.bf16.mxu1 %v9655_v60  ;;  %v10278_v39 = vand.u32 4294901760, %v3437_v46 }
 0x16a   : > { %v6478_v62 = vpop.f32.mrb[6].mxu0  ;;  %7970 = vmatpush3.bf16.msra.mxu0 %v11372_v10  ;;  %v10285_v49 = vsub.f32 %v3437_v46, %v10278_v39  ;;  %v11381_v46 = vld [vmem:[#allocation31_spill] sm:$0xff] }
 0x16b   : > { %v6479_v34 = vpop.f32.mrb[7].mxu0  ;;  %8010 = vmatpush3.bf16.msra.mxu1 %v9672_v42  ;;  %7972 = vmatprep.subr.bf16.mxu0 %v11373_v2  ;;  %v11377_v2 = vld [vmem:[#allocation36_spill] sm:$0xff] }
 0x16c   : > { %v6480_v56 = vadd.f32 %v6479_v34, %v6478_v62  ;;  %8012 = vmatprep.subr.bf16.mxu1 %v9793_v11  ;;  %v11375_v62 = vld [vmem:[#allocation38_spill] sm:$0xff] }
 0x16e   : > { %v1917_v47 = vadd.f32 %v6518_v24, %v6480_v56  ;;  %7974 = vmatpush3.bf16.msra.mxu0 %v11374_v20  ;;  %v11376_v56 = vld [vmem:[#allocation17_spill] sm:$0xff]  ;;  %v11378_v20 = vld [vmem:[#allocation20_spill] sm:$0xff] }
 0x16f   : > { %8014 = vmatpush3.bf16.msra.mxu1 %v9824_v35  ;;  %7976 = vmatprep.subr.bf16.mxu0 %v11375_v62  ;;  %v11380_v62 = vld [vmem:[#allocation22_spill] sm:$0xff] }
 0x170   : > { %8048 = vmatprep.subr.bf16.mxu1 %v11376_v56 }
 0x172   : > { %3390 = vmatmul.mubr.f32.vlgmr.msra.gmra.mrb[24].mxu1 %v10154_v58  ;;  %7978 = vmatpush3.bf16.msra.mxu0 %v11377_v2 }
 0x173   : > { %3395 = vmatprep.mubr.f32.mxu1 %v10190_v43  ;;  %8050 = vmatpush3.bf16.msra.mxu1 %v11378_v20 }
 0x174   : > { %7980 = vmatprep.subr.bf16.mxu0 %v11379_v15  ;;  %8052 = vmatprep.subr.bf16.mxu1 %v11380_v62 }
 0x176   : > { %3397 = vmatmul.mubr.f32.gmra.mrb[26].mxu1 %v10192_v51  ;;  %7982 = vmatpush3.bf16.msra.mxu0 %v11381_v46  ;;  %v11384_v46 = vld [vmem:[#allocation27_spill] sm:$0xff] }
 0x177   : > { %8054 = vmatpush3.bf16.msra.mxu1 %v11382_v37  ;;  %3792 = vmatprep.mubr.f32.mxu1 %v10278_v39 }
 0x178   : > { %8016 = vmatprep.subr.bf16.mxu0 %v11289_v55 }
 0x179   : > { %3279 = vmatmul.mubr.f32.vlgmr.msra.gmra.mrb[24].mxu0 %v10154_v58 }
 0x17a   : > { %3284 = vmatprep.mubr.f32.mxu0 %v10190_v43  ;;  %8018 = vmatpush3.bf16.msra.mxu0 %v11291_v9  ;;  %v11386_v43 = vld [vmem:[#allocation34_spill] sm:$0xff] }
 0x17b   : > { %v6589_v50 = vpop.f32.mrb[8].mxu1  ;;  %8020 = vmatprep.subr.bf16.mxu0 %v11293_v18 }
 0x17c   : > { %v6590_v24 = vpop.f32.mrb[9].mxu1 }
 0x17d   : > { %v6591_v34 = vadd.f32 %v6590_v24, %v6589_v50  ;;  %v11095_v50 = vand.u32 4294901760, %v10285_v49  ;;  %3286 = vmatmul.mubr.f32.gmra.mrb[26].mxu0 %v10192_v51  ;;  %v11389_v51 = vld [vmem:[#allocation59_spill] sm:$0xff] }
 0x17e   : > { %8022 = vmatpush3.bf16.msra.mxu0 %v11295_v8 }
 0x17f   : > { %v6592_v17 = vpop.f32.mrb[10].mxu1  ;;  %8024 = vmatprep.subr.bf16.mxu0 %v11296_v29 }
 0x180   : > { %v6593_v10 = vpop.f32.mrb[11].mxu1 }
 0x181   : > { %v6594_v4 = vadd.f32 %v6593_v10, %v6592_v17  ;;  %v11383_v17 = vld [vmem:[#allocation26_spill] sm:$0xff]  ;;  %v3539_v10 = vsub.f32 %v10285_v49, %v11095_v50  ;;  %v11393_v50 = vld [vmem:[#allocation33_spill] sm:$0xff] }
 0x182   : > { %8056 = vmatprep.subr.bf16.mxu1 %v11383_v17  ;;  %v11385_v17 = vld [vmem:[#allocation29_spill] sm:$0xff]  ;;  %8026 = vmatpush3.bf16.msra.mxu0 %v9339_v32 }
 0x183   : > { %v6551_v24 = vpop.f32.mrb[8].mxu0  ;;  %8058 = vmatpush3.bf16.msra.mxu1 %v11384_v46  ;;  %v3540_v20 = vand.u32 4294901760, %v3539_v10  ;;  %8028 = vmatprep.subr.bf16.mxu0 %v9368_v61 }
 0x184   : > { %v6552_v56 = vpop.f32.mrb[9].mxu0  ;;  %8060 = vmatprep.subr.bf16.mxu1 %v11385_v17 }
 0x185   : > { %v6553_v2 = vadd.f32 %v6552_v56, %v6551_v24  ;;  %3541 = vmatprep.mubr.f32.mxu0 %v3540_v20 }
 0x186   : > { %8030 = vmatpush3.bf16.msra.mxu0 %v9372_v52 }
 0x187   : > { %v2055_v62 = vadd.f32 %v6553_v2, %v1910_v48  ;;  %v6554_v15 = vpop.f32.mrb[10].mxu0  ;;  %8062 = vmatpush3.bf16.msra.mxu1 %v11386_v43  ;;  %v11387_v2 = vld [vmem:[#allocation46_spill] sm:$0xff]  ;;  %8032 = vmatprep.subr.bf16.mxu0 %v9429_v13  ;;  %v11398_v43 = vld [vmem:[#allocation40_spill] sm:$0xff] }
 0x188   : > { %v6555_v37 = vpop.f32.mrb[11].mxu0  ;;  %8064 = vmatprep.subr.bf16.mxu1 %v11387_v2 }
 0x189   : > { %v6556_v56 = vadd.f32 %v6555_v37, %v6554_v15  ;;  %v10308_v24 = vadd.f32 %v6591_v34, %v2055_v62  ;;  %v11388_v37 = vld [vmem:[#allocation47_spill] sm:$0xff]  ;;  %v11390_v15 = vld [vmem:[#allocation49_spill] sm:$0xff]  ;;  %v11391_v62 = vld [vmem:[#allocation50_spill] sm:$0xff] }
 0x18a   : > { %v11392_v34 = vld [vmem:[#allocation51_spill] sm:$0xff]  ;;  %8034 = vmatpush3.bf16.msra.mxu0 %v9445_v45 }
 0x18b   : > { %v2064_v58 = vadd.f32 %v6556_v56, %v1917_v47  ;;  %8066 = vmatpush3.bf16.msra.mxu1 %v11388_v37  ;;  %v3436_v47 = vsel %vm3432_vm15, %v11389_v51, 0.0  ;;  %v3438_v56 = vsel %vm3434_vm5, %v9880_v27, 0.0  ;;  %8036 = vmatprep.subr.bf16.mxu0 %v11253_v41 }
 0x18c   : > { %8068 = vmatprep.subr.bf16.mxu1 %v11390_v15  ;;  %v10328_v20 = vand.u32 4294901760, %v3436_v47  ;;  %v11396_v15 = vld [vmem:[#allocation39_spill] sm:$0xff] }
 0x18d   : > { %v10315_v48 = vadd.f32 %v6594_v4, %v2064_v58  ;;  %v3439_v4 = vsel %vm3435_vm3, %v9877_v7, 0.0  ;;  %v10342_v7 = vand.u32 4294901760, %v3438_v56  ;;  %vm5345_vm3 = vcmp.eq.f32.partialorder %v10141_v25, 3.0 }
 0x18e   : > { %v10333_v10 = vand.u32 4294901760, %v3439_v4  ;;  %v10338_v58 = vsub.f32 %v3436_v47, %v10328_v20  ;;  %8038 = vmatpush3.bf16.msra.mxu0 %v11276_v40 }
 0x18f   : > { %8070 = vmatpush3.bf16.msra.mxu1 %v11391_v62  ;;  %11394 = vst [vmem:[#allocation43_spill] sm:$0xff] %v10342_v7  ;;  %v11395_v62 = vld [vmem:[#allocation41_spill] sm:$0xff]  ;;  %8040 = vmatprep.subr.bf16.mxu0 %v9655_v60 }
 0x190   : > { %8072 = vmatprep.subr.bf16.mxu1 %v11392_v34  ;;  %v10346_v16 = vsub.f32 %v3439_v4, %v10333_v10  ;;  %v11106_v47 = vand.u32 4294901760, %v10338_v58 }
 0x192   : > { %8042 = vmatpush3.bf16.msra.mxu0 %v9672_v42 }
 0x193   : > { %8074 = vmatpush3.bf16.msra.mxu1 %v11393_v50  ;;  %v10353_v50 = vsub.f32 %v3438_v56, %v10342_v7  ;;  %v3545_v56 = vsub.f32 %v10338_v58, %v11106_v47  ;;  %8044 = vmatprep.subr.bf16.mxu0 %v9793_v11  ;;  %v11397_v47 = vand.u32 4294901760, %v10285_v49 }
 0x194   : > { %8076 = vmatprep.subr.bf16.mxu1 %v11395_v62  ;;  %v11107_v62 = vand.u32 4294901760, %v10346_v16 }
 0x196   : > { %8046 = vmatpush3.bf16.msra.mxu0 %v9824_v35 }
 0x197   : > { %8078 = vmatpush3.bf16.msra.mxu1 %v11396_v15  ;;  %v3554_v15 = vsub.f32 %v10346_v16, %v11107_v62  ;;  %8080 = vmatprep.subr.bf16.mxu0 %v11398_v43 }
 0x198   : > { %8112 = vmatprep.subr.bf16.mxu1 %v11289_v55 }
 0x199   : > { %v3555_v62 = vand.u32 4294901760, %v3554_v15  ;;  %v11401_v15 = vmov 0.0  }
 0x19a   : > { %3794 = vmatmul.mubr.f32.vlgmr.msra.gmra.mrb[28].mxu1 %v10328_v20 }
 0x19b   : > { %v6665_v34 = vpop.f32.mrb[12].mxu1  ;;  %3799 = vmatprep.mubr.f32.mxu1 %v10333_v10  ;;  %8114 = vmatpush3.bf16.msra.mxu1 %v11291_v9 }
 0x19c   : > { %v6666_v27 = vpop.f32.mrb[13].mxu1  ;;  %8116 = vmatprep.subr.bf16.mxu1 %v11293_v18 }
 0x19d   : > { %v6667_v51 = vadd.f32 %v6666_v27, %v6665_v34  ;;  %v3559_v27 = vand.u32 4294901760, %v10353_v50 }
 0x19e   : > { %3801 = vmatmul.mubr.f32.gmra.mrb[30].mxu1 %v10342_v7 }
 0x19f   : > { %v6668_v4 = vpop.f32.mrb[14].mxu1  ;;  %8118 = vmatpush3.bf16.msra.mxu1 %v11295_v8  ;;  %4052 = vmatprep.mubr.f32.mxu1 %v11397_v47 }
 0x1a0   : > { %v6669_v37 = vpop.f32.mrb[15].mxu1  ;;  %8120 = vmatprep.subr.bf16.mxu1 %v11296_v29 }
 0x1a1   : > { %v6670_v34 = vadd.f32 %v6669_v37, %v6668_v4  ;;  %v3546_v37 = vand.u32 4294901760, %v3545_v56  ;;  %v3560_v4 = vsub.f32 %v10353_v50, %v3559_v27 }
 0x1a3   : > { %v6627_v12 = vpop.f32.mrb[12].mxu0  ;;  %3547 = vmatmul.mubr.f32.vlgmr.msra.gmra.mrb[28].mxu0 %v3546_v37  ;;  %8122 = vmatpush3.bf16.msra.mxu1 %v9339_v32  ;;  %v3561_v47 = vand.u32 4294901760, %v3560_v4  ;;  %v11407_v37 = vand.u32 4294901760, %v10346_v16 }
 0x1a4   : > { %v6628_v22 = vpop.f32.mrb[13].mxu0  ;;  %3556 = vmatprep.mubr.f32.mxu0 %v3555_v62  ;;  %8082 = vmatpush3.bf16.msra.mxu0 %v9888_v63 }
 0x1a5   : > { %v6629_v2 = vadd.f32 %v6628_v22, %v6627_v12  ;;  %8084 = vmatprep.subr.bf16.mxu0 %v9895_v36  ;;  %v11400_v22 = vld [vmem:[#allocation7_spill] sm:$0xff]  ;;  %8124 = vmatprep.subr.bf16.mxu1 %v9368_v61 }
 0x1a6   : > { %vm4358_vm6 = vcmp.eq.f32.partialorder %v11400_v22, 1.0  ;;  %v11419_v22 = vld [vmem:[#allocation20_spill] sm:$0xff] }
 0x1a7   : > { %v2351_v17 = vadd.f32 %v6629_v2, %v10308_v24  ;;  %v6630_v46 = vpop.f32.mrb[14].mxu0  ;;  %v6430_v24 = vsel %vm4358_vm6, 1.0, %v11401_v15  ;;  %3562 = vmatmul.mubr.f32.gmra.mrb[30].mxu0 %v3561_v47  ;;  %8126 = vmatpush3.bf16.msra.mxu1 %v9372_v52 }
 0x1a8   : > { %v6631_v7 = vpop.f32.mrb[15].mxu0  ;;  %v4364_v62 = vsel %vm319_vm0, %v6430_v24, 0.0  ;;  %8086 = vmatpush3.bf16.msra.mxu0 %v9911_v5  ;;  %3936 = vmatprep.mubr.f32.mxu0 %v10285_v49  ;;  %v10414_v49 = vpop.xlane.xlu0 %3409 }
 0x1a9   : > { %v10384_v56 = vadd.f32 %v6667_v51, %v2351_v17  ;;  %v6632_v12 = vadd.f32 %v6631_v7, %v6630_v46  ;;  %8088 = vmatprep.subr.bf16.mxu0 %v9918_v21  ;;  %v11403_v46 = vld [vmem:[#allocation9_spill] sm:$0xff]  ;;  %8128 = vmatprep.subr.bf16.mxu1 %v9429_v13  ;;  %11404 = vst [vmem:[#allocation45_spill] sm:$0xff] %v10414_v49 }
 0x1aa   : > { %vm4359_vm7 = vcmp.eq.f32.partialorder %v11403_v46, 1.0  ;;  %4365 = vadd.xlane.f32.xlu1 %v4364_v62  ;;  %vm5315_vm15 = vcmp.eq.f32.partialorder %v11403_v46, 2.0 }
 0x1ab   : > { %11399 = vst [vmem:[#allocation44_spill] sm:$0xff] %v10384_v56  ;;  %v2358_v2 = vadd.f32 %v6632_v12, %v10315_v48  ;;  %v6431_v17 = vsel %vm4359_vm7, 1.0, %v11401_v15  ;;  %8130 = vmatpush3.bf16.msra.mxu1 %v9445_v45  ;;  %v11411_v12 = vld [vmem:[#allocation19_spill] sm:$0xff]  ;;  %v11425_v56 = vld [vmem:[#allocation26_spill] sm:$0xff] }
 0x1ac   : > { %v4367_v48 = vsel %vm319_vm0, %v6431_v17, 0.0  ;;  %8090 = vmatpush3.bf16.msra.mxu0 %v9927_v28  ;;  %8132 = vmatprep.subr.bf16.mxu1 %v11253_v41  ;;  %v10423_v51 = vpop.xlane.xlu0 %3412  ;;  %v11413_v17 = vld [vmem:[#allocation23_spill] sm:$0xff] }
 0x1ad   : > { %v10397_v7 = vadd.f32 %v6670_v34, %v2358_v2  ;;  %8092 = vmatprep.subr.bf16.mxu0 %v9933_v38  ;;  %11405 = vst [vmem:[#allocation37_spill] sm:$0xff] %v10423_v51  ;;  %v11406_v34 = vand.u32 4294901760, %v10338_v58  ;;  %v11412_v2 = vld [vmem:[#allocation11_spill] sm:$0xff] }
 0x1ae   : > { %4368 = vadd.xlane.f32.xlu1 %v4367_v48  ;;  %v4393_v62 = vsel %vm4389_vm9, %v11412_v2, 0.0  ;;  %v11414_v48 = vld [vmem:[#allocation25_spill] sm:$0xff]  ;;  %v11423_v51 = vld [vmem:[#allocation31_spill] sm:$0xff] }
 0x1af   : > { %11402 = vst [vmem:[#allocation60_spill] sm:$0xff] %v10397_v7  ;;  %8134 = vmatpush3.bf16.msra.mxu1 %v11276_v40 }
 0x1b0   : > { %8094 = vmatpush3.bf16.msra.mxu0 %v9939_v30  ;;  %8136 = vmatprep.subr.bf16.mxu1 %v9655_v60  ;;  %v10436_v4 = vpop.xlane.xlu0 %5321 }
 0x1b1   : > { %8096 = vmatprep.subr.bf16.mxu0 %v9945_v19  ;;  %11408 = vst [vmem:[#allocation10_spill] sm:$0xff] %v10436_v4  ;;  %v11418_v4 = vld [vmem:[#allocation36_spill] sm:$0xff] }
 0x1b3   : > { %8138 = vmatpush3.bf16.msra.mxu1 %v9672_v42 }
 0x1b4   : > { %8098 = vmatpush3.bf16.msra.mxu0 %v9951_v59  ;;  %8140 = vmatprep.subr.bf16.mxu1 %v9793_v11 }
 0x1b5   : > { %8100 = vmatprep.subr.bf16.mxu0 %v9957_v14 }
 0x1b7   : > { %8142 = vmatpush3.bf16.msra.mxu1 %v9824_v35 }
 0x1b8   : > { %8102 = vmatpush3.bf16.msra.mxu0 %v9963_v3  ;;  %8176 = vmatprep.subr.bf16.mxu1 %v11289_v55 }
 0x1b9   : > { %8104 = vmatprep.subr.bf16.mxu0 %v9969_v0 }
 0x1ba   : > { %4056 = vmatmul.mubr.f32.vlgmr.msra.gmra.mrb[32].mxu1 %v11406_v34 }
 0x1bb   : > { %4063 = vmatprep.mubr.f32.mxu1 %v11407_v37  ;;  %8178 = vmatpush3.bf16.msra.mxu1 %v11291_v9  ;;  %v10470_v37 = vand.u32 4294901760, %v4393_v62 }
 0x1bc   : > { %8106 = vmatpush3.bf16.msra.mxu0 %v9975_v26  ;;  %8180 = vmatprep.subr.bf16.mxu1 %v11293_v18 }
 0x1bd   : > { %8108 = vmatprep.subr.bf16.mxu0 %v9981_v54 }
 0x1be   : > { %4067 = vmatmul.mubr.f32.gmra.mrb[34].mxu1 %v3559_v27  ;;  %v10448_v27 = vpop.xlane.xlu0 %6277 }
 0x1bf   : > { %8182 = vmatpush3.bf16.msra.mxu1 %v11295_v8  ;;  %4344 = vmatprep.mubr.f32.mxu1 %v10278_v39  ;;  %11409 = vst [vmem:[#allocation42_spill] sm:$0xff] %v10448_v27  ;;  %v11416_v27 = vld [vmem:[#allocation38_spill] sm:$0xff] }
 0x1c0   : > { %8110 = vmatpush3.bf16.msra.mxu0 %v9990_v6  ;;  %8184 = vmatprep.subr.bf16.mxu1 %v11296_v29 }
 0x1c1   : > { %8144 = vmatprep.subr.bf16.mxu0 %v11363_v33 }
 0x1c3   : > { %3939 = vmatmul.mubr.f32.vlgmr.msra.gmra.mrb[32].mxu0 %v10338_v58  ;;  %8186 = vmatpush3.bf16.msra.mxu1 %v9339_v32 }
 0x1c4   : > { %3945 = vmatprep.mubr.f32.mxu0 %v10346_v16  ;;  %8146 = vmatpush3.bf16.msra.mxu0 %v11364_v53  ;;  %v1490_v16 = vpop.xlane.xlu0 %1489 }
 0x1c5   : > { %8148 = vmatprep.subr.bf16.mxu0 %v11365_v23  ;;  %8188 = vmatprep.subr.bf16.mxu1 %v9368_v61  ;;  %v1491_v58 = vrot.slane %v1490_v16, 4 }
 0x1c7   : > { %3948 = vmatmul.mubr.f32.gmra.mrb[34].mxu0 %v10353_v50  ;;  %8190 = vmatpush3.bf16.msra.mxu1 %v9372_v52  ;;  %v1492_v50 = vadd.f32 %v1491_v58, %v1490_v16  ;;  %v11415_v58 = vld [vmem:[#allocation28_spill] sm:$0xff] }
 0x1c8   : > { %8150 = vmatpush3.bf16.msra.mxu0 %v11366_v57  ;;  %4233 = vmatprep.mubr.f32.mxu0 %v10278_v39  ;;  %v11410_v39 = vld [vmem:[#allocation18_spill] sm:$0xff] }
 0x1c9   : > { %8152 = vmatprep.subr.bf16.mxu0 %v11367_v1  ;;  %8192 = vmatprep.subr.bf16.mxu1 %v9429_v13  ;;  %v1493_v47 = vrot.slane %v1492_v50, 2 }
 0x1cb   : > { %8194 = vmatpush3.bf16.msra.mxu1 %v9445_v45  ;;  %v1494_v24 = vadd.f32 %v1493_v47, %v1492_v50  ;;  %v11417_v50 = vld [vmem:[#allocation17_spill] sm:$0xff]  ;;  %v10477_v47 = vsub.f32 %v4393_v62, %v10470_v37  ;;  %v11424_v62 = vld [vmem:[#allocation24_spill] sm:$0xff] }
 0x1cc   : > { %8154 = vmatpush3.bf16.msra.mxu0 %v11368_v44  ;;  %8196 = vmatprep.subr.bf16.mxu1 %v11253_v41 }
 0x1cd   : > { %8156 = vmatprep.subr.bf16.mxu0 %v11369_v31  ;;  %v1495_v34 = vrot.slane %v1494_v24, 1  ;;  %v4494_v7 = vand.u32 4294901760, %v10477_v47 }
 0x1cf   : > { %8198 = vmatpush3.bf16.msra.mxu1 %v11276_v40  ;;  %v1496_v16 = vadd.f32 %v1495_v34, %v1494_v24  ;;  %v11420_v24 = vld [vmem:[#allocation58_spill] sm:$0xff]  ;;  %v4495_v49 = vsub.f32 %v10477_v47, %v4494_v7 }
 0x1d0   : > { %8158 = vmatpush3.bf16.msra.mxu0 %v11410_v39  ;;  %8200 = vmatprep.subr.bf16.mxu1 %v9655_v60  ;;  %v11421_v34 = vld [vmem:[#allocation22_spill] sm:$0xff] }
 0x1d1   : > { %8160 = vmatprep.subr.bf16.mxu0 %v11411_v12  ;;  %8631 = vpush %v1496_v16  ;;  %v11422_v16 = vld [vmem:[#allocation43_spill] sm:$0xff] }
 0x1d3   : > { %8202 = vmatpush3.bf16.msra.mxu1 %v9672_v42 }
 0x1d4   : > { %8162 = vmatpush3.bf16.msra.mxu0 %v11413_v17  ;;  %8204 = vmatprep.subr.bf16.mxu1 %v9793_v11 }
 0x1d5   : > { %8164 = vmatprep.subr.bf16.mxu0 %v11414_v48 }
 0x1d7   : > { %8206 = vmatpush3.bf16.msra.mxu1 %v9824_v35 }
 0x1d8   : > { %8166 = vmatpush3.bf16.msra.mxu0 %v11415_v58  ;;  %8240 = vmatprep.subr.bf16.mxu1 %v11417_v50 }
 0x1d9   : > { %8168 = vmatprep.subr.bf16.mxu0 %v11416_v27 }
 0x1da   : > { %4346 = vmatmul.mubr.f32.vlgmr.msra.gmra.mrb[36].mxu1 %v10328_v20 }
 0x1db   : > { %4351 = vmatprep.mubr.f32.mxu1 %v10333_v10  ;;  %8242 = vmatpush3.bf16.msra.mxu1 %v11419_v22 }
 0x1dc   : > { %8170 = vmatpush3.bf16.msra.mxu0 %v11418_v4  ;;  %8244 = vmatprep.subr.bf16.mxu1 %v11421_v34  ;;  %v11426_v34 = vld [vmem:[#allocation27_spill] sm:$0xff]  ;;  %v11440_v4 = vld [vmem:[#allocation13_spill] sm:$0xff] }
 0x1dd   : > { %8172 = vmatprep.subr.bf16.mxu0 %v11420_v24  ;;  %v11431_v24 = vld [vmem:[#allocation35_spill] sm:$0xff] }
 0x1de   : > { %4353 = vmatmul.mubr.f32.gmra.mrb[38].mxu1 %v11422_v16  ;;  %vm4391_vm10 = vcmp.eq.f32.partialorder %v11431_v24, 2.0  ;;  %v11438_v24 = vld [vmem:[#allocation51_spill] sm:$0xff] }
 0x1df   : > { %8246 = vmatpush3.bf16.msra.mxu1 %v11424_v62  ;;  %4748 = vmatprep.mubr.f32.mxu1 %v10470_v37  ;;  %v4496_v62 = vand.u32 4294901760, %v4495_v49  ;;  %v11433_v49 = vld [vmem:[#allocation59_spill] sm:$0xff] }
 0x1e0   : > { %8174 = vmatpush3.bf16.msra.mxu0 %v11423_v51  ;;  %8248 = vmatprep.subr.bf16.mxu1 %v11425_v56  ;;  %v11427_v51 = vld [vmem:[#allocation29_spill] sm:$0xff]  ;;  %v11428_v56 = vld [vmem:[#allocation34_spill] sm:$0xff] }
 0x1e1   : > { %8208 = vmatprep.subr.bf16.mxu0 %v11289_v55 }
 0x1e3   : > { %4235 = vmatmul.mubr.f32.vlgmr.msra.gmra.mrb[36].mxu0 %v10328_v20  ;;  %8250 = vmatpush3.bf16.msra.mxu1 %v11426_v34  ;;  %v11429_v20 = vld [vmem:[#allocation46_spill] sm:$0xff]  ;;  %v11432_v34 = vld [vmem:[#allocation47_spill] sm:$0xff] }
 0x1e4   : > { %4240 = vmatprep.mubr.f32.mxu0 %v10333_v10  ;;  %8210 = vmatpush3.bf16.msra.mxu0 %v11291_v9  ;;  %v11430_v10 = vld [vmem:[#allocation30_spill] sm:$0xff] }
 0x1e5   : > { %8212 = vmatprep.subr.bf16.mxu0 %v11293_v18  ;;  %8252 = vmatprep.subr.bf16.mxu1 %v11427_v51  ;;  %vm4388_vm14 = vcmp.eq.f32.partialorder %v11430_v10, 2.0  ;;  %v11434_v51 = vld [vmem:[#allocation49_spill] sm:$0xff]  ;;  %v11437_v10 = vld [vmem:[#allocation50_spill] sm:$0xff] }
 0x1e7   : > { %4242 = vmatmul.mubr.f32.gmra.mrb[38].mxu0 %v11422_v16  ;;  %8254 = vmatpush3.bf16.msra.mxu1 %v11428_v56  ;;  %v4392_v16 = vsel %vm4388_vm14, %v11433_v49, 0.0  ;;  %v11436_v56 = vld [vmem:[#allocation12_spill] sm:$0xff] }
 0x1e8   : > { %8214 = vmatpush3.bf16.msra.mxu0 %v11295_v8  ;;  %4497 = vmatprep.mubr.f32.mxu0 %v4496_v62  ;;  %v11435_v62 = vld [vmem:[#allocation32_spill] sm:$0xff]  ;;  %v4395_v22 = vsel %vm4391_vm10, %v11436_v56, 0.0  ;;  %v11441_v56 = vld [vmem:[#allocation33_spill] sm:$0xff]  ;;  %vm6271_vm10 = vcmp.eq.f32.partialorder %v11403_v46, 3.0 }
 0x1e9   : > { %8216 = vmatprep.subr.bf16.mxu0 %v11296_v29  ;;  %8256 = vmatprep.subr.bf16.mxu1 %v11429_v20  ;;  %vm4390_vm11 = vcmp.eq.f32.partialorder %v11435_v62, 2.0  ;;  %v10514_v20 = vand.u32 4294901760, %v4392_v16 }
 0x1ea   : > { %v4394_v49 = vsel %vm4390_vm11, %v11440_v4, 0.0 }
 0x1eb   : > { %8258 = vmatpush3.bf16.msra.mxu1 %v11432_v34  ;;  %v10519_v34 = vand.u32 4294901760, %v4395_v22  ;;  %v10524_v62 = vsub.f32 %v4392_v16, %v10514_v20 }
 0x1ec   : > { %8218 = vmatpush3.bf16.msra.mxu0 %v9339_v32  ;;  %8260 = vmatprep.subr.bf16.mxu1 %v11434_v51  ;;  %v10528_v51 = vand.u32 4294901760, %v4394_v49 }
 0x1ed   : > { %8220 = vmatprep.subr.bf16.mxu0 %v9368_v61  ;;  %11439 = vst [vmem:[#allocation52_spill] sm:$0xff] %v10519_v34  ;;  %v10532_v50 = vsub.f32 %v4395_v22, %v10519_v34  ;;  %v11111_v16 = vand.u32 4294901760, %v10524_v62 }
 0x1ee   : > { %v10539_v4 = vsub.f32 %v4394_v49, %v10528_v51 }
 0x1ef   : > { %8262 = vmatpush3.bf16.msra.mxu1 %v11437_v10  ;;  %v11442_v10 = vld [vmem:[#allocation41_spill] sm:$0xff]  ;;  %v4501_v22 = vsub.f32 %v10524_v62, %v11111_v16 }
 0x1f0   : > { %8222 = vmatpush3.bf16.msra.mxu0 %v9372_v52  ;;  %8264 = vmatprep.subr.bf16.mxu1 %v11438_v24  ;;  %v11443_v24 = vld [vmem:[#allocation39_spill] sm:$0xff] }
 0x1f1   : > { %8224 = vmatprep.subr.bf16.mxu0 %v9429_v13 }
 0x1f3   : > { %8266 = vmatpush3.bf16.msra.mxu1 %v11441_v56  ;;  %v11114_v56 = vand.u32 4294901760, %v10532_v50 }
 0x1f4   : > { %8226 = vmatpush3.bf16.msra.mxu0 %v9445_v45  ;;  %8268 = vmatprep.subr.bf16.mxu1 %v11442_v10  ;;  %v4502_v10 = vand.u32 4294901760, %v4501_v22 }
 0x1f5   : > { %8228 = vmatprep.subr.bf16.mxu0 %v11253_v41  ;;  %v4510_v49 = vsub.f32 %v10532_v50, %v11114_v56 }
 0x1f7   : > { %8270 = vmatpush3.bf16.msra.mxu1 %v11443_v24  ;;  %v11115_v24 = vand.u32 4294901760, %v10539_v4 }
 0x1f8   : > { %8230 = vmatpush3.bf16.msra.mxu0 %v11276_v40  ;;  %8304 = vmatprep.subr.bf16.mxu1 %v11289_v55 }
 0x1f9   : > { %8232 = vmatprep.subr.bf16.mxu0 %v9655_v60  ;;  %v4516_v16 = vsub.f32 %v10539_v4, %v11115_v24 }
 0x1fa   : > { %4750 = vmatmul.mubr.f32.vlgmr.msra.gmra.mrb[40].mxu1 %v10514_v20 }
 0x1fb   : > { %4755 = vmatprep.mubr.f32.mxu1 %v10519_v34  ;;  %8306 = vmatpush3.bf16.msra.mxu1 %v11291_v9  ;;  %v4511_v34 = vand.u32 4294901760, %v4510_v49  ;;  %v4517_v56 = vand.u32 4294901760, %v4516_v16 }
 0x1fc   : > { %8234 = vmatpush3.bf16.msra.mxu0 %v9672_v42  ;;  %8308 = vmatprep.subr.bf16.mxu1 %v11293_v18 }
 0x1fd   : > { %8236 = vmatprep.subr.bf16.mxu0 %v9793_v11 }
 0x1fe   : > { %4757 = vmatmul.mubr.f32.gmra.mrb[42].mxu1 %v10528_v51 }
 0x1ff   : > { %8310 = vmatpush3.bf16.msra.mxu1 %v11295_v8  ;;  %5008 = vmatprep.mubr.f32.mxu1 %v4494_v7  ;;  %v6433_v7 = vsel %vm5315_vm15, 1.0, %v11401_v15 }
 0x200   : > { %8238 = vmatpush3.bf16.msra.mxu0 %v9824_v35  ;;  %8312 = vmatprep.subr.bf16.mxu1 %v11296_v29 }
 0x201   : > { %8272 = vmatprep.subr.bf16.mxu0 %v11398_v43 }
 0x202   : > { %s8632_s30 = spop %8631 }
 0x203   : > { %4503 = vmatmul.mubr.f32.vlgmr.msra.gmra.mrb[40].mxu0 %v4502_v10  ;;  %8314 = vmatpush3.bf16.msra.mxu1 %v9339_v32 }
 0x204   : > { %4512 = vmatprep.mubr.f32.mxu0 %v4511_v34  ;;  %8274 = vmatpush3.bf16.msra.mxu0 %v9888_v63  ;;  %v5323_v34 = vsel %vm319_vm0, %v6433_v7, 0.0 }
 0x205   : > { %8276 = vmatprep.subr.bf16.mxu0 %v9895_v36  ;;  %8316 = vmatprep.subr.bf16.mxu1 %v9368_v61 }
 0x206   : > { %5324 = vadd.xlane.f32.xlu1 %v5323_v34 }
 0x207   : > { %4518 = vmatmul.mubr.f32.gmra.mrb[42].mxu0 %v4517_v56  ;;  %8318 = vmatpush3.bf16.msra.mxu1 %v9372_v52  ;;  %v6741_v56 = vpop.f32.mrb[16].mxu1 }
 0x208   : > { %8278 = vmatpush3.bf16.msra.mxu0 %v9911_v5  ;;  %4892 = vmatprep.mubr.f32.mxu0 %v10477_v47  ;;  %v6742_v47 = vpop.f32.mrb[17].mxu1 }
 0x209   : > { %8280 = vmatprep.subr.bf16.mxu0 %v9918_v21  ;;  %8320 = vmatprep.subr.bf16.mxu1 %v9429_v13  ;;  %v6743_v10 = vadd.f32 %v6742_v47, %v6741_v56  ;;  %v6744_v16 = vpop.f32.mrb[18].mxu1 }
 0x20a   : > { %v6745_v22 = vpop.f32.mrb[19].mxu1 }
 0x20b   : > { %8322 = vmatpush3.bf16.msra.mxu1 %v9445_v45  ;;  %v6746_v49 = vadd.f32 %v6745_v22, %v6744_v16  ;;  %v11444_v22 = vand.u32 4294901760, %v10524_v62 }
 0x20c   : > { %8282 = vmatpush3.bf16.msra.mxu0 %v9927_v28  ;;  %8324 = vmatprep.subr.bf16.mxu1 %v11253_v41  ;;  %v6703_v7 = vpop.f32.mrb[16].mxu0 }
 0x20d   : > { %8284 = vmatprep.subr.bf16.mxu0 %v9933_v38  ;;  %v6704_v34 = vpop.f32.mrb[17].mxu0 }
 0x20e   : > { %v6705_v56 = vadd.f32 %v6704_v34, %v6703_v7 }
 0x20f   : > { %8326 = vmatpush3.bf16.msra.mxu1 %v11276_v40 }
 0x210   : > { %8286 = vmatpush3.bf16.msra.mxu0 %v9939_v30  ;;  %8328 = vmatprep.subr.bf16.mxu1 %v9655_v60  ;;  %v2840_v47 = vadd.f32 %v6743_v10, %v6705_v56  ;;  %v6706_v24 = vpop.f32.mrb[18].mxu0  ;;  %v11446_v10 = vand.u32 4294901760, %v10539_v4 }
 0x211   : > { %8288 = vmatprep.subr.bf16.mxu0 %v9945_v19  ;;  %v6707_v16 = vpop.f32.mrb[19].mxu0 }
 0x213   : > { %8330 = vmatpush3.bf16.msra.mxu1 %v9672_v42 }
 0x214   : > { %8290 = vmatpush3.bf16.msra.mxu0 %v9951_v59  ;;  %8332 = vmatprep.subr.bf16.mxu1 %v9793_v11  ;;  %v11445_v59 = vand.u32 4294901760, %v10532_v50 }
 0x215   : > { %8292 = vmatprep.subr.bf16.mxu0 %v9957_v14  ;;  %v6708_v14 = vadd.f32 %v6707_v16, %v6706_v24  ;;  %v5349_v24 = vsel %vm5345_vm3, %v11412_v2, 0.0 }
 0x217   : > { %8334 = vmatpush3.bf16.msra.mxu1 %v9824_v35  ;;  %v2847_v7 = vadd.f32 %v6746_v49, %v6708_v14  ;;  %v10635_v49 = vand.u32 4294901760, %v5349_v24 }
 0x218   : > { %8294 = vmatpush3.bf16.msra.mxu0 %v9963_v3  ;;  %8368 = vmatprep.subr.bf16.mxu1 %v11289_v55 }
 0x219   : > { %8296 = vmatprep.subr.bf16.mxu0 %v9969_v0 }
 0x21a   : > { %5012 = vmatmul.mubr.f32.vlgmr.msra.gmra.mrb[44].mxu1 %v11444_v22  ;;  %v11447_v22 = vld [vmem:[#allocation17_spill] sm:$0xff] }
 0x21b   : > { %5019 = vmatprep.mubr.f32.mxu1 %v11445_v59  ;;  %8370 = vmatpush3.bf16.msra.mxu1 %v11291_v9 }
 0x21c   : > { %8298 = vmatpush3.bf16.msra.mxu0 %v9975_v26  ;;  %8372 = vmatprep.subr.bf16.mxu1 %v11293_v18 }
 0x21d   : > { %8300 = vmatprep.subr.bf16.mxu0 %v9981_v54 }
 0x21e   : > { %5023 = vmatmul.mubr.f32.gmra.mrb[46].mxu1 %v11446_v10  ;;  %v10642_v10 = vsub.f32 %v5349_v24, %v10635_v49 }
 0x21f   : > { %8374 = vmatpush3.bf16.msra.mxu1 %v11295_v8  ;;  %5300 = vmatprep.mubr.f32.mxu1 %v10470_v37 }
 0x220   : > { %8302 = vmatpush3.bf16.msra.mxu0 %v9990_v6  ;;  %8376 = vmatprep.subr.bf16.mxu1 %v11296_v29  ;;  %v11119_v24 = vand.u32 4294901760, %v10642_v10 }
 0x221   : > { %8336 = vmatprep.subr.bf16.mxu0 %v11363_v33 }
 0x223   : > { %4895 = vmatmul.mubr.f32.vlgmr.msra.gmra.mrb[44].mxu0 %v10524_v62  ;;  %8378 = vmatpush3.bf16.msra.mxu1 %v9339_v32 }
 0x224   : > { %4901 = vmatprep.mubr.f32.mxu0 %v10532_v50  ;;  %8338 = vmatpush3.bf16.msra.mxu0 %v11364_v53  ;;  %v6817_v59 = vpop.f32.mrb[20].mxu1 }
 0x225   : > { %8340 = vmatprep.subr.bf16.mxu0 %v11365_v23  ;;  %8380 = vmatprep.subr.bf16.mxu1 %v9368_v61  ;;  %v6818_v14 = vpop.f32.mrb[21].mxu1 }
 0x227   : > { %4904 = vmatmul.mubr.f32.gmra.mrb[46].mxu0 %v10539_v4  ;;  %8382 = vmatpush3.bf16.msra.mxu1 %v9372_v52  ;;  %v6819_v4 = vadd.f32 %v6818_v14, %v6817_v59 }
 0x228   : > { %8342 = vmatpush3.bf16.msra.mxu0 %v11366_v57  ;;  %5189 = vmatprep.mubr.f32.mxu0 %v10470_v37  ;;  %v6820_v37 = vpop.f32.mrb[22].mxu1 }
 0x229   : > { %8344 = vmatprep.subr.bf16.mxu0 %v11367_v1  ;;  %8384 = vmatprep.subr.bf16.mxu1 %v9429_v13  ;;  %v6821_v50 = vpop.f32.mrb[23].mxu1 }
 0x22a   : > { %v6822_v62 = vadd.f32 %v6821_v50, %v6820_v37  ;;  %v11448_v37 = vld [vmem:[#allocation36_spill] sm:$0xff] }
 0x22b   : > { %8386 = vmatpush3.bf16.msra.mxu1 %v9445_v45 }
 0x22c   : > { %8346 = vmatpush3.bf16.msra.mxu0 %v11368_v44  ;;  %8388 = vmatprep.subr.bf16.mxu1 %v11253_v41  ;;  %v6779_v25 = vpop.f32.mrb[20].mxu0 }
 0x22d   : > { %8348 = vmatprep.subr.bf16.mxu0 %v11369_v31  ;;  %v6780_v34 = vpop.f32.mrb[21].mxu0 }
 0x22e   : > { %v6781_v56 = vadd.f32 %v6780_v34, %v6779_v25  ;;  %v11449_v25 = vld [vmem:[#allocation52_spill] sm:$0xff] }
 0x22f   : > { %8390 = vmatpush3.bf16.msra.mxu1 %v11276_v40  ;;  %v11450_v34 = vld [vmem:[#allocation20_spill] sm:$0xff] }
 0x230   : > { %8350 = vmatpush3.bf16.msra.mxu0 %v11410_v39  ;;  %8392 = vmatprep.subr.bf16.mxu1 %v9655_v60  ;;  %v2985_v2 = vadd.f32 %v6781_v56, %v2840_v47  ;;  %v6782_v16 = vpop.f32.mrb[22].mxu0  ;;  %v11451_v47 = vld [vmem:[#allocation58_spill] sm:$0xff] }
 0x231   : > { %8352 = vmatprep.subr.bf16.mxu0 %v11411_v12  ;;  %v6783_v59 = vpop.f32.mrb[23].mxu0  ;;  %v11452_v56 = vld [vmem:[#allocation22_spill] sm:$0xff] }
 0x232   : > { %v6784_v14 = vadd.f32 %v6783_v59, %v6782_v16  ;;  %v10646_v50 = vadd.f32 %v6819_v4, %v2985_v2  ;;  %v11453_v16 = vld [vmem:[#allocation31_spill] sm:$0xff]  ;;  %v11454_v59 = vld [vmem:[#allocation24_spill] sm:$0xff]  ;;  %v11455_v4 = vld [vmem:[#allocation26_spill] sm:$0xff] }
 0x233   : > { %8394 = vmatpush3.bf16.msra.mxu1 %v9672_v42 }
 0x234   : > { %8354 = vmatpush3.bf16.msra.mxu0 %v11413_v17  ;;  %8396 = vmatprep.subr.bf16.mxu1 %v9793_v11 }
 0x235   : > { %8356 = vmatprep.subr.bf16.mxu0 %v11414_v48 }
 0x237   : > { %8398 = vmatpush3.bf16.msra.mxu1 %v9824_v35 }
 0x238   : > { %8358 = vmatpush3.bf16.msra.mxu0 %v11415_v58  ;;  %8432 = vmatprep.subr.bf16.mxu1 %v11447_v22 }
 0x239   : > { %8360 = vmatprep.subr.bf16.mxu0 %v11416_v27  ;;  %v2994_v27 = vadd.f32 %v6784_v14, %v2847_v7  ;;  %v5451_v7 = vsub.f32 %v10642_v10, %v11119_v24  ;;  %v11458_v14 = vld [vmem:[#allocation34_spill] sm:$0xff] }
 0x23a   : > { %5302 = vmatmul.mubr.f32.vlgmr.msra.gmra.mrb[48].mxu1 %v10514_v20 }
 0x23b   : > { %5307 = vmatprep.mubr.f32.mxu1 %v11449_v25  ;;  %8434 = vmatpush3.bf16.msra.mxu1 %v11450_v34  ;;  %v10655_v22 = vadd.f32 %v6822_v62, %v2994_v27  ;;  %v11456_v27 = vld [vmem:[#allocation27_spill] sm:$0xff]  ;;  %v11457_v62 = vld [vmem:[#allocation29_spill] sm:$0xff]  ;;  %v5452_v2 = vand.u32 4294901760, %v5451_v7 }
 0x23c   : > { %8362 = vmatpush3.bf16.msra.mxu0 %v11448_v37  ;;  %8436 = vmatprep.subr.bf16.mxu1 %v11452_v56  ;;  %v11461_v34 = vld [vmem:[#allocation35_spill] sm:$0xff] }
 0x23d   : > { %8364 = vmatprep.subr.bf16.mxu0 %v11451_v47  ;;  %vm5347_vm9 = vcmp.eq.f32.partialorder %v11461_v34, 3.0  ;;  %v11462_v56 = vld [vmem:[#allocation47_spill] sm:$0xff]  ;;  %v11469_v47 = vld [vmem:[#allocation50_spill] sm:$0xff] }
 0x23e   : > { %5309 = vmatmul.mubr.f32.gmra.mrb[50].mxu1 %v10528_v51 }
 0x23f   : > { %8438 = vmatpush3.bf16.msra.mxu1 %v11454_v59  ;;  %5704 = vmatprep.mubr.f32.mxu1 %v10635_v49 }
 0x240   : > { %8366 = vmatpush3.bf16.msra.mxu0 %v11453_v16  ;;  %8440 = vmatprep.subr.bf16.mxu1 %v11455_v4  ;;  %v11464_v4 = vld [vmem:[#allocation45_spill] sm:$0xff] }
 0x241   : > { %8400 = vmatprep.subr.bf16.mxu0 %v11289_v55  ;;  %v3414_v7 = vmax.f32 %v11464_v4, 1e-16 }
 0x243   : > { %5191 = vmatmul.mubr.f32.vlgmr.msra.gmra.mrb[48].mxu0 %v10514_v20  ;;  %8442 = vmatpush3.bf16.msra.mxu1 %v11456_v27  ;;  %v11459_v20 = vld [vmem:[#allocation46_spill] sm:$0xff]  ;;  %v11465_v27 = vld [vmem:[#allocation49_spill] sm:$0xff]  ;;  %8699 = vrsqrt.f32 %v3414_v7 }
 0x244   : > { %5196 = vmatprep.mubr.f32.mxu0 %v11449_v25  ;;  %8402 = vmatpush3.bf16.msra.mxu0 %v11291_v9  ;;  %v11460_v25 = vld [vmem:[#allocation30_spill] sm:$0xff]  ;;  %v11474_v7 = vld [vmem:[#allocation33_spill] sm:$0xff] }
 0x245   : > { %8404 = vmatprep.subr.bf16.mxu0 %v11293_v18  ;;  %8444 = vmatprep.subr.bf16.mxu1 %v11457_v62  ;;  %vm5344_vm5 = vcmp.eq.f32.partialorder %v11460_v25, 3.0  ;;  %v11466_v62 = vld [vmem:[#allocation32_spill] sm:$0xff] }
 0x246   : > { %vm5346_vm14 = vcmp.eq.f32.partialorder %v11466_v62, 3.0  ;;  %v11468_v25 = vld [vmem:[#allocation12_spill] sm:$0xff] }
 0x247   : > { %5198 = vmatmul.mubr.f32.gmra.mrb[50].mxu0 %v10528_v51  ;;  %8446 = vmatpush3.bf16.msra.mxu1 %v11458_v14  ;;  %v11463_v51 = vld [vmem:[#allocation59_spill] sm:$0xff]  ;;  %v5351_v24 = vsel %vm5347_vm9, %v11468_v25, 0.0  ;;  %v11473_v25 = vld [vmem:[#allocation60_spill] sm:$0xff] }
 0x248   : > { %8406 = vmatpush3.bf16.msra.mxu0 %v11295_v8  ;;  %5453 = vmatprep.mubr.f32.mxu0 %v5452_v2  ;;  %v5348_v59 = vsel %vm5344_vm5, %v11463_v51, 0.0  ;;  %v11467_v2 = vld [vmem:[#allocation44_spill] sm:$0xff]  ;;  %v11470_v51 = vld [vmem:[#allocation37_spill] sm:$0xff]  ;;  %v10693_v62 = vand.u32 4294901760, %v5351_v24  ;;  %v2473_v58 = vmax.f32 %v11473_v25, 1e-16 }
 0x249   : > { %8408 = vmatprep.subr.bf16.mxu0 %v11296_v29  ;;  %8448 = vmatprep.subr.bf16.mxu1 %v11459_v20  ;;  %v2472_v14 = vmax.f32 %v11467_v2, 1e-16  ;;  %v6893_v20 = vpop.f32.mrb[24].mxu1  ;;  %v10687_v16 = vand.u32 4294901760, %v5348_v59  ;;  %v3415_v4 = vmax.f32 %v11470_v51, 1e-16 }
 0x24a   : > { %v6894_v34 = vpop.f32.mrb[25].mxu1  ;;  %v11472_v2 = vld [vmem:[#allocation13_spill] sm:$0xff] }
 0x24b   : > { %8450 = vmatpush3.bf16.msra.mxu1 %v11462_v56  ;;  %v6895_v56 = vadd.f32 %v6894_v34, %v6893_v20  ;;  %v5350_v37 = vsel %vm5346_vm14, %v11472_v2, 0.0  ;;  %8701 = vrsqrt.f32 %v2472_v14  ;;  %v6896_v48 = vpop.f32.mrb[26].mxu1  ;;  %v10707_v14 = vsub.f32 %v5351_v24, %v10693_v62 }
 0x24c   : > { %8410 = vmatpush3.bf16.msra.mxu0 %v9339_v32  ;;  %8452 = vmatprep.subr.bf16.mxu1 %v11465_v27  ;;  %v11471_v27 = vld [vmem:[#allocation51_spill] sm:$0xff]  ;;  %v6897_v17 = vpop.f32.mrb[27].mxu1  ;;  %v10703_v34 = vand.u32 4294901760, %v5350_v37  ;;  %8703 = vrsqrt.f32 %v3415_v4  ;;  %v6855_v51 = vpop.f32.mrb[24].mxu0 }
 0x24d   : > { %8412 = vmatprep.subr.bf16.mxu0 %v9368_v61  ;;  %v6898_v20 = vadd.f32 %v6897_v17, %v6896_v48  ;;  %8705 = vrsqrt.f32 %v2473_v58  ;;  %v6856_v2 = vpop.f32.mrb[25].mxu0  ;;  %v11124_v58 = vand.u32 4294901760, %v10707_v14 }
 0x24e   : > { %v6857_v25 = vadd.f32 %v6856_v2, %v6855_v51  ;;  %v10714_v48 = vsub.f32 %v5350_v37, %v10703_v34  ;;  %v8700_v51 = vpop.eup %8699 }
 0x24f   : > { %8454 = vmatpush3.bf16.msra.mxu1 %v11469_v47  ;;  %v10699_v47 = vsub.f32 %v5348_v59, %v10687_v16  ;;  %v11476_v59 = vld [vmem:[#allocation39_spill] sm:$0xff] }
 0x250   : > { %8414 = vmatpush3.bf16.msra.mxu0 %v9372_v52  ;;  %8456 = vmatprep.subr.bf16.mxu1 %v11471_v27  ;;  %v11475_v27 = vld [vmem:[#allocation41_spill] sm:$0xff]  ;;  %v3281_v4 = vadd.f32 %v6857_v25, %v10646_v50 }
 0x251   : > { %8416 = vmatprep.subr.bf16.mxu0 %v9429_v13  ;;  %v11123_v17 = vand.u32 4294901760, %v10699_v47 }
 0x253   : > { %8458 = vmatpush3.bf16.msra.mxu1 %v11474_v7  ;;  %v6858_v7 = vpop.f32.mrb[26].mxu0  ;;  %v5457_v37 = vsub.f32 %v10699_v47, %v11123_v17 }
 0x254   : > { %8418 = vmatpush3.bf16.msra.mxu0 %v9445_v45  ;;  %8460 = vmatprep.subr.bf16.mxu1 %v11475_v27  ;;  %v6859_v24 = vpop.f32.mrb[27].mxu0  ;;  %v3392_v27 = vadd.f32 %v6895_v56, %v3281_v4  ;;  %v5466_v4 = vsub.f32 %v10707_v14, %v11124_v58  ;;  %v11477_v58 = vand.u32 4294901760, %v10642_v10 }
 0x255   : > { %8420 = vmatprep.subr.bf16.mxu0 %v11253_v41  ;;  %v6860_v2 = vadd.f32 %v6859_v24, %v6858_v7  ;;  %v6435_v7 = vsel %vm6271_vm10, 1.0, %v11401_v15  ;;  %v5458_v50 = vand.u32 4294901760, %v5457_v37  ;;  %v11478_v15 = vand.u32 4294901760, %v10714_v48 }
 0x257   : > { %8462 = vmatpush3.bf16.msra.mxu1 %v11476_v59  ;;  %v10721_v59 = vpop.eup %8701  ;;  %v3288_v56 = vadd.f32 %v6860_v2, %v10655_v22  ;;  %v6279_v22 = vsel %vm319_vm0, %v6435_v7, 0.0 }
 0x258   : > { %8422 = vmatpush3.bf16.msra.mxu0 %v11276_v40  ;;  %8496 = vmatprep.subr.bf16.mxu1 %v11289_v55  ;;  %v3418_v25 = vmul.f32 %v10721_v59, %v3392_v27  ;;  %v8704_v24 = vpop.eup %8703 }
 0x259   : > { %8424 = vmatprep.subr.bf16.mxu0 %v9655_v60  ;;  %v3399_v27 = vadd.f32 %v6898_v20, %v3288_v56  ;;  %v10745_v2 = vpop.eup %8705  ;;  %6280 = vadd.xlane.f32.xlu1 %v6279_v22 }
 0x25a   : > { %5706 = vmatmul.mubr.f32.vlgmr.msra.gmra.mrb[52].mxu1 %v10687_v16  ;;  %v10740_v17 = vmul.f32 %v8700_v51, %v3418_v25  ;;  %v5472_v51 = vsub.f32 %v10714_v48, %v11478_v15  ;;  %v5467_v25 = vand.u32 4294901760, %v5466_v4 }
 0x25b   : > { %5711 = vmatprep.mubr.f32.mxu1 %v10693_v62  ;;  %8498 = vmatpush3.bf16.msra.mxu1 %v11291_v9  ;;  %v3419_v20 = vmul.f32 %v10745_v2, %v3399_v27  ;;  %v11482_v27 = vand.u32 4294901760, %v10707_v14 }
 0x25c   : > { %8426 = vmatpush3.bf16.msra.mxu0 %v9672_v42  ;;  %8500 = vmatprep.subr.bf16.mxu1 %v11293_v18 }
 0x25d   : > { %8428 = vmatprep.subr.bf16.mxu0 %v9793_v11  ;;  %v10756_v56 = vmul.f32 %v8704_v24, %v3419_v20  ;;  %v11481_v24 = vand.u32 4294901760, %v10699_v47 }
 0x25e   : > { %5713 = vmatmul.mubr.f32.gmra.mrb[54].mxu1 %v10703_v34 }
 0x25f   : > { %8502 = vmatpush3.bf16.msra.mxu1 %v11295_v8  ;;  %5964 = vmatprep.mubr.f32.mxu1 %v11477_v58  ;;  %v5473_v58 = vand.u32 4294901760, %v5472_v51 }
 0x260   : > { %8430 = vmatpush3.bf16.msra.mxu0 %v9824_v35  ;;  %8504 = vmatprep.subr.bf16.mxu1 %v11296_v29 }
 0x261   : > { %8464 = vmatprep.subr.bf16.mxu0 %v11398_v43 }
 0x263   : > { %5459 = vmatmul.mubr.f32.vlgmr.msra.gmra.mrb[52].mxu0 %v5458_v50  ;;  %8506 = vmatpush3.bf16.msra.mxu1 %v9339_v32 }
 0x264   : > { %5468 = vmatprep.mubr.f32.mxu0 %v5467_v25  ;;  %8466 = vmatpush3.bf16.msra.mxu0 %v9888_v63 }
 0x265   : > { %8468 = vmatprep.subr.bf16.mxu0 %v9895_v36  ;;  %8508 = vmatprep.subr.bf16.mxu1 %v9368_v61 }
 0x267   : > { %5474 = vmatmul.mubr.f32.gmra.mrb[54].mxu0 %v5473_v58  ;;  %8510 = vmatpush3.bf16.msra.mxu1 %v9372_v52 }
 0x268   : > { %8470 = vmatpush3.bf16.msra.mxu0 %v9911_v5  ;;  %5848 = vmatprep.mubr.f32.mxu0 %v10642_v10 }
 0x269   : > { %8472 = vmatprep.subr.bf16.mxu0 %v9918_v21  ;;  %8512 = vmatprep.subr.bf16.mxu1 %v9429_v13 }
 0x26b   : > { %8514 = vmatpush3.bf16.msra.mxu1 %v9445_v45 }
 0x26c   : > { %8474 = vmatpush3.bf16.msra.mxu0 %v9927_v28  ;;  %8516 = vmatprep.subr.bf16.mxu1 %v11253_v41  ;;  %v11479_v28 = vld [vmem:[#allocation16_spill] sm:$0xff] }
 0x26d   : > { %8476 = vmatprep.subr.bf16.mxu0 %v9933_v38  ;;  %v6969_v63 = vpop.f32.mrb[28].mxu1  ;;  %v11480_v38 = vld [vmem:[#allocation21_spill] sm:$0xff] }
 0x26e   : > { %v6970_v36 = vpop.f32.mrb[29].mxu1 }
 0x26f   : > { %v6971_v5 = vadd.f32 %v6970_v36, %v6969_v63  ;;  %8518 = vmatpush3.bf16.msra.mxu1 %v11276_v40 }
 0x270   : > { %8478 = vmatpush3.bf16.msra.mxu0 %v9939_v30  ;;  %8520 = vmatprep.subr.bf16.mxu1 %v9655_v60 }
 0x271   : > { %8480 = vmatprep.subr.bf16.mxu0 %v9945_v19  ;;  %v6972_v21 = vpop.f32.mrb[30].mxu1 }
 0x272   : > { %v6973_v43 = vpop.f32.mrb[31].mxu1 }
 0x273   : > { %v6974_v15 = vadd.f32 %v6973_v43, %v6972_v21  ;;  %8522 = vmatpush3.bf16.msra.mxu1 %v9672_v42  ;;  %v3422_v43 = vmul.f32 1.442695, %v10740_v17 }
 0x274   : > { %8482 = vmatpush3.bf16.msra.mxu0 %v11479_v28  ;;  %8524 = vmatprep.subr.bf16.mxu1 %v9793_v11 }
 0x275   : > { %8484 = vmatprep.subr.bf16.mxu0 %v11480_v38 }
 0x276   : > { %v6931_v10 = vpop.f32.mrb[28].mxu0 }
 0x277   : > { %v6932_v30 = vpop.f32.mrb[29].mxu0  ;;  %8526 = vmatpush3.bf16.msra.mxu1 %v9824_v35 }
 0x278   : > { %v6933_v37 = vadd.f32 %v6932_v30, %v6931_v10  ;;  %8486 = vmatpush3.bf16.msra.mxu0 %v9963_v3  ;;  %8560 = vmatprep.subr.bf16.mxu1 %v11289_v55  ;;  %v3428_v30 = vsel %vm3402_vm4, %v10740_v17, 0.0 }
 0x279   : > { %8488 = vmatprep.subr.bf16.mxu0 %v9969_v0  ;;  %v11483_v0 = vand.u32 4294901760, %v10714_v48 }
 0x27a   : > { %v3796_v19 = vadd.f32 %v6971_v5, %v6933_v37  ;;  %v6934_v50 = vpop.f32.mrb[30].mxu0  ;;  %5968 = vmatmul.mubr.f32.vlgmr.msra.gmra.mrb[56].mxu1 %v11481_v24 }
 0x27b   : > { %v6935_v4 = vpop.f32.mrb[31].mxu0  ;;  %5975 = vmatprep.mubr.f32.mxu1 %v11482_v27  ;;  %8562 = vmatpush3.bf16.msra.mxu1 %v11291_v9  ;;  %v11484_v9 = vld [vmem:[#allocation23_spill] sm:$0xff]  ;;  %v3429_v27 = vsel %vm3403_vm8, %v10756_v56, 0.0 }
 0x27c   : > { %v6936_v7 = vadd.f32 %v6935_v4, %v6934_v50  ;;  %8490 = vmatpush3.bf16.msra.mxu0 %v9975_v26  ;;  %8564 = vmatprep.subr.bf16.mxu1 %v11293_v18  ;;  %v11486_v26 = vld [vmem:[#allocation28_spill] sm:$0xff]  ;;  %v3424_v4 = vmul.f32 1.442695, %v10756_v56 }
 0x27d   : > { %8492 = vmatprep.subr.bf16.mxu0 %v9981_v54 }
 0x27e   : > { %v3803_v3 = vadd.f32 %v6974_v15, %v6936_v7  ;;  %5979 = vmatmul.mubr.f32.gmra.mrb[58].mxu1 %v11483_v0 }
 0x27f   : > { %8566 = vmatpush3.bf16.msra.mxu1 %v11295_v8  ;;  %6256 = vmatprep.mubr.f32.mxu1 %v10635_v49  ;;  %v11485_v8 = vld [vmem:[#allocation25_spill] sm:$0xff] }
 0x280   : > { %8494 = vmatpush3.bf16.msra.mxu0 %v9990_v6  ;;  %8568 = vmatprep.subr.bf16.mxu1 %v11296_v29 }
 0x281   : > { %8528 = vmatprep.subr.bf16.mxu0 %v11363_v33 }
 0x283   : > { %5851 = vmatmul.mubr.f32.vlgmr.msra.gmra.mrb[56].mxu0 %v10699_v47  ;;  %8570 = vmatpush3.bf16.msra.mxu1 %v9339_v32 }
 0x284   : > { %5857 = vmatprep.mubr.f32.mxu0 %v10707_v14  ;;  %8530 = vmatpush3.bf16.msra.mxu0 %v11364_v53 }
 0x285   : > { %8532 = vmatprep.subr.bf16.mxu0 %v11365_v23  ;;  %8572 = vmatprep.subr.bf16.mxu1 %v9368_v61 }
 0x287   : > { %5860 = vmatmul.mubr.f32.gmra.mrb[58].mxu0 %v10714_v48  ;;  %8574 = vmatpush3.bf16.msra.mxu1 %v9372_v52 }
 0x288   : > { %8534 = vmatpush3.bf16.msra.mxu0 %v11366_v57  ;;  %6145 = vmatprep.mubr.f32.mxu0 %v10635_v49  ;;  %v11490_v57 = vld [vmem:[#allocation31_spill] sm:$0xff] }
 0x289   : > { %8536 = vmatprep.subr.bf16.mxu0 %v11367_v1  ;;  %8576 = vmatprep.subr.bf16.mxu1 %v9429_v13  ;;  %v4366_v1 = vpop.xlane.xlu1 %4365 }
 0x28b   : > { %8578 = vmatpush3.bf16.msra.mxu1 %v9445_v45 }
 0x28c   : > { %8538 = vmatpush3.bf16.msra.mxu0 %v11368_v44  ;;  %8580 = vmatprep.subr.bf16.mxu1 %v11253_v41 }
 0x28d   : > { %8540 = vmatprep.subr.bf16.mxu0 %v11369_v31  ;;  %v7045_v32 = vpop.f32.mrb[32].mxu1  ;;  %v4370_v31 = vmax.f32 %v4366_v1, 1e-16 }
 0x28e   : > { %v7046_v61 = vpop.f32.mrb[33].mxu1 }
 0x28f   : > { %v7047_v18 = vadd.f32 %v7046_v61, %v7045_v32  ;;  %8582 = vmatpush3.bf16.msra.mxu1 %v11276_v40  ;;  %v11487_v40 = vld [vmem:[#allocation38_spill] sm:$0xff]  ;;  %8707 = vrsqrt.f32 %v4370_v31 }
 0x290   : > { %8542 = vmatpush3.bf16.msra.mxu0 %v11410_v39  ;;  %8584 = vmatprep.subr.bf16.mxu1 %v9655_v60 }
 0x291   : > { %8544 = vmatprep.subr.bf16.mxu0 %v11411_v12  ;;  %v7048_v52 = vpop.f32.mrb[34].mxu1  ;;  %v4369_v12 = vpop.xlane.xlu1 %4368 }
 0x292   : > { %v7049_v13 = vpop.f32.mrb[35].mxu1  ;;  %v4371_v14 = vmax.f32 %v4369_v12, 1e-16 }
 0x293   : > { %v7050_v45 = vadd.f32 %v7049_v13, %v7048_v52  ;;  %8586 = vmatpush3.bf16.msra.mxu1 %v9672_v42  ;;  %v11488_v42 = vld [vmem:[#allocation36_spill] sm:$0xff] }
 0x294   : > { %8546 = vmatpush3.bf16.msra.mxu0 %v11484_v9  ;;  %8588 = vmatprep.subr.bf16.mxu1 %v9793_v11  ;;  %v11489_v11 = vld [vmem:[#allocation58_spill] sm:$0xff]  ;;  %8709 = vrsqrt.f32 %v4371_v14 }
 0x295   : > { %8548 = vmatprep.subr.bf16.mxu0 %v11485_v8  ;;  %8711 = vpow2.f32 %v3422_v43 }
 0x296   : > { %v7007_v41 = vpop.f32.mrb[32].mxu0 }
 0x297   : > { %v7008_v55 = vpop.f32.mrb[33].mxu0  ;;  %8590 = vmatpush3.bf16.msra.mxu1 %v9824_v35 }
 0x298   : > { %v7009_v29 = vadd.f32 %v7008_v55, %v7007_v41  ;;  %8550 = vmatpush3.bf16.msra.mxu0 %v11486_v26 }
 0x299   : > { %8552 = vmatprep.subr.bf16.mxu0 %v11487_v40  ;;  %v8708_v36 = vpop.eup %8707 }
 0x29a   : > { %v3941_v60 = vadd.f32 %v7009_v29, %v3796_v19  ;;  %v7010_v54 = vpop.f32.mrb[34].mxu0  ;;  %6258 = vmatmul.mubr.f32.vlgmr.msra.gmra.mrb[60].mxu1 %v10687_v16 }
 0x29b   : > { %v7011_v6 = vpop.f32.mrb[35].mxu0  ;;  %6263 = vmatprep.mubr.f32.mxu1 %v10693_v62 }
 0x29c   : > { %v7012_v33 = vadd.f32 %v7011_v6, %v7010_v54  ;;  %8554 = vmatpush3.bf16.msra.mxu0 %v11488_v42  ;;  %v4058_v53 = vadd.f32 %v7047_v18, %v3941_v60 }
 0x29d   : > { %8556 = vmatprep.subr.bf16.mxu0 %v11489_v11 }
 0x29e   : > { %v3950_v23 = vadd.f32 %v7012_v33, %v3803_v3  ;;  %6265 = vmatmul.mubr.f32.gmra.mrb[62].mxu1 %v10703_v34  ;;  %v8710_v38 = vpop.eup %8709 }
 0x29f   : > { %v8712_v32 = vpop.eup %8711 }
 0x2a0   : > { %8558 = vmatpush3.bf16.msra.mxu0 %v11490_v57  ;;  %v4069_v35 = vadd.f32 %v7050_v45, %v3950_v23 }
 0x2a3   : > { %6147 = vmatmul.mubr.f32.vlgmr.msra.gmra.mrb[60].mxu0 %v10687_v16 }
 0x2a4   : > { %6152 = vmatprep.mubr.f32.mxu0 %v10693_v62 }
 0x2a7   : > { %6154 = vmatmul.mubr.f32.gmra.mrb[62].mxu0 %v10703_v34 }
 0x2ad   : > { %v7121_v44 = vpop.f32.mrb[36].mxu1 }
 0x2ae   : > { %v7122_v39 = vpop.f32.mrb[37].mxu1 }
 0x2af   : > { %v7123_v49 = vadd.f32 %v7122_v39, %v7121_v44 }
 0x2b1   : > { %v7124_v47 = vpop.f32.mrb[38].mxu1 }
 0x2b2   : > { %v7125_v48 = vpop.f32.mrb[39].mxu1 }
 0x2b3   : > { %v7126_v22 = vadd.f32 %v7125_v48, %v7124_v47 }
 0x2b6   : > { %v7083_v51 = vpop.f32.mrb[36].mxu0 }
 0x2b7   : > { %v7084_v20 = vpop.f32.mrb[37].mxu0 }
 0x2b8   : > { %v7085_v25 = vadd.f32 %v7084_v20, %v7083_v51 }
 0x2ba   : > { %v4237_v16 = vadd.f32 %v7085_v25, %v4058_v53  ;;  %v7086_v58 = vpop.f32.mrb[38].mxu0  ;;  %v11492_v25 = vld [vmem:[#allocation10_spill] sm:$0xff] }
 0x2bb   : > { %v7087_v62 = vpop.f32.mrb[39].mxu0 }
 0x2bc   : > { %v4348_v63 = vadd.f32 %v7123_v49, %v4237_v16  ;;  %v7088_v34 = vadd.f32 %v7087_v62, %v7086_v58  ;;  %v5326_v16 = vmax.f32 %v11492_v25, 1e-16 }
 0x2be   : > { %v4374_v5 = vmul.f32 %v10721_v59, %v4348_v63  ;;  %v4244_v21 = vadd.f32 %v7088_v34, %v4069_v35  ;;  %v5325_v63 = vpop.xlane.xlu1 %5324 }
 0x2c0   : > { %v4376_v28 = vmul.f32 %v8708_v36, %v4374_v5  ;;  %v4355_v15 = vadd.f32 %v7126_v22, %v4244_v21  ;;  %v5327_v5 = vmax.f32 %v5325_v63, 1e-16 }
 0x2c2   : > { %v4378_v37 = vmul.f32 1.442695, %v4376_v28  ;;  %v4384_v19 = vsel %vm4358_vm6, %v4376_v28, 0.0  ;;  %v4375_v50 = vmul.f32 %v10745_v2, %v4355_v15 }
 0x2c3   : > { %v10843_v7 = vadd.f32 %v4384_v19, %v3428_v30 }
 0x2c4   : > { %8713 = vpow2.f32 %v4378_v37  ;;  %v4377_v24 = vmul.f32 %v8710_v38, %v4375_v50 }
 0x2c5   : > { %8715 = vpow2.f32 %v3424_v4 }
 0x2c6   : > { %v4380_v3 = vmul.f32 1.442695, %v4377_v24  ;;  %v4385_v17 = vsel %vm4359_vm7, %v4377_v24, 0.0 }
 0x2c7   : > { %v10850_v0 = vadd.f32 %v4385_v17, %v3429_v27 }
 0x2c8   : > { %8717 = vpow2.f32 %v4380_v3 }
 0x2c9   : > { %8719 = vrsqrt.f32 %v5326_v16 }
 0x2ca   : > { %8721 = vrsqrt.f32 %v5327_v5 }
 0x2cd   : > { %v7197_v18 = vpop.f32.mrb[40].mxu1 }
 0x2ce   : > { %v8714_v61 = vpop.eup %8713  ;;  %v7198_v13 = vpop.f32.mrb[41].mxu1 }
 0x2cf   : > { %v10852_v52 = vadd.f32 %v8714_v61, %v8712_v32  ;;  %v8716_v9 = vpop.eup %8715  ;;  %v7199_v45 = vadd.f32 %v7198_v13, %v7197_v18 }
 0x2d1   : > { %v7200_v41 = vpop.f32.mrb[42].mxu1 }
 0x2d2   : > { %v8718_v8 = vpop.eup %8717  ;;  %v7201_v56 = vpop.f32.mrb[43].mxu1 }
 0x2d3   : > { %v10854_v55 = vadd.f32 %v8718_v8, %v8716_v9  ;;  %v7202_v29 = vadd.f32 %v7201_v56, %v7200_v41  ;;  %v8720_v24 = vpop.eup %8719 }
 0x2d4   : > { %v8722_v61 = vpop.eup %8721 }
 0x2d6   : > { %v7159_v26 = vpop.f32.mrb[40].mxu0 }
 0x2d7   : > { %v7160_v40 = vpop.f32.mrb[41].mxu0 }
 0x2d8   : > { %v7161_v60 = vadd.f32 %v7160_v40, %v7159_v26 }
 0x2da   : > { %v4752_v54 = vadd.f32 %v7199_v45, %v7161_v60  ;;  %v7162_v6 = vpop.f32.mrb[42].mxu0 }
 0x2db   : > { %v7163_v33 = vpop.f32.mrb[43].mxu0 }
 0x2dc   : > { %v7164_v42 = vadd.f32 %v7163_v33, %v7162_v6 }
 0x2de   : > { %v4759_v53 = vadd.f32 %v7202_v29, %v7164_v42 }
 0x2ed   : > { %v7273_v11 = vpop.f32.mrb[44].mxu1 }
 0x2ee   : > { %v7274_v23 = vpop.f32.mrb[45].mxu1 }
 0x2ef   : > { %v7275_v57 = vadd.f32 %v7274_v23, %v7273_v11 }
 0x2f1   : > { %v7276_v35 = vpop.f32.mrb[46].mxu1 }
 0x2f2   : > { %v7277_v1 = vpop.f32.mrb[47].mxu1 }
 0x2f3   : > { %v7278_v44 = vadd.f32 %v7277_v1, %v7276_v35 }
 0x2f6   : > { %v7235_v31 = vpop.f32.mrb[44].mxu0 }
 0x2f7   : > { %v7236_v39 = vpop.f32.mrb[45].mxu0 }
 0x2f8   : > { %v7237_v12 = vadd.f32 %v7236_v39, %v7235_v31 }
 0x2fa   : > { %v4897_v49 = vadd.f32 %v7237_v12, %v4752_v54  ;;  %v7238_v47 = vpop.f32.mrb[46].mxu0 }
 0x2fb   : > { %v7239_v14 = vpop.f32.mrb[47].mxu0 }
 0x2fc   : > { %v7240_v48 = vadd.f32 %v7239_v14, %v7238_v47  ;;  %v5014_v22 = vadd.f32 %v7275_v57, %v4897_v49 }
 0x2fe   : > { %v4906_v51 = vadd.f32 %v7240_v48, %v4759_v53 }
 0x300   : > { %v5025_v20 = vadd.f32 %v7278_v44, %v4906_v51 }
 0x30d   : > { %v7349_v58 = vpop.f32.mrb[48].mxu1 }
 0x30e   : > { %v7350_v62 = vpop.f32.mrb[49].mxu1 }
 0x30f   : > { %v7351_v34 = vadd.f32 %v7350_v62, %v7349_v58 }
 0x311   : > { %v7352_v36 = vpop.f32.mrb[50].mxu1 }
 0x312   : > { %v7353_v21 = vpop.f32.mrb[51].mxu1 }
 0x313   : > { %v7354_v43 = vadd.f32 %v7353_v21, %v7352_v36  ;;  %v11493_v36 = vld [vmem:[#allocation42_spill] sm:$0xff] }
 0x314   : > { %v6282_v5 = vmax.f32 %v11493_v36, 1e-16 }
 0x316   : > { %v7311_v28 = vpop.f32.mrb[48].mxu0 }
 0x317   : > { %v7312_v15 = vpop.f32.mrb[49].mxu0 }
 0x318   : > { %v7313_v38 = vadd.f32 %v7312_v15, %v7311_v28  ;;  %v6281_v28 = vpop.xlane.xlu1 %6280 }
 0x31a   : > { %v5193_v30 = vadd.f32 %v7313_v38, %v5014_v22  ;;  %v7314_v37 = vpop.f32.mrb[50].mxu0 }
 0x31b   : > { %v7315_v19 = vpop.f32.mrb[51].mxu0 }
 0x31c   : > { %v5304_v50 = vadd.f32 %v7351_v34, %v5193_v30  ;;  %v7316_v4 = vadd.f32 %v7315_v19, %v7314_v37  ;;  %v6283_v30 = vmax.f32 %v6281_v28, 1e-16 }
 0x31e   : > { %v5330_v27 = vmul.f32 %v10721_v59, %v5304_v50  ;;  %v5200_v3 = vadd.f32 %v7316_v4, %v5025_v20 }
 0x320   : > { %v5332_v17 = vmul.f32 %v8720_v24, %v5330_v27  ;;  %v5311_v32 = vadd.f32 %v7354_v43, %v5200_v3 }
 0x322   : > { %v5334_v18 = vmul.f32 1.442695, %v5332_v17  ;;  %v5331_v13 = vmul.f32 %v10745_v2, %v5311_v32  ;;  %v5340_v9 = vsel %vm5314_vm12, %v5332_v17, 0.0 }
 0x323   : > { %v10862_v45 = vadd.f32 %v5340_v9, %v10843_v7 }
 0x324   : > { %8723 = vpow2.f32 %v5334_v18  ;;  %v5333_v8 = vmul.f32 %v8722_v61, %v5331_v13 }
 0x326   : > { %v5336_v41 = vmul.f32 1.442695, %v5333_v8  ;;  %v5341_v56 = vsel %vm5315_vm15, %v5333_v8, 0.0 }
 0x327   : > { %v10867_v29 = vadd.f32 %v5341_v56, %v10850_v0 }
 0x328   : > { %8725 = vpow2.f32 %v5336_v41 }
 0x329   : > { %8727 = vrsqrt.f32 %v6282_v5 }
 0x32a   : > { %8729 = vrsqrt.f32 %v6283_v30 }
 0x32d   : > { %v7425_v40 = vpop.f32.mrb[52].mxu1 }
 0x32e   : > { %v8724_v26 = vpop.eup %8723  ;;  %v7426_v54 = vpop.f32.mrb[53].mxu1 }
 0x32f   : > { %v10870_v60 = vadd.f32 %v8724_v26, %v10852_v52  ;;  %v7427_v6 = vadd.f32 %v7426_v54, %v7425_v40 }
 0x331   : > { %v7428_v7 = vpop.f32.mrb[54].mxu1 }
 0x332   : > { %v8726_v33 = vpop.eup %8725  ;;  %v7429_v53 = vpop.f32.mrb[55].mxu1 }
 0x333   : > { %v10873_v42 = vadd.f32 %v8726_v33, %v10854_v55  ;;  %v7430_v11 = vadd.f32 %v7429_v53, %v7428_v7  ;;  %v8728_v18 = vpop.eup %8727 }
 0x334   : > { %v8730_v56 = vpop.eup %8729 }
 0x336   : > { %v7387_v23 = vpop.f32.mrb[52].mxu0 }
 0x337   : > { %v7388_v57 = vpop.f32.mrb[53].mxu0 }
 0x338   : > { %v7389_v35 = vadd.f32 %v7388_v57, %v7387_v23 }
 0x33a   : > { %v5708_v0 = vadd.f32 %v7427_v6, %v7389_v35  ;;  %v7390_v1 = vpop.f32.mrb[54].mxu0 }
 0x33b   : > { %v7391_v44 = vpop.f32.mrb[55].mxu0 }
 0x33c   : > { %v7392_v31 = vadd.f32 %v7391_v44, %v7390_v1 }
 0x33e   : > { %v5715_v39 = vadd.f32 %v7430_v11, %v7392_v31 }
 0x34d   : > { %v7501_v12 = vpop.f32.mrb[56].mxu1 }
 0x34e   : > { %v7502_v52 = vpop.f32.mrb[57].mxu1 }
 0x34f   : > { %v7503_v49 = vadd.f32 %v7502_v52, %v7501_v12 }
 0x351   : > { %v7504_v47 = vpop.f32.mrb[58].mxu1 }
 0x352   : > { %v7505_v14 = vpop.f32.mrb[59].mxu1 }
 0x353   : > { %v7506_v48 = vadd.f32 %v7505_v14, %v7504_v47 }
 0x356   : > { %v7463_v22 = vpop.f32.mrb[56].mxu0 }
 0x357   : > { %v7464_v51 = vpop.f32.mrb[57].mxu0 }
 0x358   : > { %v7465_v55 = vadd.f32 %v7464_v51, %v7463_v22 }
 0x35a   : > { %v5853_v20 = vadd.f32 %v7465_v55, %v5708_v0  ;;  %v7466_v25 = vpop.f32.mrb[58].mxu0  ;;  %v11496_v55 = vld [vmem:[#allocation5_spill] sm:$0xff] }
 0x35b   : > { %v7467_v16 = vpop.f32.mrb[59].mxu0 }
 0x35c   : > { %v7468_v58 = vadd.f32 %v7467_v16, %v7466_v25  ;;  %v5970_v62 = vadd.f32 %v7503_v49, %v5853_v20  ;;  %v11497_v20 = vmov 0.0   ;;  %v6323_v16 = vstv %s8632_s30 }
 0x35e   : > { %v5862_v63 = vadd.f32 %v7468_v58, %v5715_v39 }
 0x360   : > { %v5981_v34 = vadd.f32 %v7506_v48, %v5862_v63 }
 0x36d   : > { %v7577_v21 = vpop.f32.mrb[60].mxu1 }
 0x36e   : > { %v7578_v43 = vpop.f32.mrb[61].mxu1 }
 0x36f   : > { %v7579_v15 = vadd.f32 %v7578_v43, %v7577_v21 }
 0x371   : > { %v7580_v38 = vpop.f32.mrb[62].mxu1 }
 0x372   : > { %v7581_v37 = vpop.f32.mrb[63].mxu1 }
 0x373   : > { %v7582_v19 = vadd.f32 %v7581_v37, %v7580_v38 }
 0x376   : > { %v7539_v50 = vpop.f32.mrb[60].mxu0 }
 0x377   : > { %v7540_v4 = vpop.f32.mrb[61].mxu0 }
 0x378   : > { %v7541_v24 = vadd.f32 %v7540_v4, %v7539_v50 }
 0x37a   : > { %v6149_v27 = vadd.f32 %v7541_v24, %v5970_v62  ;;  %v7542_v3 = vpop.f32.mrb[62].mxu0 }
 0x37b   : > { %v7543_v17 = vpop.f32.mrb[63].mxu0 }
 0x37c   : > { %v6260_v32 = vadd.f32 %v7579_v15, %v6149_v27  ;;  %v7544_v61 = vadd.f32 %v7543_v17, %v7542_v3 }
 0x37e   : > { %v6286_v13 = vmul.f32 %v10721_v59, %v6260_v32  ;;  %v6156_v9 = vadd.f32 %v7544_v61, %v5981_v34 }
 0x380   : > { %v6288_v8 = vmul.f32 %v8728_v18, %v6286_v13  ;;  %v6267_v41 = vadd.f32 %v7582_v19, %v6156_v9 }
 0x382   : > { %v6290_v26 = vmul.f32 1.442695, %v6288_v8  ;;  %v6287_v40 = vmul.f32 %v10745_v2, %v6267_v41  ;;  %v6296_v54 = vsel %vm6270_vm13, %v6288_v8, 0.0 }
 0x383   : > { %v6298_v6 = vadd.f32 %v6296_v54, %v10862_v45 }
 0x384   : > { %8731 = vpow2.f32 %v6290_v26  ;;  %v6289_v33 = vmul.f32 %v8730_v56, %v6287_v40 }
 0x386   : > { %v6292_v7 = vmul.f32 1.442695, %v6289_v33  ;;  %v6297_v53 = vsel %vm6271_vm10, %v6289_v33, 0.0 }
 0x387   : > { %v6299_v59 = vadd.f32 %v6297_v53, %v10867_v29 }
 0x388   : > { %8733 = vpow2.f32 %v6292_v7 }
 0x38e   : > { %v8732_v11 = vpop.eup %8731 }
 0x38f   : > { %v6294_v23 = vadd.f32 %v8732_v11, %v10870_v60 }
 0x391   : > { %8735 = vlog2.f32 %v6294_v23 }
 0x392   : > { %v8734_v57 = vpop.eup %8733 }
 0x393   : > { %v6295_v2 = vadd.f32 %v8734_v57, %v10873_v42 }
 0x395   : > { %8737 = vlog2.f32 %v6295_v2 }
 0x39b   : > { %v8736_v10 = vpop.eup %8735 }
 0x39c   : > { %v6301_v35 = vmul.f32 0.6931472, %v8736_v10 }
 0x39e   : > { %v6304_v45 = vsub.f32 %v6301_v35, %v6298_v6 }
 0x39f   : > { %v8738_v0 = vpop.eup %8737 }
 0x3a0   : > { %v6303_v1 = vmul.f32 0.6931472, %v8738_v0  ;;  %v6306_v31 = vsel %vm8952_vm1, %v6304_v45, 0.0  ;;  %vm6320_vm1 = vcmp.eq.s32.totalorder %v11496_v55, 0 }
 0x3a1   : > { %v6308_v60 = vsel %vm319_vm0, %v6306_v31, 0.0  ;;  %v6436_v25 = vsel %vm6320_vm1, 1.0, %v11497_v20 }
 0x3a2   : > { %v6305_v44 = vsub.f32 %v6303_v1, %v6299_v59  ;;  %v6324_v63 = vmul.f32 %v6436_v25, %v6323_v16 }
 0x3a4   : > { %v6307_v39 = vsel %vm8976_vm2, %v6305_v44, 0.0  ;;  %vm6325_vm2 = vcmp.eq.s32.totalorder %v11496_v55, 1 }
 0x3a5   : > { %v6309_v12 = vsel %vm319_vm0, %v6307_v39, 0.0  ;;  %v6437_v58 = vsel %vm6325_vm2, 1.0, %v11497_v20 }
 0x3a6   : > { %v6310_v52 = vadd.f32 %v6309_v12, %v6308_v60 }
 0x3a8   : > { %6311 = vadd.xlane.f32.xlu1 %v6310_v52 }
 0x435   : > { %v6312_v42 = vpop.xlane.xlu1 %6311 }
 0x436   : > { %v6313_v49 = vrot.slane %v6312_v42, 4 }
 0x438   : > { %v6314_v47 = vadd.f32 %v6313_v49, %v6312_v42 }
 0x43a   : > { %v6315_v14 = vrot.slane %v6314_v47, 2 }
 0x43c   : > { %v6316_v48 = vadd.f32 %v6315_v14, %v6314_v47 }
 0x43e   : > { %v6317_v22 = vrot.slane %v6316_v48, 1 }
 0x440   : > { %v6318_v51 = vadd.f32 %v6317_v22, %v6316_v48 }
 0x442   : > { %8633 = vpush %v6318_v51 }
 0x473   : > { %s8634_s6 = spop %8633 }
 0x474   : > { %v6328_v62 = vstv %s8634_s6 }
 0x475   : > { %v6329_v34 = vmul.f32 %v6437_v58, %v6328_v62 }
 0x477   : > { %v6330_v36 = vadd.f32 %v6329_v34, %v6324_v63 }
 0x479   : > { %6331 = vst [vmem:[%s263_s8] sm:$0xff] %v6330_v36 }
 0x47a   : > { %8752 = shalt.err (!%p8749_p3)
}
 0x47b   : > { %s8753_s23 = scalar_lea.hbm %s10901_s13, 128  ;;  %s8757_s26 = scalar_lea.hbm %s10948_s5, 512 }
 0x47c   : > { %p8754_p4 = scmp.ne.s32.totalorder %s10901_s13, %s8753_s23  ;;  %p8758_p9 = scmp.lt.u32.totalorder %s10901_s13, %s10948_s5 }
 0x47d   : > { %p8759_p10 = scmp.lt.u32.totalorder %s8757_s26, %s8753_s23  ;;  %p8761_p12 = scmp.lt.u32.totalorder %s8753_s23, %s10901_s13 }
 0x47e   : > { %p8755_p7 = pnand %p8754_p4, %p8873_p5 }
 0x47f   : > { %p8760_p11 = por %p8759_p10, %p8758_p9 }
 0x480   : > { %p8756_p8 = pneg %p8755_p7 }
 0x481   : > { %p8762_p13 = por %p8761_p12, %p8760_p11 }
 0x483   : > { %p8763_p0 = pnand %p8762_p13, %p8756_p8 }
 0x485   : > { %8766 = shalt.err (!%p8763_p0)
}
 0x486   : > { %8635 = dma.vmem_to_hbm [thread:$0]  (%p8873_p5), %s10903_s9, 128, %s10901_s13, %s6333_s11  }
 0x487 PF: > { %p8641_p1 = scmp.ge.s32.totalorder %s8801_s21, 2  ;;  %s6358_s7 = sand.u32 1, %s8789_s18  }
 0x488   : > { %s6359_s8 = scalar_lea.sflag [#allocation3], %s6358_s7 }
 0x489   : > { %p8638_p2 = pnand %p8641_p1, %p8877_p6 }
 0x48b   : > { %8784 = dma.done.wait (!%p8638_p2), %s6359_s8, 128  }
 0x48c   : > { %8786 = vsyncadd (!%p8638_p2), %s6359_s8, 4294967168  ;;  %p15_p3 = scmp.ge.s32.totalorder %s8860_s24, 6   ;;  %s11498_s18 = smov %s8793_s19 }
 0x48d   : > { %s11499_s19 = smov %s8797_s20  ;;  %s11500_s20 = smov %s8871_s27 }
 0x48e   : > { %s11501_s21 = smov %s8860_s24  ;;  %17 = sbr.rel (!%p15_p3) target bundleno = 3 (0x3), region = 78 }
 0x495   :  { %6364 = vsyncpa [#allocation3], 1 }
 0x496   :  { %6366 = vsyncpa [#allocation3 + $0x1], 1 }

</bundles_post_ra>
